<compile_context>
chip_gen: v6e
topology: v6e:2x2x1
jax: 0.10.0
libtpu: 0.0.40
codegen_flags: <defaults>
</compile_context>

<pallas_src>
import functools

import jax
import jax.numpy as jnp
from jax.experimental import pallas as pl
from jax.experimental.pallas import tpu as pltpu


# ---------------------------------------------------------------------------
# In-kernel 2x2 max-pool on row-major (h, w) tokens: (H*W, C) -> (M, C).
# Only sublane/major axes are reshaped; the lane (channel) dim is untouched.
# ---------------------------------------------------------------------------
def _pool2x2_tokens(t, H, W):
    # TODO(synk): if a bundle dump shows these reshapes materialize VMEM
    # copies, rewrite as strided jnp.maximum of row views (pure VPU work).
    C = t.shape[-1]
    t = t.reshape(H // 2, 2, W // 2, 2, C)
    t = jnp.max(t, axis=3)            # pool along w
    t = jnp.max(t, axis=1)            # pool along h
    return t.reshape((H // 2) * (W // 2), C)


# ---------------------------------------------------------------------------
# Fully fused kernel: projections + pool + attention + W/BN/residual.
# Grid = (B, N // tn); pooled phi^T / g live in persistent VMEM scratch.
# ---------------------------------------------------------------------------
def _fused_kernel(x_ref, wth_ref, bth_ref, wpg_ref, bpg_ref, wfold_ref,
                  bfold_ref, z_ref, *rest, H, W, Cint, tn, with_map):
    if with_map:
        f_ref, phiT_scr, g_scr = rest
    else:
        f_ref = None
        phiT_scr, g_scr = rest

    j = pl.program_id(1)

    # --- Once per batch element: phi|g projection over ALL tokens, 2x2 pool,
    # phi stored pre-transposed; both parked in persistent bf16 scratch.
    @pl.when(j == 0)
    def _():
        x_full = x_ref[0].astype(jnp.bfloat16)                      # (N, Cin)
        pg = (jnp.dot(x_full, wpg_ref[...],
                      preferred_element_type=jnp.float32)
              + bpg_ref[...])                                       # (N, 2*Cint) f32
        pooled = _pool2x2_tokens(pg, H, W)                          # (M, 2*Cint)
        phiT_scr[...] = jnp.transpose(pooled[:, :Cint]).astype(jnp.bfloat16)
        g_scr[...] = pooled[:, Cint:].astype(jnp.bfloat16)

    # --- Per N-tile: theta (1/M pre-folded), attention, W+BN affine, residual.
    start = pl.multiple_of(j * tn, tn)
    x_tile = x_ref[0, pl.ds(start, tn), :]                          # (tn, Cin) f32
    theta = (jnp.dot(x_tile.astype(jnp.bfloat16), wth_ref[...],
                     preferred_element_type=jnp.float32)
             + bth_ref[...])                                        # (tn, Cint) f32

    # f_div_C = (theta_x @ phi_x^T) / M  (the /M already lives inside theta).
    f = jnp.dot(theta.astype(jnp.bfloat16), phiT_scr[...],
                preferred_element_type=jnp.float32)                 # (tn, M) f32
    if with_map:                       # nl_map store only when requested
        f_ref[0] = f.astype(f_ref.dtype)

    y = jnp.dot(f.astype(jnp.bfloat16), g_scr[...],
                preferred_element_type=jnp.float32)                 # (tn, Cint)

    # W 1x1 conv + inference BatchNorm folded into one affine, then residual.
    z_ref[0] = (jnp.dot(y.astype(jnp.bfloat16), wfold_ref[...],
                        preferred_element_type=jnp.float32)
                + bfold_ref[...] + x_tile)


def _fused_call(x_tok, wth, bth, wpg, bpg, wfold, bfold, *, H, W, tn,
                with_map, nl_map_dtype):
    B, N, Cin = x_tok.shape
    Cint = wfold.shape[0]
    M = (H // 2) * (W // 2)
    num_tiles = N // tn

    kern = functools.partial(_fused_kernel, H=H, W=W, Cint=Cint, tn=tn,
                             with_map=with_map)

    in_specs = [
        # Full per-batch token block: block index depends only on b, so it is
        # DMA'd once per batch element and reused across all N-tiles.
        pl.BlockSpec((1, N, Cin), lambda b, j: (b, 0, 0)),
        pl.BlockSpec(wth.shape, lambda b, j: (0, 0)),
        pl.BlockSpec(bth.shape, lambda b, j: (0, 0)),
        pl.BlockSpec(wpg.shape, lambda b, j: (0, 0)),
        pl.BlockSpec(bpg.shape, lambda b, j: (0, 0)),
        pl.BlockSpec(wfold.shape, lambda b, j: (0, 0)),
        pl.BlockSpec(bfold.shape, lambda b, j: (0, 0)),
    ]
    out_specs = [pl.BlockSpec((1, tn, Cin), lambda b, j: (b, j, 0))]
    out_shape = [jax.ShapeDtypeStruct((B, N, Cin), jnp.float32)]
    if with_map:
        out_specs.append(pl.BlockSpec((1, tn, M), lambda b, j: (b, j, 0)))
        out_shape.append(jax.ShapeDtypeStruct((B, N, M), nl_map_dtype))

    scratch_shapes = [
        pltpu.VMEM((Cint, M), jnp.bfloat16),   # phi^T, resident per batch elem
        pltpu.VMEM((M, Cint), jnp.bfloat16),   # pooled g, resident per batch elem
    ]

    outs = pl.pallas_call(
        kern,
        grid=(B, num_tiles),
        in_specs=in_specs,
        out_specs=out_specs,
        out_shape=out_shape,
        scratch_shapes=scratch_shapes,
        compiler_params=pltpu.CompilerParams(
            dimension_semantics=("parallel", "arbitrary"),
            vmem_limit_bytes=48 * 1024 * 1024,
        ),
    )(x_tok, wth, bth, wpg, bpg, wfold, bfold)
    if with_map:
        return outs[0], outs[1]
    return outs[0], None


# ---------------------------------------------------------------------------
# Wrapper: full forward (PyTorch NCHW in / NCHW out).
# ---------------------------------------------------------------------------
def non_local_forward(x_nchw, p, return_nl_map=False, eps=1e-5, tn=None,
                      nl_map_dtype=jnp.float32):
    B, Cin, H, W = x_nchw.shape
    assert H % 2 == 0 and W % 2 == 0, "2x2 max-pool requires even H and W"
    Cint = p['theta_w'].shape[1]
    N = H * W
    M = (H // 2) * (W // 2)

    if tn is None:
        tn = 256 if N % 256 == 0 else N   # TODO(synk): use <=256-384 on v7x
    assert N % tn == 0 and (tn == N or tn % 8 == 0)

    # Host-side parameter folding (tiny arrays).  MXU operands go to bf16;
    # biases / affine offsets stay f32 and are added to the f32 accumulators.
    inv_m = 1.0 / M
    wth = (p['theta_w'] * inv_m).astype(jnp.bfloat16)               # (Cin, Cint)
    bth = p['theta_b'] * inv_m                                      # (1, Cint)
    wpg = jnp.concatenate([p['phi_w'], p['g_w']], axis=1).astype(jnp.bfloat16)
    bpg = jnp.concatenate([p['phi_b'], p['g_b']], axis=1)           # (1, 2*Cint)
    scale = p['bn_gamma'] * jax.lax.rsqrt(p['bn_var'] + eps)        # (1, Cin)
    wfold = (p['W_w'] * scale).astype(jnp.bfloat16)                 # (Cint, Cin)
    bfold = p['W_b'] * scale + p['bn_beta'] - p['bn_mean'] * scale  # (1, Cin)

    # Channels-last token layout (kept as XLA glue; see TODOs above).
    x_tok = jnp.transpose(x_nchw, (0, 2, 3, 1)).reshape(B, N, Cin)

    z_tok, nl_map = _fused_call(x_tok, wth, bth, wpg, bpg, wfold, bfold,
                                H=H, W=W, tn=tn, with_map=return_nl_map,
                                nl_map_dtype=nl_map_dtype)

    z = jnp.transpose(z_tok.reshape(B, H, W, Cin), (0, 3, 1, 2))
    if return_nl_map:
        return z, nl_map
    return z


# ---------------------------------------------------------------------------
# Pure-JAX reference (for correctness check).
# ---------------------------------------------------------------------------
def reference_forward(x_nchw, p, eps=1e-5):
    B, Cin, H, W = x_nchw.shape
    hp = jax.lax.Precision.HIGHEST
    xt = jnp.transpose(x_nchw, (0, 2, 3, 1))                      # (B,H,W,Cin)
    theta = jnp.einsum('bhwc,cd->bhwd', xt, p['theta_w'], precision=hp) + p['theta_b'][0]
    phi = jnp.einsum('bhwc,cd->bhwd', xt, p['phi_w'], precision=hp) + p['phi_b'][0]
    g = jnp.einsum('bhwc,cd->bhwd', xt, p['g_w'], precision=hp) + p['g_b'][0]

    def pool(t):
        Bq, Hq, Wq, C = t.shape
        return jnp.max(t.reshape(Bq, Hq // 2, 2, Wq // 2, 2, C), axis=(2, 4))

    Cint = theta.shape[-1]
    phi_s = pool(phi).reshape(B, -1, Cint)
    g_s = pool(g).reshape(B, -1, Cint)
    theta = theta.reshape(B, H * W, Cint)

    f = jnp.einsum('bnc,bmc->bnm', theta, phi_s, precision=hp)
    f_div_c = f / f.shape[-1]
    y = jnp.einsum('bnm,bmc->bnc', f_div_c, g_s, precision=hp)
    wy = jnp.einsum('bnc,cd->bnd', y, p['W_w'], precision=hp) + p['W_b'][0]
    bn = (p['bn_gamma'][0] * (wy - p['bn_mean'][0])
          * jax.lax.rsqrt(p['bn_var'][0] + eps) + p['bn_beta'][0])
    z = bn.reshape(B, H, W, Cin) + xt
    return jnp.transpose(z, (0, 3, 1, 2)), f_div_c


if __name__ == "__main__":
    B, Cin, H, W = 2, 4, 16, 16
    Cint = max(Cin // 2, 1)

    key = jax.random.PRNGKey(0)
    k = jax.random.split(key, 13)
    x = jax.random.normal(k[0], (B, Cin, H, W), jnp.float32)

    params = {
        'theta_w': 0.1 * jax.random.normal(k[1], (Cin, Cint), jnp.float32),
        'theta_b': 0.1 * jax.random.normal(k[2], (1, Cint), jnp.float32),
        'phi_w':   0.1 * jax.random.normal(k[3], (Cin, Cint), jnp.float32),
        'phi_b':   0.1 * jax.random.normal(k[4], (1, Cint), jnp.float32),
        'g_w':     0.1 * jax.random.normal(k[5], (Cin, Cint), jnp.float32),
        'g_b':     0.1 * jax.random.normal(k[6], (1, Cint), jnp.float32),
        'W_w':     0.1 * jax.random.normal(k[7], (Cint, Cin), jnp.float32),
        'W_b':     0.1 * jax.random.normal(k[8], (1, Cin), jnp.float32),
        # BatchNorm (inference mode) parameters; torch inits gamma=beta=0, but
        # use nonzero values so the full compute path is exercised.
        'bn_gamma': 1.0 + 0.1 * jax.random.normal(k[9], (1, Cin), jnp.float32),
        'bn_beta':  0.1 * jax.random.normal(k[10], (1, Cin), jnp.float32),
        'bn_mean':  0.1 * jax.random.normal(k[11], (1, Cin), jnp.float32),
        'bn_var':   1.0 + 0.1 * jnp.abs(jax.random.normal(k[12], (1, Cin), jnp.float32)),
    }

    # tn=128 -> grid=(B, 2): exercises both the j==0 pooled-scratch fill and
    # the j>0 reuse path on the toy N=256 problem.
    z_only = non_local_forward(x, params, return_nl_map=False, tn=128)
    jax.block_until_ready(z_only)

    z, nl_map = non_local_forward(x, params, return_nl_map=True, tn=128)
    jax.block_until_ready(z)
    jax.block_until_ready(nl_map)

    z_ref, nl_ref = reference_forward(x, params)
    assert z.shape == (B, Cin, H, W)
    assert z_only.shape == (B, Cin, H, W)
    assert nl_map.shape == (B, H * W, (H // 2) * (W // 2))
    assert jnp.allclose(z, z_ref, atol=1e-3, rtol=1e-3)
    assert jnp.allclose(z_only, z_ref, atol=1e-3, rtol=1e-3)
    assert jnp.allclose(nl_map, nl_ref, atol=1e-3, rtol=1e-3)

    print("KERNEL_OK")
</pallas_src>

<mosaic_0001>
module attributes {stable_mosaic.version = 11 : i64} {
  func.func @_fused_kernel(%arg0: i32, %arg1: i32, %arg2: memref<1x256x4xf32, #tpu.memory_space<vmem>>, %arg3: memref<4x2xbf16, #tpu.memory_space<vmem>>, %arg4: memref<1x2xf32, #tpu.memory_space<vmem>>, %arg5: memref<4x4xbf16, #tpu.memory_space<vmem>>, %arg6: memref<1x4xf32, #tpu.memory_space<vmem>>, %arg7: memref<2x4xbf16, #tpu.memory_space<vmem>>, %arg8: memref<1x4xf32, #tpu.memory_space<vmem>>, %arg9: memref<1x128x4xf32, #tpu.memory_space<vmem>>, %arg10: memref<2x64xbf16, #tpu.memory_space<vmem>>, %arg11: memref<64x2xbf16, #tpu.memory_space<vmem>>) attributes {dimension_semantics = [#tpu.dimension_semantics<parallel>, #tpu.dimension_semantics<arbitrary>], iteration_bounds = array<i64: 2, 2>, scalar_prefetch = 0 : i64, scratch_operands = 2 : i64, tpu.core_type = #tpu.core_type<tc>, window_params = [{transform_indices = @transform_0, window_bounds = array<i64: 1, 256, 4>}, {pipeline_mode = #tpu.pipeline_mode<synchronous>, transform_indices = @transform_1, window_bounds = array<i64: 4, 2>}, {pipeline_mode = #tpu.pipeline_mode<synchronous>, transform_indices = @transform_2, window_bounds = array<i64: 1, 2>}, {pipeline_mode = #tpu.pipeline_mode<synchronous>, transform_indices = @transform_3, window_bounds = array<i64: 4, 4>}, {pipeline_mode = #tpu.pipeline_mode<synchronous>, transform_indices = @transform_4, window_bounds = array<i64: 1, 4>}, {pipeline_mode = #tpu.pipeline_mode<synchronous>, transform_indices = @transform_5, window_bounds = array<i64: 2, 4>}, {pipeline_mode = #tpu.pipeline_mode<synchronous>, transform_indices = @transform_6, window_bounds = array<i64: 1, 4>}, {transform_indices = @transform_7, window_bounds = array<i64: 1, 128, 4>}]} {
    %c0_i32 = arith.constant 0 : i32
    %0 = arith.cmpi eq, %arg1, %c0_i32 : i32
    %1 = arith.extui %0 : i1 to i32
    %c0_i32_0 = arith.constant 0 : i32
    %2 = arith.cmpi ne, %1, %c0_i32_0 : i32
    scf.if %2 {
      %c0_20 = arith.constant 0 : index
      %c0_21 = arith.constant 0 : index
      %c0_22 = arith.constant 0 : index
      %30 = vector.load %arg2[%c0_20, %c0_21, %c0_22] : memref<1x256x4xf32, #tpu.memory_space<vmem>>, vector<1x256x4xf32>
      %31 = vector.shape_cast %30 : vector<1x256x4xf32> to vector<256x4xf32>
      %32 = arith.truncf %31 : vector<256x4xf32> to vector<256x4xbf16>
      %c0_23 = arith.constant 0 : index
      %c0_24 = arith.constant 0 : index
      %33 = vector.load %arg5[%c0_23, %c0_24] : memref<4x4xbf16, #tpu.memory_space<vmem>>, vector<4x4xbf16>
      %cst_25 = arith.constant dense<0.000000e+00> : vector<256x4xf32>
      %34 = tpu.matmul %32, %33, %cst_25 {dimension_numbers = #tpu.dot_dimension_numbers<[1], [0], [0], [1], [0, 0, 1, 1], [], []>} : vector<256x4xbf16>, vector<4x4xbf16>, vector<256x4xf32> -> vector<256x4xf32>
      %c0_26 = arith.constant 0 : index
      %c0_27 = arith.constant 0 : index
      %35 = vector.load %arg6[%c0_26, %c0_27] : memref<1x4xf32, #tpu.memory_space<vmem>>, vector<1x4xf32>
      %36 = vector.broadcast %35 : vector<1x4xf32> to vector<256x4xf32>
      %37 = arith.addf %34, %36 : vector<256x4xf32>
      %38 = vector.shape_cast %37 : vector<256x4xf32> to vector<8x2x8x2x4xf32>
      %cst_28 = arith.constant dense<0xFF800000> : vector<8x2x8x4xf32>
      %39 = vector.multi_reduction <maximumf>, %38, %cst_28 [3] : vector<8x2x8x2x4xf32> to vector<8x2x8x4xf32>
      %cst_29 = arith.constant dense<0xFF800000> : vector<8x8x4xf32>
      %40 = vector.multi_reduction <maximumf>, %39, %cst_29 [1] : vector<8x2x8x4xf32> to vector<8x8x4xf32>
      %41 = vector.shape_cast %40 : vector<8x8x4xf32> to vector<64x4xf32>
      %42 = vector.extract_strided_slice %41 {offsets = [0, 0], sizes = [64, 2], strides = [1, 1]} : vector<64x4xf32> to vector<64x2xf32>
      %43 = tpu.transpose %42, [1, 0] : vector<64x2xf32> -> vector<2x64xf32>
      %44 = arith.truncf %43 : vector<2x64xf32> to vector<2x64xbf16>
      %c0_30 = arith.constant 0 : index
      %c0_31 = arith.constant 0 : index
      %45 = vector.load %arg10[%c0_30, %c0_31] : memref<2x64xbf16, #tpu.memory_space<vmem>>, vector<2x64xbf16>
      tpu.vector_store %arg10[%c0_30, %c0_31], %44 {strides = array<i32>} : memref<2x64xbf16, #tpu.memory_space<vmem>>, vector<2x64xbf16>,
      %46 = vector.extract_strided_slice %41 {offsets = [0, 2], sizes = [64, 2], strides = [1, 1]} : vector<64x4xf32> to vector<64x2xf32>
      %47 = arith.truncf %46 : vector<64x2xf32> to vector<64x2xbf16>
      %c0_32 = arith.constant 0 : index
      %c0_33 = arith.constant 0 : index
      %48 = vector.load %arg11[%c0_32, %c0_33] : memref<64x2xbf16, #tpu.memory_space<vmem>>, vector<64x2xbf16>
      tpu.vector_store %arg11[%c0_32, %c0_33], %47 {strides = array<i32>} : memref<64x2xbf16, #tpu.memory_space<vmem>>, vector<64x2xbf16>,
    } else {
    }
    %c128_i32 = arith.constant 128 : i32
    %3 = arith.muli %arg1, %c128_i32 : i32
    %4 = tpu.assume_multiple %3, 128 : i32
    %c0 = arith.constant 0 : index
    %5 = arith.index_cast %4 : i32 to index
    %c0_1 = arith.constant 0 : index
    %6 = vector.load %arg2[%c0, %5, %c0_1] : memref<1x256x4xf32, #tpu.memory_space<vmem>>, vector<1x128x4xf32>
    %7 = vector.shape_cast %6 : vector<1x128x4xf32> to vector<128x4xf32>
    %8 = arith.truncf %7 : vector<128x4xf32> to vector<128x4xbf16>
    %c0_2 = arith.constant 0 : index
    %c0_3 = arith.constant 0 : index
    %9 = vector.load %arg3[%c0_2, %c0_3] : memref<4x2xbf16, #tpu.memory_space<vmem>>, vector<4x2xbf16>
    %cst = arith.constant dense<0.000000e+00> : vector<128x2xf32>
    %10 = tpu.matmul %8, %9, %cst {dimension_numbers = #tpu.dot_dimension_numbers<[1], [0], [0], [1], [0, 0, 1, 1], [], []>} : vector<128x4xbf16>, vector<4x2xbf16>, vector<128x2xf32> -> vector<128x2xf32>
    %c0_4 = arith.constant 0 : index
    %c0_5 = arith.constant 0 : index
    %11 = vector.load %arg4[%c0_4, %c0_5] : memref<1x2xf32, #tpu.memory_space<vmem>>, vector<1x2xf32>
    %12 = vector.broadcast %11 : vector<1x2xf32> to vector<128x2xf32>
    %13 = arith.addf %10, %12 : vector<128x2xf32>
    %14 = arith.truncf %13 : vector<128x2xf32> to vector<128x2xbf16>
    %c0_6 = arith.constant 0 : index
    %c0_7 = arith.constant 0 : index
    %15 = vector.load %arg10[%c0_6, %c0_7] : memref<2x64xbf16, #tpu.memory_space<vmem>>, vector<2x64xbf16>
    %cst_8 = arith.constant dense<0.000000e+00> : vector<128x64xf32>
    %16 = tpu.matmul %14, %15, %cst_8 {dimension_numbers = #tpu.dot_dimension_numbers<[1], [0], [0], [1], [0, 0, 1, 1], [], []>} : vector<128x2xbf16>, vector<2x64xbf16>, vector<128x64xf32> -> vector<128x64xf32>
    %17 = arith.truncf %16 : vector<128x64xf32> to vector<128x64xbf16>
    %c0_9 = arith.constant 0 : index
    %c0_10 = arith.constant 0 : index
    %18 = vector.load %arg11[%c0_9, %c0_10] : memref<64x2xbf16, #tpu.memory_space<vmem>>, vector<64x2xbf16>
    %cst_11 = arith.constant dense<0.000000e+00> : vector<128x2xf32>
    %19 = tpu.matmul %17, %18, %cst_11 {dimension_numbers = #tpu.dot_dimension_numbers<[1], [0], [0], [1], [0, 0, 1, 1], [], []>} : vector<128x64xbf16>, vector<64x2xbf16>, vector<128x2xf32> -> vector<128x2xf32>
    %20 = arith.truncf %19 : vector<128x2xf32> to vector<128x2xbf16>
    %c0_12 = arith.constant 0 : index
    %c0_13 = arith.constant 0 : index
    %21 = vector.load %arg7[%c0_12, %c0_13] : memref<2x4xbf16, #tpu.memory_space<vmem>>, vector<2x4xbf16>
    %cst_14 = arith.constant dense<0.000000e+00> : vector<128x4xf32>
    %22 = tpu.matmul %20, %21, %cst_14 {dimension_numbers = #tpu.dot_dimension_numbers<[1], [0], [0], [1], [0, 0, 1, 1], [], []>} : vector<128x2xbf16>, vector<2x4xbf16>, vector<128x4xf32> -> vector<128x4xf32>
    %c0_15 = arith.constant 0 : index
    %c0_16 = arith.constant 0 : index
    %23 = vector.load %arg8[%c0_15, %c0_16] : memref<1x4xf32, #tpu.memory_space<vmem>>, vector<1x4xf32>
    %24 = vector.broadcast %23 : vector<1x4xf32> to vector<128x4xf32>
    %25 = arith.addf %22, %24 : vector<128x4xf32>
    %26 = arith.addf %25, %7 : vector<128x4xf32>
    %c0_17 = arith.constant 0 : index
    %c0_18 = arith.constant 0 : index
    %c0_19 = arith.constant 0 : index
    %27 = vector.load %arg9[%c0_17, %c0_18, %c0_19] : memref<1x128x4xf32, #tpu.memory_space<vmem>>, vector<1x128x4xf32>
    %28 = vector.shape_cast %27 : vector<1x128x4xf32> to vector<128x4xf32>
    %29 = vector.shape_cast %26 : vector<128x4xf32> to vector<1x128x4xf32>
    tpu.vector_store %arg9[%c0_17, %c0_18, %c0_19], %29 {strides = array<i32>} : memref<1x128x4xf32, #tpu.memory_space<vmem>>, vector<1x128x4xf32>,
    return
  }
  func.func @transform_0(%arg0: i32, %arg1: i32) -> (i32, i32, i32) {
    %c0_i32 = arith.constant 0 : i32
    %c0_i32_0 = arith.constant 0 : i32
    %c0_i32_1 = arith.constant 0 : i32
    return %arg0, %c0_i32, %c0_i32_0 : i32, i32, i32
  }
  func.func @transform_1(%arg0: i32, %arg1: i32) -> (i32, i32) {
    %c0_i32 = arith.constant 0 : i32
    %c0_i32_0 = arith.constant 0 : i32
    %c0_i32_1 = arith.constant 0 : i32
    return %c0_i32, %c0_i32_0 : i32, i32
  }
  func.func @transform_2(%arg0: i32, %arg1: i32) -> (i32, i32) {
    %c0_i32 = arith.constant 0 : i32
    %c0_i32_0 = arith.constant 0 : i32
    %c0_i32_1 = arith.constant 0 : i32
    return %c0_i32, %c0_i32_0 : i32, i32
  }
  func.func @transform_3(%arg0: i32, %arg1: i32) -> (i32, i32) {
    %c0_i32 = arith.constant 0 : i32
    %c0_i32_0 = arith.constant 0 : i32
    %c0_i32_1 = arith.constant 0 : i32
    return %c0_i32, %c0_i32_0 : i32, i32
  }
  func.func @transform_4(%arg0: i32, %arg1: i32) -> (i32, i32) {
    %c0_i32 = arith.constant 0 : i32
    %c0_i32_0 = arith.constant 0 : i32
    %c0_i32_1 = arith.constant 0 : i32
    return %c0_i32, %c0_i32_0 : i32, i32
  }
  func.func @transform_5(%arg0: i32, %arg1: i32) -> (i32, i32) {
    %c0_i32 = arith.constant 0 : i32
    %c0_i32_0 = arith.constant 0 : i32
    %c0_i32_1 = arith.constant 0 : i32
    return %c0_i32, %c0_i32_0 : i32, i32
  }
  func.func @transform_6(%arg0: i32, %arg1: i32) -> (i32, i32) {
    %c0_i32 = arith.constant 0 : i32
    %c0_i32_0 = arith.constant 0 : i32
    %c0_i32_1 = arith.constant 0 : i32
    return %c0_i32, %c0_i32_0 : i32, i32
  }
  func.func @transform_7(%arg0: i32, %arg1: i32) -> (i32, i32, i32) {
    %c0_i32 = arith.constant 0 : i32
    %c0_i32_0 = arith.constant 0 : i32
    return %arg0, %arg1, %c0_i32 : i32, i32, i32
  }
}

</mosaic_0001>

<bundles_post_ra>
// kernel: tpu_custom_call.1
= control target key start
LH: loop header
LB: loop body
LE: loop exit
PB: predicated region body
PF: predicated region fallthrough
CT: control target
= control target key end

     0   :  { %s4176_s24 = smov 0   ;;  %s4178_s25 = smov 0   ;;  %s5657_s0 = inlined_call_operand.vmem [shape: f32[2,256,4], index: 0, kind: input, shape index: {}]   ;;  %s5658_s1 = inlined_call_operand.vmem [shape: bf16[4,2], index: 1, kind: input, shape index: {}]   ;;  %s5659_s2 = inlined_call_operand.vmem [shape: f32[1,2], index: 2, kind: input, shape index: {}]   ;;  %s5660_s3 = inlined_call_operand.vmem [shape: bf16[4,4], index: 3, kind: input, shape index: {}]   ;;  %s5661_s4 = inlined_call_operand.vmem [shape: f32[1,4], index: 4, kind: input, shape index: {}]   ;;  %s5662_s5 = inlined_call_operand.vmem [shape: bf16[2,4], index: 5, kind: input, shape index: {}]   ;;  %s5663_s6 = inlined_call_operand.vmem [shape: f32[1,4], index: 6, kind: input, shape index: {}]   ;;  %s5664_s7 = inlined_call_operand.vmem [shape: f32[2,256,4], index: 7, kind: output, shape index: {}]  }
   0x1   :  { %s4180_s26 = smov 0   ;;  %s4182_s27 = smov 0  }
   0x2   :  { %s4184_s28 = smov 0  }
   0x3 LB: > { %s26_s29 = sadd.s32 1, %s4124_s26  ;;  %s29_s30 = sadd.s32 1, %s4128_s27  ;;  %s4132_s28 = sphi %s4184_s28, %s17_s28   ;;  %s4128_s27 = sphi %s4182_s27, %s5845_s27   ;;  %s4124_s26 = sphi %s4180_s26, %s5844_s26   ;;  %s4120_s25 = sphi %s4178_s25, %s5843_s25   ;;  %s4116_s24 = sphi %s4176_s24, %s5842_s24  }
   0x4   : > { %p27_p0 = scmp.ge.s32.totalorder %s26_s29, 2  ;;  %p3676_p1 = scmp.ge.s32.totalorder %s4132_s28, 1 }
   0x5   : > { %p251_p2 = scmp.lt.s32.totalorder %s4132_s28, 5 }
   0x6   : > { %s5847_s29 = smov (%p27_p0, %s26_s29), 0  ;;  %s5849_s30 = smov (!%p27_p0, %s29_s30), %s4128_s27 }
   0x7   : > { %p252_p3 = pnand %p3676_p1, %p251_p2  ;;  %p31_p4 = scmp.ge.s32.totalorder %s5849_s30, 2 }
   0x8   : > { %p287_p5 = scmp.lt.s32.totalorder (!%p252_p3), %s4120_s25, 1  ;;  %s3679_s8 = sshll.u32 (!%p252_p3), %s4116_s24, 4 }
   0x9   : > { %s5851_s30 = smov (%p31_p4, %s5849_s30), 0  ;;  %255 = sbr.rel (%p252_p3) target bundleno = 1580 (0x62c), region = 48 }
   0xa   : > { %p295_p6 = scmp.lt.s32.totalorder (!%p252_p3), %s3679_s8, 31  ;;  %p3682_p7 = scmp.ne.s32.totalorder (!%p252_p3), %s4116_s24, 0 }
   0xe   : > { %s5853_s25 = smov (!%p287_p5, %s4120_s25), 1  ;;  %s5855_s8 = smov (!%p295_p6, %s3679_s8), 31 }
   0xf   : > { %s3805_s9 = sshll.u32 %s5853_s25, 8  ;;  %s3680_s10 = sshll.u32 %s5853_s25, 5 }
  0x10   : > { %s4212_s13 = scalar_lea.vmem %s5657_s0, %s3805_s9  ;;  %s298_s14 = sadd.s32 %s3680_s10, %s5855_s8 }
  0x11   : > { %s3681_s15 = sshll.u32 %s298_s14, 3  ;;  %306 = sbr.rel (%p3682_p7) target bundleno = 738 (0x2e2), region = 52 }
  0x12   : > { %s4217_s18 = scalar_lea.vmem %s5664_s7, %s3681_s15 }
  0x16   : > { %v355_v0 = vld [vmem:[%s5660_s3] sm:$0x3]  ;;  %vm412_vm0 = vcmask 1041408   ;;  %v308_v2 = vld [vmem:[%s4212_s13 + $0x8] sm:$0xff]  ;;  %vm363_vm1 = vcmask 31744   ;;  %v309_v7 = vld [vmem:[%s4212_s13 + $0x10] sm:$0xff]  ;;  %v613_v52 = vlaneseq }
  0x17   : > { %v307_v1 = vld [vmem:[%s4212_s13] sm:$0xff]  ;;  %4040 = vmatprep.subr.msk.bf16.mxu0 %vm412_vm0, %v355_v0  ;;  %4041 = vmatprep.subr.msk.bf16.mxu1 %vm412_vm0, %v355_v0  ;;  %v414_v3 = vsel %vm412_vm0, %v355_v0, 0  ;;  %v324_v6 = vld [vmem:[%s4212_s13 + $0x88] sm:$0xff]  ;;  %v310_v9 = vld [vmem:[%s4212_s13 + $0x18] sm:$0xff]  ;;  %v4134_v50 = vmov 1983009808  }
  0x18   : > { %v339_v4 = vpack.c.bf16 %v308_v2, %v307_v1  ;;  %v323_v5 = vld [vmem:[%s4212_s13 + $0x80] sm:$0xff]  ;;  %3927 = vmatpush3.bf16.msra.mxu0 %v414_v3  ;;  %4039 = vmatpush3.bf16.msra.mxu1 %v414_v3  ;;  %v325_v10 = vld [vmem:[%s4212_s13 + $0x90] sm:$0xff]  ;;  %v326_v11 = vld [vmem:[%s4212_s13 + $0x98] sm:$0xff]  ;;  %v340_v12 = vpack.c.bf16 %v310_v9, %v309_v7  ;;  %v611_v51 = vunpack.c.l.s4 %v4134_v50  ;;  %v614_v54 = vshrl.u32 %v613_v52, 7  ;;  %s4135_s8 = smov 126  }
  0x19   : > { %v347_v8 = vpack.c.bf16 %v324_v6, %v323_v5  ;;  %v348_v13 = vpack.c.bf16 %v326_v11, %v325_v10  ;;  %v311_v14 = vld [vmem:[%s4212_s13 + $0x20] sm:$0xff]  ;;  %v312_v15 = vld [vmem:[%s4212_s13 + $0x28] sm:$0xff]  ;;  %v313_v20 = vld [vmem:[%s4212_s13 + $0x30] sm:$0xff]  ;;  %vm1281_vm2 = vcmask 25600   ;;  %vm2434_vm3 = vcmask 1041409  }
  0x1a   : > { %3928 = vmatprep.mubr.msk.bf16.mxu0 %vm363_vm1, %v339_v4  ;;  %v327_v16 = vld [vmem:[%s4212_s13 + $0xa0] sm:$0xff]  ;;  %v341_v17 = vpack.c.bf16 %v312_v15, %v311_v14  ;;  %v328_v18 = vld [vmem:[%s4212_s13 + $0xa8] sm:$0xff]  ;;  %v314_v21 = vld [vmem:[%s4212_s13 + $0x38] sm:$0xff]  ;;  %v612_v53 = vunpack.c.0.s8 %v611_v51  ;;  %vm2436_vm4 = vcmask 1042434   ;;  %vm2438_vm5 = vcmask 1043459  }
  0x1b   : > { %3944 = vmatprep.mubr.msk.bf16.mxu1 %vm363_vm1, %v347_v8  ;;  %3929 = vmatmul.mubr.msk.bf16.vlgmr.msra.gmra.mxu0 %vm363_vm1, %v340_v12  ;;  %v349_v19 = vpack.c.bf16 %v328_v18, %v327_v16  ;;  %v329_v22 = vld [vmem:[%s4212_s13 + $0xb0] sm:$0xff]  ;;  %v330_v23 = vld [vmem:[%s4212_s13 + $0xb8] sm:$0xff]  ;;  %v331_v24 = vld [vmem:[%s4212_s13 + $0xc0] sm:$0xff]  ;;  %v342_v28 = vpack.c.bf16 %v314_v21, %v313_v20  ;;  %vm2440_vm6 = vcmask 1044484   ;;  %vm2442_vm7 = vcmask 1045509  }
  0x1c   : > { %3945 = vmatmul.mubr.msk.bf16.vlgmr.msra.gmra.mxu1 %vm363_vm1, %v348_v13  ;;  %3932 = vmatprep.mubr.msk.bf16.mxu0 %vm363_vm1, %v341_v17  ;;  %v332_v25 = vld [vmem:[%s4212_s13 + $0xc8] sm:$0xff]  ;;  %v315_v26 = vld [vmem:[%s4212_s13 + $0x40] sm:$0xff]  ;;  %v350_v29 = vpack.c.bf16 %v330_v23, %v329_v22  ;;  %v333_v32 = vld [vmem:[%s4212_s13 + $0xd0] sm:$0xff]  ;;  %v4276_v56 = vsub.s32 %v612_v53, %v614_v54  ;;  %vm2444_vm8 = vcmask 1046534   ;;  %vm2446_vm9 = vcmask 1047559  }
  0x1d   : > { %3948 = vmatprep.mubr.msk.bf16.mxu1 %vm363_vm1, %v349_v19  ;;  %v316_v27 = vld [vmem:[%s4212_s13 + $0x48] sm:$0xff]  ;;  %v351_v30 = vpack.c.bf16 %v332_v25, %v331_v24  ;;  %v334_v33 = vld [vmem:[%s4212_s13 + $0xd8] sm:$0xff]  ;;  %v317_v34 = vld [vmem:[%s4212_s13 + $0x50] sm:$0xff]  ;;  %vm2948_vm10 = vcmask 11264   ;;  %vm2538_vm11 = vcmask 516096  }
  0x1e   : > { %v343_v31 = vpack.c.bf16 %v316_v27, %v315_v26  ;;  %v318_v35 = vld [vmem:[%s4212_s13 + $0x58] sm:$0xff]  ;;  %v319_v36 = vld [vmem:[%s4212_s13 + $0x60] sm:$0xff]  ;;  %v320_v37 = vld [vmem:[%s4212_s13 + $0x68] sm:$0xff]  ;;  %v352_v40 = vpack.c.bf16 %v334_v33, %v333_v32 }
  0x1f   : > { %v335_v38 = vld [vmem:[%s4212_s13 + $0xe0] sm:$0xff]  ;;  %v336_v39 = vld [vmem:[%s4212_s13 + $0xe8] sm:$0xff]  ;;  %v344_v41 = vpack.c.bf16 %v318_v35, %v317_v34  ;;  %v345_v42 = vpack.c.bf16 %v320_v37, %v319_v36  ;;  %v321_v44 = vld [vmem:[%s4212_s13 + $0x70] sm:$0xff] }
  0x20   : > { %v353_v43 = vpack.c.bf16 %v336_v39, %v335_v38  ;;  %v322_v45 = vld [vmem:[%s4212_s13 + $0x78] sm:$0xff]  ;;  %v337_v46 = vld [vmem:[%s4212_s13 + $0xf0] sm:$0xff]  ;;  %v4274_v55 = vld [vmem:[%s5661_s4] ss:$0 sm:$0xff] }
  0x21   : > { %v338_v47 = vld [vmem:[%s4212_s13 + $0xf8] sm:$0xff]  ;;  %v346_v48 = vpack.c.bf16 %v322_v45, %v321_v44 }
  0x22   : > { %v354_v49 = vpack.c.bf16 %v338_v47, %v337_v46 }
  0x23   : > { %3933 = vmatmul.mubr.msk.bf16.gmra.mxu0 %vm363_vm1, %v342_v28 }
  0x24   : > { %3949 = vmatmul.mubr.msk.bf16.gmra.mxu1 %vm363_vm1, %v350_v29  ;;  %3936 = vmatprep.mubr.msk.bf16.mxu0 %vm363_vm1, %v343_v31 }
  0x25   : > { %3952 = vmatprep.mubr.msk.bf16.mxu1 %vm363_vm1, %v351_v30 }
  0x2b   : > { %3937 = vmatmul.mubr.msk.bf16.gmra.mxu0 %vm363_vm1, %v344_v41 }
  0x2c   : > { %3953 = vmatmul.mubr.msk.bf16.gmra.mxu1 %vm363_vm1, %v352_v40  ;;  %3940 = vmatprep.mubr.msk.bf16.mxu0 %vm363_vm1, %v345_v42 }
  0x2d   : > { %3956 = vmatprep.mubr.msk.bf16.mxu1 %vm363_vm1, %v353_v43 }
  0x33   : > { %3941 = vmatmul.mubr.msk.bf16.gmra.mxu0 %vm363_vm1, %v346_v48 }
  0x34   : > { %3957 = vmatmul.mubr.msk.bf16.gmra.mxu1 %vm363_vm1, %v354_v49 }
  0xdb   : > { %v3930_v57 = vpop.f32.mrf.mxu0 }
  0xdc   : > { %v3946_v58 = vpop.f32.mrf.mxu1  ;;  %v459_v59 = vadd.f32 %v3930_v57, %v4274_v55 }
  0xdd   : > { %v523_v60 = vadd.f32 %v3946_v58, %v4274_v55  ;;  %v450_v61 = vpop.f32.mrf.mxu0 }
  0xde   : > { %v514_v62 = vpop.f32.mrf.mxu1  ;;  %v643_v63 = vcombine.high %v459_v59, %v459_v59  ;;  %v650_v0 = vrot.slane %v459_v59, %v4276_v56  ;;  %v4283_v3 = vadd.f32 %v4274_v55, %v450_v61 }
  0xdf   : > { %v915_v1 = vcombine.high %v523_v60, %v523_v60  ;;  %v922_v2 = vrot.slane %v523_v60, %v4276_v56  ;;  %v4286_v4 = vadd.f32 %v4274_v55, %v514_v62 }
  0xe0   : > { %v657_v5 = vrot.slane %v643_v63, %v4276_v56  ;;  %v658_v6 = vcombine.high %v650_v0, %v650_v0  ;;  %v1338_v7 = vsel %vm1281_vm2, %v650_v0, -inf  ;;  %v609_v12 = vcombine.high %v4283_v3, %v4283_v3 }
  0xe1   : > { %v929_v8 = vrot.slane %v915_v1, %v4276_v56  ;;  %v1339_v9 = vrot.slane %v1338_v7, 4  ;;  %v930_v10 = vcombine.high %v922_v2, %v922_v2  ;;  %v1786_v11 = vsel %vm1281_vm2, %v922_v2, -inf }
  0xe2   : > { %v659_v13 = vcombine.high %v657_v5, %v657_v5  ;;  %v1345_v14 = vsel %vm1281_vm2, %v658_v6, -inf  ;;  %v1352_v15 = vsel %vm1281_vm2, %v657_v5, -inf  ;;  %v1787_v20 = vrot.slane %v1786_v11, 4 }
  0xe3   : > { %v931_v16 = vcombine.high %v929_v8, %v929_v8  ;;  %v1340_v17 = vmax.f32 %v1338_v7, %v1339_v9  ;;  %v1346_v18 = vrot.slane %v1345_v14, 4  ;;  %v1353_v19 = vrot.slane %v1352_v15, 4 }
  0xe4   : > { %v1359_v21 = vsel %vm1281_vm2, %v659_v13, -inf  ;;  %v1793_v22 = vsel %vm1281_vm2, %v930_v10, -inf  ;;  %v1800_v23 = vsel %vm1281_vm2, %v929_v8, -inf  ;;  %v1788_v29 = vmax.f32 %v1786_v11, %v1787_v20 }
  0xe5   : > { %v1807_v24 = vsel %vm1281_vm2, %v931_v16, -inf  ;;  %v1341_v25 = vrot.slane %v1340_v17, 2  ;;  %v1347_v26 = vmax.f32 %v1345_v14, %v1346_v18  ;;  %v1354_v27 = vmax.f32 %v1352_v15, %v1353_v19 }
  0xe6   : > { %v1360_v28 = vrot.slane %v1359_v21, 4  ;;  %v1794_v30 = vrot.slane %v1793_v22, 4  ;;  %v1801_v31 = vrot.slane %v1800_v23, 4  ;;  %v1808_v32 = vrot.slane %v1807_v24, 4 }
  0xe7   : > { %v1342_v33 = vmax.f32 %v1340_v17, %v1341_v25  ;;  %v1348_v34 = vrot.slane %v1347_v26, 2  ;;  %v1355_v35 = vrot.slane %v1354_v27, 2  ;;  %v1789_v37 = vrot.slane %v1788_v29, 2 }
  0xe8   : > { %v1361_v36 = vmax.f32 %v1359_v21, %v1360_v28  ;;  %v1795_v38 = vmax.f32 %v1793_v22, %v1794_v30  ;;  %v1802_v39 = vmax.f32 %v1800_v23, %v1801_v31  ;;  %v1809_v40 = vmax.f32 %v1807_v24, %v1808_v32  ;;  %v3931_v21 = vpop.f32.mrf.mxu0  ;;  %v3947_v22 = vpop.f32.mrf.mxu1 }
  0xe9   : > { %v1343_v41 = vrot.slane %v1342_v33, 1  ;;  %v1349_v42 = vmax.f32 %v1347_v26, %v1348_v34  ;;  %v1356_v43 = vmax.f32 %v1354_v27, %v1355_v35  ;;  %v1790_v45 = vmax.f32 %v1788_v29, %v1789_v37 }
  0xea   : > { %v1362_v44 = vrot.slane %v1361_v36, 2  ;;  %v1796_v46 = vrot.slane %v1795_v38, 2  ;;  %v1803_v47 = vrot.slane %v1802_v39, 2  ;;  %v1810_v48 = vrot.slane %v1809_v40, 2 }
  0xeb   : > { %v1344_v49 = vmax.f32 %v1342_v33, %v1343_v41  ;;  %v1350_v50 = vrot.slane %v1349_v42, 1  ;;  %v1357_v51 = vrot.slane %v1356_v43, 1  ;;  %v1791_v53 = vrot.slane %v1790_v45, 1 }
  0xec   : > { %v1363_v52 = vmax.f32 %v1361_v36, %v1362_v44  ;;  %v1797_v54 = vmax.f32 %v1795_v38, %v1796_v46  ;;  %v1804_v57 = vmax.f32 %v1802_v39, %v1803_v47  ;;  %v1811_v58 = vmax.f32 %v1809_v40, %v1810_v48 }
  0xed   : > { %v1351_v59 = vmax.f32 %v1349_v42, %v1350_v50  ;;  %v1358_v60 = vmax.f32 %v1356_v43, %v1357_v51  ;;  %v4301_v62 = vsel %vm363_vm1, %v1344_v49, -inf  ;;  %v1792_v63 = vmax.f32 %v1790_v45, %v1791_v53 }
  0xee   : > { %v1364_v61 = vrot.slane %v1363_v52, 1  ;;  %v1798_v0 = vrot.slane %v1797_v54, 1  ;;  %v1805_v1 = vrot.slane %v1804_v57, 1  ;;  %v1812_v2 = vrot.slane %v1811_v58, 1 }
  0xef   : > { %v4304_v6 = vsel %vm363_vm1, %v1351_v59, -inf  ;;  %v4307_v7 = vsel %vm363_vm1, %v1358_v60, -inf  ;;  %v616_v8 = vrot.slane %v4283_v3, %v4276_v56  ;;  %v4312_v13 = vsel %vm363_vm1, %v1792_v63, -inf }
  0xf0   : > { %v1365_v5 = vmax.f32 %v1363_v52, %v1364_v61  ;;  %v1799_v9 = vmax.f32 %v1797_v54, %v1798_v0  ;;  %v1806_v10 = vmax.f32 %v1804_v57, %v1805_v1  ;;  %v1813_v11 = vmax.f32 %v1811_v58, %v1812_v2 }
  0xf1   : > { %v623_v15 = vrot.slane %v609_v12, %v4276_v56  ;;  %v624_v16 = vcombine.high %v616_v8, %v616_v8  ;;  %v1282_v17 = vsel %vm1281_vm2, %v616_v8, -inf  ;;  %v881_v25 = vcombine.high %v4286_v4, %v4286_v4 }
  0xf2   : > { %v4315_v14 = vsel %vm363_vm1, %v1365_v5, -inf  ;;  %v4320_v18 = vsel %vm363_vm1, %v1799_v9, -inf  ;;  %v4323_v19 = vsel %vm363_vm1, %v1806_v10, -inf  ;;  %v4326_v3 = vsel %vm363_vm1, %v1813_v11, -inf }
  0xf3   : > { %v1283_v20 = vrot.slane %v1282_v17, 4  ;;  %v625_v23 = vcombine.high %v623_v15, %v623_v15  ;;  %v1289_v24 = vsel %vm1281_vm2, %v624_v16, -inf  ;;  %v1296_v12 = vsel %vm1281_vm2, %v623_v15, -inf }
  0xf4   : > { %v1290_v27 = vrot.slane %v1289_v24, 4  ;;  %v1297_v28 = vrot.slane %v1296_v12, 4  ;;  %v888_v29 = vrot.slane %v4286_v4, %v4276_v56  ;;  %v895_v31 = vrot.slane %v881_v25, %v4276_v56 }
  0xf5   : > { %v1284_v26 = vmax.f32 %v1282_v17, %v1283_v20  ;;  %v1303_v30 = vsel %vm1281_vm2, %v625_v23, -inf  ;;  %v4337_v32 = vadd.f32 %v3931_v21, %v4274_v55  ;;  %v4340_v33 = vadd.f32 %v3947_v22, %v4274_v55 }
  0xf6   : > { %v1291_v35 = vmax.f32 %v1289_v24, %v1290_v27  ;;  %v1298_v36 = vmax.f32 %v1296_v12, %v1297_v28  ;;  %v1304_v37 = vrot.slane %v1303_v30, 4  ;;  %v896_v38 = vcombine.high %v888_v29, %v888_v29 }
  0xf7   : > { %v1285_v34 = vrot.slane %v1284_v26, 2  ;;  %v897_v39 = vcombine.high %v895_v31, %v895_v31  ;;  %v1730_v40 = vsel %vm1281_vm2, %v888_v29, -inf  ;;  %v1744_v4 = vsel %vm1281_vm2, %v895_v31, -inf }
  0xf8   : > { %v1292_v42 = vrot.slane %v1291_v35, 2  ;;  %v1299_v43 = vrot.slane %v1298_v36, 2  ;;  %v1305_v44 = vmax.f32 %v1303_v30, %v1304_v37  ;;  %v1731_v45 = vrot.slane %v1730_v40, 4 }
  0xf9   : > { %v1286_v41 = vmax.f32 %v1284_v26, %v1285_v34  ;;  %v1737_v46 = vsel %vm1281_vm2, %v896_v38, -inf  ;;  %v1745_v47 = vrot.slane %v1744_v4, 4  ;;  %v1751_v48 = vsel %vm1281_vm2, %v897_v39, -inf }
  0xfa   : > { %v1293_v50 = vmax.f32 %v1291_v35, %v1292_v42  ;;  %v1300_v51 = vmax.f32 %v1298_v36, %v1299_v43  ;;  %v1306_v52 = vrot.slane %v1305_v44, 2  ;;  %v1732_v53 = vmax.f32 %v1730_v40, %v1731_v45 }
  0xfb   : > { %v1287_v49 = vrot.slane %v1286_v41, 1  ;;  %v1738_v54 = vrot.slane %v1737_v46, 4  ;;  %v1746_v57 = vmax.f32 %v1744_v4, %v1745_v47  ;;  %v1752_v58 = vrot.slane %v1751_v48, 4 }
  0xfc   : > { %v1294_v60 = vrot.slane %v1293_v50, 1  ;;  %v1301_v61 = vrot.slane %v1300_v51, 1  ;;  %v1307_v63 = vmax.f32 %v1305_v44, %v1306_v52  ;;  %v1733_v0 = vrot.slane %v1732_v53, 2 }
  0xfd   : > { %v1288_v59 = vmax.f32 %v1286_v41, %v1287_v49  ;;  %v1739_v1 = vmax.f32 %v1737_v46, %v1738_v54  ;;  %v1747_v2 = vrot.slane %v1746_v57, 2  ;;  %v1753_v5 = vmax.f32 %v1751_v48, %v1752_v58 }
  0xfe   : > { %v1295_v8 = vmax.f32 %v1293_v50, %v1294_v60  ;;  %v1302_v9 = vmax.f32 %v1300_v51, %v1301_v61  ;;  %v1308_v10 = vrot.slane %v1307_v63, 1  ;;  %v1734_v16 = vmax.f32 %v1732_v53, %v1733_v0 }
  0xff   : > { %v2178_v11 = vsel %vm363_vm1, %v1288_v59, -inf  ;;  %v1740_v17 = vrot.slane %v1739_v1, 2  ;;  %v1748_v20 = vmax.f32 %v1746_v57, %v1747_v2  ;;  %v1754_v24 = vrot.slane %v1753_v5, 2 }
 0x100   : > { %v4348_v15 = vmax.f32 %v2178_v11, %v4301_v62  ;;  %v1309_v21 = vmax.f32 %v1307_v63, %v1308_v10  ;;  %v2181_v22 = vsel %vm363_vm1, %v1295_v8, -inf  ;;  %v2184_v23 = vsel %vm363_vm1, %v1302_v9, -inf }
 0x101   : > { %v4353_v12 = vmax.f32 %v2181_v22, %v4304_v6  ;;  %v4356_v25 = vmax.f32 %v2184_v23, %v4307_v7  ;;  %v1735_v62 = vrot.slane %v1734_v16, 1  ;;  %v1741_v28 = vmax.f32 %v1739_v1, %v1740_v17 }
 0x102   : > { %5708 = vst [vmem:[#allocation4_spill] sm:$0xff] %v4348_v15  ;;  %v3806_v26 = vpack.c.bf16 %v4348_v15, %v4348_v15  ;;  %v2187_v27 = vsel %vm363_vm1, %v1309_v21, -inf  ;;  %v1749_v29 = vrot.slane %v1748_v20, 1  ;;  %v1755_v30 = vmax.f32 %v1753_v5, %v1754_v24 }
 0x103   : > { %5709 = vst [vmem:[#allocation5_spill] sm:$0xff] %v4353_v12  ;;  %5710 = vst [vmem:[#allocation6_spill] sm:$0xff] %v4356_v25  ;;  %v4362_v31 = vmax.f32 %v2187_v27, %v4315_v14  ;;  %v3807_v34 = vpack.c.bf16 %v4353_v12, %v4353_v12  ;;  %v3808_v6 = vpack.c.bf16 %v4356_v25, %v4356_v25  ;;  %v1742_v36 = vrot.slane %v1741_v28, 1 }
 0x104   : > { %v4368_v7 = vunpack.c.l.b16 %v3806_v26  ;;  %v1736_v35 = vmax.f32 %v1734_v16, %v1735_v62  ;;  %v1750_v37 = vmax.f32 %v1748_v20, %v1749_v29  ;;  %v1756_v38 = vrot.slane %v1755_v30, 1 }
 0x105   : > { %5711 = vst [vmem:[#allocation7_spill] sm:$0xff] %v4362_v31  ;;  %v4370_v39 = vunpack.c.l.b16 %v3807_v34  ;;  %v4372_v40 = vunpack.c.l.b16 %v3808_v6  ;;  %v660_v14 = vcombine.high %v4337_v32, %v4337_v32  ;;  %v667_v4 = vrot.slane %v4337_v32, %v4276_v56  ;;  %v453_v6 = vpop.f32.mrf.mxu0 }
 0x106   : > { %v1743_v41 = vmax.f32 %v1741_v28, %v1742_v36  ;;  %v1757_v42 = vmax.f32 %v1755_v30, %v1756_v38  ;;  %v2274_v43 = vsel %vm363_vm1, %v1736_v35, -inf  ;;  %v2280_v44 = vsel %vm363_vm1, %v1750_v37, -inf }
 0x107   : > { %v4381_v45 = vmax.f32 %v2274_v43, %v4312_v13  ;;  %v4384_v46 = vmax.f32 %v2280_v44, %v4323_v19  ;;  %v674_v47 = vrot.slane %v660_v14, %v4276_v56  ;;  %v675_v48 = vcombine.high %v667_v4, %v667_v4 }
 0x108   : > { %v2277_v49 = vsel %vm363_vm1, %v1743_v41, -inf  ;;  %v2283_v50 = vsel %vm363_vm1, %v1757_v42, -inf  ;;  %v1366_v32 = vsel %vm1281_vm2, %v667_v4, -inf  ;;  %v932_v51 = vcombine.high %v4340_v33, %v4340_v33 }
 0x109   : > { %5712 = vst [vmem:[#allocation8_spill] sm:$0xff] %v4381_v45  ;;  %5713 = vst [vmem:[#allocation9_spill] sm:$0xff] %v4384_v46  ;;  %v4393_v52 = vmax.f32 %v2277_v49, %v4320_v18  ;;  %v4396_v13 = vmax.f32 %v2283_v50, %v4326_v3  ;;  %v3838_v19 = vpack.c.bf16 %v4381_v45, %v4381_v45  ;;  %v1367_v57 = vrot.slane %v1366_v32, 4 }
 0x10a   : > { %v3840_v53 = vpack.c.bf16 %v4384_v46, %v4384_v46  ;;  %v676_v54 = vcombine.high %v674_v47, %v674_v47  ;;  %v1373_v58 = vsel %vm1281_vm2, %v675_v48, -inf  ;;  %v1380_v59 = vsel %vm1281_vm2, %v674_v47, -inf }
 0x10b   : > { %5714 = vst [vmem:[#allocation10_spill] sm:$0xff] %v4393_v52  ;;  %5715 = vst [vmem:[#allocation11_spill] sm:$0xff] %v4396_v13  ;;  %v3839_v60 = vpack.c.bf16 %v4393_v52, %v4393_v52  ;;  %v4406_v18 = vunpack.c.l.b16 %v3838_v19  ;;  %v1374_v3 = vrot.slane %v1373_v58, 4  ;;  %v1368_v63 = vmax.f32 %v1366_v32, %v1367_v57  ;;  %v517_v19 = vpop.f32.mrf.mxu1 }
 0x10c   : > { %v4408_v61 = vunpack.c.l.b16 %v3840_v53  ;;  %v1381_v0 = vrot.slane %v1380_v59, 4  ;;  %v1387_v1 = vsel %vm1281_vm2, %v676_v54, -inf  ;;  %v939_v2 = vrot.slane %v4340_v33, %v4276_v56  ;;  %v3934_v53 = vpop.f32.mrf.mxu0 }
 0x10d   : > { %v4413_v5 = vunpack.c.l.b16 %v3839_v60  ;;  %v1375_v8 = vmax.f32 %v1373_v58, %v1374_v3  ;;  %v1388_v9 = vrot.slane %v1387_v1, 4  ;;  %v946_v10 = vrot.slane %v932_v51, %v4276_v56 }
 0x10e   : > { %v1369_v11 = vrot.slane %v1368_v63, 2  ;;  %v1382_v16 = vmax.f32 %v1380_v59, %v1381_v0  ;;  %v947_v17 = vcombine.high %v939_v2, %v939_v2  ;;  %v1814_v20 = vsel %vm1281_vm2, %v939_v2, -inf }
 0x10f   : > { %v1376_v21 = vrot.slane %v1375_v8, 2  ;;  %v1389_v22 = vmax.f32 %v1387_v1, %v1388_v9  ;;  %v948_v23 = vcombine.high %v946_v10, %v946_v10  ;;  %v1815_v24 = vrot.slane %v1814_v20, 4 }
 0x110   : > { %v1370_v26 = vmax.f32 %v1368_v63, %v1369_v11  ;;  %v1383_v62 = vrot.slane %v1382_v16, 2  ;;  %v1821_v27 = vsel %vm1281_vm2, %v947_v17, -inf  ;;  %v1828_v33 = vsel %vm1281_vm2, %v946_v10, -inf }
 0x111   : > { %v1377_v28 = vmax.f32 %v1375_v8, %v1376_v21  ;;  %v1390_v29 = vrot.slane %v1389_v22, 2  ;;  %v1816_v30 = vmax.f32 %v1814_v20, %v1815_v24  ;;  %v1822_v34 = vrot.slane %v1821_v27, 4 }
 0x112   : > { %v1371_v35 = vrot.slane %v1370_v26, 1  ;;  %v1384_v36 = vmax.f32 %v1382_v16, %v1383_v62  ;;  %v1829_v37 = vrot.slane %v1828_v33, 4  ;;  %v1835_v38 = vsel %vm1281_vm2, %v948_v23, -inf }
 0x113   : > { %v1378_v14 = vrot.slane %v1377_v28, 1  ;;  %v4420_v4 = vmax.f32 %v1389_v22, %v1390_v29  ;;  %v1817_v41 = vrot.slane %v1816_v30, 2  ;;  %v1823_v42 = vmax.f32 %v1821_v27, %v1822_v34 }
 0x114   : > { %v1372_v43 = vmax.f32 %v1370_v26, %v1371_v35  ;;  %v1385_v44 = vrot.slane %v1384_v36, 1  ;;  %v1830_v47 = vmax.f32 %v1828_v33, %v1829_v37  ;;  %v1836_v48 = vrot.slane %v1835_v38, 4 }
 0x115   : > { %v1379_v49 = vmax.f32 %v1377_v28, %v1378_v14  ;;  %v1818_v32 = vmax.f32 %v1816_v30, %v1817_v41  ;;  %v1824_v51 = vrot.slane %v1823_v42, 2  ;;  %v454_v0 = vadd.f32 %v4274_v55, %v453_v6 }
 0x116   : > { %v4423_v54 = vmax.f32 %v1384_v36, %v1385_v44  ;;  %v4426_v57 = vsel %vm363_vm1, %v1372_v43, -inf  ;;  %v1831_v58 = vrot.slane %v1830_v47, 2  ;;  %v1837_v59 = vmax.f32 %v1835_v38, %v1836_v48 }
 0x117   : > { %v4429_v60 = vsel %vm363_vm1, %v1379_v49, -inf  ;;  %v1819_v3 = vrot.slane %v1818_v32, 1  ;;  %v1825_v63 = vmax.f32 %v1823_v42, %v1824_v51  ;;  %v518_v8 = vadd.f32 %v4274_v55, %v517_v19 }
 0x118   : > { %v1832_v1 = vmax.f32 %v1830_v47, %v1831_v58  ;;  %v1838_v2 = vrot.slane %v1837_v59, 2  ;;  %v4434_v9 = vadd.f32 %v3934_v53, %v4274_v55  ;;  %v626_v16 = vcombine.high %v454_v0, %v454_v0 }
 0x119   : > { %v1820_v10 = vmax.f32 %v1818_v32, %v1819_v3  ;;  %v1826_v11 = vrot.slane %v1825_v63, 1  ;;  %v633_v17 = vrot.slane %v454_v0, %v4276_v56  ;;  %v898_v22 = vcombine.high %v518_v8, %v518_v8 }
 0x11a   : > { %v1833_v20 = vrot.slane %v1832_v1, 1  ;;  %v1839_v21 = vmax.f32 %v1837_v59, %v1838_v2  ;;  %v905_v23 = vrot.slane %v518_v8, %v4276_v56  ;;  %v640_v62 = vrot.slane %v626_v16, %v4276_v56 }
 0x11b   : > { %v1827_v24 = vmax.f32 %v1825_v63, %v1826_v11  ;;  %v4439_v26 = vsel %vm363_vm1, %v1820_v10, -inf  ;;  %v641_v27 = vcombine.high %v633_v17, %v633_v17  ;;  %v1310_v29 = vsel %vm1281_vm2, %v633_v17, -inf }
 0x11c   : > { %v1834_v33 = vmax.f32 %v1832_v1, %v1833_v20  ;;  %v1840_v28 = vrot.slane %v1839_v21, 1  ;;  %v912_v30 = vrot.slane %v898_v22, %v4276_v56  ;;  %v642_v6 = vcombine.high %v640_v62, %v640_v62 }
 0x11d   : > { %v4445_v34 = vsel %vm363_vm1, %v1827_v24, -inf  ;;  %v1311_v35 = vrot.slane %v1310_v29, 4  ;;  %v1317_v36 = vsel %vm1281_vm2, %v641_v27, -inf  ;;  %v1324_v41 = vsel %vm1281_vm2, %v640_v62, -inf }
 0x11e   : > { %v4448_v37 = vmax.f32 %v1839_v21, %v1840_v28  ;;  %v4451_v38 = vsel %vm363_vm1, %v1834_v33, -inf  ;;  %v1318_v14 = vrot.slane %v1317_v36, 4  ;;  %v1325_v43 = vrot.slane %v1324_v41, 4 }
 0x11f   : > { %v1312_v42 = vmax.f32 %v1310_v29, %v1311_v35  ;;  %v1331_v44 = vsel %vm1281_vm2, %v642_v6, -inf  ;;  %v913_v47 = vcombine.high %v905_v23, %v905_v23  ;;  %v914_v32 = vcombine.high %v912_v30, %v912_v30 }
 0x120   : > { %v1319_v48 = vmax.f32 %v1317_v36, %v1318_v14  ;;  %v1332_v49 = vrot.slane %v1331_v44, 4  ;;  %v1758_v51 = vsel %vm1281_vm2, %v905_v23, -inf  ;;  %v1326_v53 = vmax.f32 %v1324_v41, %v1325_v43 }
 0x121   : > { %v1313_v19 = vrot.slane %v1312_v42, 2  ;;  %v1759_v58 = vrot.slane %v1758_v51, 4  ;;  %v1765_v59 = vsel %vm1281_vm2, %v913_v47, -inf  ;;  %v1772_v1 = vsel %vm1281_vm2, %v912_v30, -inf }
 0x122   : > { %v1320_v3 = vrot.slane %v1319_v48, 2  ;;  %v1333_v63 = vmax.f32 %v1331_v44, %v1332_v49  ;;  %v1766_v0 = vrot.slane %v1765_v59, 4  ;;  %v1327_v8 = vrot.slane %v1326_v53, 2 }
 0x123   : > { %v1314_v2 = vmax.f32 %v1312_v42, %v1313_v19  ;;  %v1760_v10 = vmax.f32 %v1758_v51, %v1759_v58  ;;  %v1773_v11 = vrot.slane %v1772_v1, 4  ;;  %v1779_v21 = vsel %vm1281_vm2, %v914_v32, -inf  ;;  %v3950_v32 = vpop.f32.mrf.mxu1  ;;  %v466_v51 = vpop.f32.mrf.mxu0 }
 0x124   : > { %v1321_v16 = vmax.f32 %v1319_v48, %v1320_v3  ;;  %v1334_v17 = vrot.slane %v1333_v63, 2  ;;  %v1767_v20 = vmax.f32 %v1765_v59, %v1766_v0  ;;  %v1328_v23 = vmax.f32 %v1326_v53, %v1327_v8 }
 0x125   : > { %v1315_v22 = vrot.slane %v1314_v2, 1  ;;  %v1761_v24 = vrot.slane %v1760_v10, 2  ;;  %v1774_v62 = vmax.f32 %v1772_v1, %v1773_v11  ;;  %v1780_v29 = vrot.slane %v1779_v21, 4 }
 0x126   : > { %v1322_v27 = vrot.slane %v1321_v16, 1  ;;  %v4459_v33 = vmax.f32 %v1333_v63, %v1334_v17  ;;  %v1768_v28 = vrot.slane %v1767_v20, 2  ;;  %v1329_v30 = vrot.slane %v1328_v23, 1 }
 0x127   : > { %v1316_v6 = vmax.f32 %v1314_v2, %v1315_v22  ;;  %v1762_v35 = vmax.f32 %v1760_v10, %v1761_v24  ;;  %v1775_v36 = vrot.slane %v1774_v62, 2  ;;  %v1781_v43 = vmax.f32 %v1779_v21, %v1780_v29 }
 0x128   : > { %v1323_v14 = vmax.f32 %v1321_v16, %v1322_v27  ;;  %v1769_v42 = vmax.f32 %v1767_v20, %v1768_v28  ;;  %v4462_v44 = vmax.f32 %v1328_v23, %v1329_v30  ;;  %v711_v0 = vcombine.high %v4434_v9, %v4434_v9 }
 0x129   : > { %v2190_v47 = vsel %vm363_vm1, %v1316_v6, -inf  ;;  %v1763_v48 = vrot.slane %v1762_v35, 1  ;;  %v1776_v49 = vmax.f32 %v1774_v62, %v1775_v36  ;;  %v1782_v59 = vrot.slane %v1781_v43, 2 }
 0x12a   : > { %v4466_v19 = vmax.f32 %v2190_v47, %v4426_v57  ;;  %v4469_v53 = vsel %vm363_vm1, %v1323_v14, -inf  ;;  %v1770_v58 = vrot.slane %v1769_v42, 1  ;;  %v718_v1 = vrot.slane %v4434_v9, %v4276_v56 }
 0x12b   : > { %v1764_v3 = vmax.f32 %v1762_v35, %v1763_v48  ;;  %v1777_v63 = vrot.slane %v1776_v49, 1  ;;  %v1783_v8 = vmax.f32 %v1781_v43, %v1782_v59  ;;  %v539_v10 = vadd.f32 %v3950_v32, %v4274_v55 }
 0x12c   : > { %5716 = vst [vmem:[#allocation12_spill] sm:$0xff] %v4466_v19  ;;  %v1771_v2 = vmax.f32 %v1769_v42, %v1770_v58  ;;  %v4477_v57 = vadd.f32 %v4274_v55, %v466_v51  ;;  %v725_v17 = vrot.slane %v711_v0, %v4276_v56  ;;  %v726_v20 = vcombine.high %v718_v1, %v718_v1 }
 0x12d   : > { %v1778_v11 = vmax.f32 %v1776_v49, %v1777_v63  ;;  %v2286_v16 = vsel %vm363_vm1, %v1764_v3, -inf  ;;  %v1784_v21 = vrot.slane %v1783_v8, 1  ;;  %v1450_v9 = vsel %vm1281_vm2, %v718_v1, -inf }
 0x12e   : > { %v4482_v22 = vmax.f32 %v2286_v16, %v4439_v26  ;;  %v2289_v23 = vsel %vm363_vm1, %v1771_v2, -inf  ;;  %v727_v27 = vcombine.high %v725_v17, %v725_v17  ;;  %v1451_v28 = vrot.slane %v1450_v9, 4 }
 0x12f   : > { %v4487_v24 = vmax.f32 %v2289_v23, %v4445_v34  ;;  %v4490_v62 = vsel %vm363_vm1, %v1778_v11, -inf  ;;  %v4492_v29 = vmax.f32 %v1783_v8, %v1784_v21  ;;  %v1457_v26 = vsel %vm1281_vm2, %v726_v20, -inf }
 0x130   : > { %5717 = vst [vmem:[#allocation13_spill] sm:$0xff] %v4482_v22  ;;  %v3842_v6 = vpack.c.bf16 %v4482_v22, %v4482_v22  ;;  %v1464_v30 = vsel %vm1281_vm2, %v725_v17, -inf  ;;  %v1452_v35 = vmax.f32 %v1450_v9, %v1451_v28  ;;  %v1458_v36 = vrot.slane %v1457_v26, 4 }
 0x131   : > { %5718 = vst [vmem:[#allocation14_spill] sm:$0xff] %v4487_v24  ;;  %v1465_v14 = vrot.slane %v1464_v30, 4  ;;  %v1471_v34 = vsel %vm1281_vm2, %v727_v27, -inf  ;;  %v983_v47 = vcombine.high %v539_v10, %v539_v10  ;;  %v990_v48 = vrot.slane %v539_v10, %v4276_v56 }
 0x132   : > { %v4499_v42 = vunpack.c.l.b16 %v3842_v6  ;;  %v1472_v43 = vrot.slane %v1471_v34, 4  ;;  %v1453_v49 = vrot.slane %v1452_v35, 2  ;;  %v1459_v32 = vmax.f32 %v1457_v26, %v1458_v36 }
 0x133   : > { %v1466_v51 = vmax.f32 %v1464_v30, %v1465_v14  ;;  %v677_v58 = vcombine.high %v4477_v57, %v4477_v57  ;;  %v997_v3 = vrot.slane %v983_v47, %v4276_v56  ;;  %v998_v63 = vcombine.high %v990_v48, %v990_v48 }
 0x134   : > { %v1473_v59 = vmax.f32 %v1471_v34, %v1472_v43  ;;  %v1898_v0 = vsel %vm1281_vm2, %v990_v48, -inf  ;;  %v1454_v1 = vmax.f32 %v1452_v35, %v1453_v49  ;;  %v1460_v2 = vrot.slane %v1459_v32, 2 }
 0x135   : > { %v1467_v8 = vrot.slane %v1466_v51, 2  ;;  %v1899_v11 = vrot.slane %v1898_v0, 4  ;;  %v999_v17 = vcombine.high %v997_v3, %v997_v3  ;;  %v1905_v10 = vsel %vm1281_vm2, %v998_v63, -inf }
 0x136   : > { %v1474_v16 = vrot.slane %v1473_v59, 2  ;;  %v1912_v20 = vsel %vm1281_vm2, %v997_v3, -inf  ;;  %v1455_v21 = vrot.slane %v1454_v1, 1  ;;  %v1461_v23 = vmax.f32 %v1459_v32, %v1460_v2 }
 0x137   : > { %v1468_v9 = vmax.f32 %v1466_v51, %v1467_v8  ;;  %v1900_v27 = vmax.f32 %v1898_v0, %v1899_v11  ;;  %v1906_v6 = vrot.slane %v1905_v10, 4  ;;  %v1913_v26 = vrot.slane %v1912_v20, 4 }
 0x138   : > { %v1475_v28 = vmax.f32 %v1473_v59, %v1474_v16  ;;  %v1919_v30 = vsel %vm1281_vm2, %v999_v17, -inf  ;;  %v1456_v36 = vmax.f32 %v1454_v1, %v1455_v21  ;;  %v1462_v35 = vrot.slane %v1461_v23, 1 }
 0x139   : > { %v1469_v14 = vrot.slane %v1468_v9, 1  ;;  %v1901_v34 = vrot.slane %v1900_v27, 2  ;;  %v1907_v47 = vmax.f32 %v1905_v10, %v1906_v6  ;;  %v1914_v48 = vmax.f32 %v1912_v20, %v1913_v26 }
 0x13a   : > { %v1476_v43 = vrot.slane %v1475_v28, 1  ;;  %v1920_v49 = vrot.slane %v1919_v30, 4  ;;  %v1463_v63 = vmax.f32 %v1461_v23, %v1462_v35  ;;  %v4510_v3 = vsel %vm363_vm1, %v1456_v36, -inf  ;;  %v530_v36 = vpop.f32.mrf.mxu1 }
 0x13b   : > { %v1470_v50 = vmax.f32 %v1468_v9, %v1469_v14  ;;  %v1902_v32 = vmax.f32 %v1900_v27, %v1901_v34  ;;  %v1908_v59 = vrot.slane %v1907_v47, 2  ;;  %v1915_v0 = vrot.slane %v1914_v48, 2 }
 0x13c   : > { %v1477_v51 = vmax.f32 %v1475_v28, %v1476_v43  ;;  %v1921_v2 = vmax.f32 %v1919_v30, %v1920_v49  ;;  %v4513_v8 = vsel %vm363_vm1, %v1463_v63, -inf  ;;  %v684_v16 = vrot.slane %v4477_v57, %v4276_v56 }
 0x13d   : > { %v4516_v1 = vsel %vm363_vm1, %v1470_v50, -inf  ;;  %v1903_v11 = vrot.slane %v1902_v32, 1  ;;  %v1909_v10 = vmax.f32 %v1907_v47, %v1908_v59  ;;  %v1916_v20 = vmax.f32 %v1914_v48, %v1915_v0  ;;  %v3935_v59 = vpop.f32.mrf.mxu0 }
 0x13e   : > { %v4521_v17 = vsel %vm363_vm1, %v1477_v51, -inf  ;;  %v1922_v21 = vrot.slane %v1921_v2, 2  ;;  %v691_v9 = vrot.slane %v677_v58, %v4276_v56  ;;  %v692_v27 = vcombine.high %v684_v16, %v684_v16 }
 0x13f   : > { %v1904_v23 = vmax.f32 %v1902_v32, %v1903_v11  ;;  %v1394_v28 = vsel %vm1281_vm2, %v684_v16, -inf  ;;  %v1910_v6 = vrot.slane %v1909_v10, 1  ;;  %v1917_v26 = vrot.slane %v1916_v20, 1 }
 0x140   : > { %v1923_v50 = vmax.f32 %v1921_v2, %v1922_v21  ;;  %v1395_v30 = vrot.slane %v1394_v28, 4  ;;  %v693_v57 = vcombine.high %v691_v9, %v691_v9  ;;  %v1401_v14 = vsel %vm1281_vm2, %v692_v27, -inf }
 0x141   : > { %v4526_v35 = vsel %vm363_vm1, %v1904_v23, -inf  ;;  %v1408_v34 = vsel %vm1281_vm2, %v691_v9, -inf  ;;  %v1911_v43 = vmax.f32 %v1909_v10, %v1910_v6  ;;  %v1918_v47 = vmax.f32 %v1916_v20, %v1917_v26 }
 0x142   : > { %v1924_v48 = vrot.slane %v1923_v50, 1  ;;  %v1396_v58 = vmax.f32 %v1394_v28, %v1395_v30  ;;  %v1402_v49 = vrot.slane %v1401_v14, 4  ;;  %v1409_v63 = vrot.slane %v1408_v34, 4 }
 0x143   : > { %v1415_v32 = vsel %vm1281_vm2, %v693_v57, -inf  ;;  %v531_v51 = vadd.f32 %v4274_v55, %v530_v36  ;;  %v4533_v2 = vsel %vm363_vm1, %v1911_v43, -inf  ;;  %v4536_v11 = vsel %vm363_vm1, %v1918_v47, -inf }
 0x144   : > { %v1925_v0 = vmax.f32 %v1923_v50, %v1924_v48  ;;  %v1397_v16 = vrot.slane %v1396_v58, 2  ;;  %v1403_v21 = vmax.f32 %v1401_v14, %v1402_v49  ;;  %v1410_v10 = vmax.f32 %v1408_v34, %v1409_v63 }
 0x145   : > { %v1416_v20 = vrot.slane %v1415_v32, 4  ;;  %v949_v23 = vcombine.high %v531_v51, %v531_v51  ;;  %v956_v28 = vrot.slane %v531_v51, %v4276_v56  ;;  %v478_v6 = vadd.f32 %v3935_v59, %v4274_v55 }
 0x146   : > { %v4539_v9 = vsel %vm363_vm1, %v1925_v0, -inf  ;;  %v1398_v27 = vmax.f32 %v1396_v58, %v1397_v16  ;;  %v1404_v26 = vrot.slane %v1403_v21, 2  ;;  %v1411_v50 = vrot.slane %v1410_v10, 2 }
 0x147   : > { %v1417_v30 = vmax.f32 %v1415_v32, %v1416_v20  ;;  %v963_v36 = vrot.slane %v949_v23, %v4276_v56  ;;  %v964_v43 = vcombine.high %v956_v28, %v956_v28  ;;  %v1842_v14 = vsel %vm1281_vm2, %v956_v28, -inf }
 0x148   : > { %v1399_v57 = vrot.slane %v1398_v27, 1  ;;  %v728_v34 = vcombine.high %v478_v6, %v478_v6  ;;  %v1405_v47 = vmax.f32 %v1403_v21, %v1404_v26  ;;  %v1412_v48 = vmax.f32 %v1410_v10, %v1411_v50 }
 0x149   : > { %v1418_v49 = vrot.slane %v1417_v30, 2  ;;  %v965_v63 = vcombine.high %v963_v36, %v963_v36  ;;  %v1843_v58 = vrot.slane %v1842_v14, 4  ;;  %v1849_v51 = vsel %vm1281_vm2, %v964_v43, -inf }
 0x14a   : > { %v1400_v0 = vmax.f32 %v1398_v27, %v1399_v57  ;;  %v1856_v55 = vsel %vm1281_vm2, %v963_v36, -inf  ;;  %v1406_v59 = vrot.slane %v1405_v47, 1  ;;  %v1413_v16 = vrot.slane %v1412_v48, 1 }
 0x14b   : > { %v1419_v32 = vmax.f32 %v1417_v30, %v1418_v49  ;;  %v1850_v20 = vrot.slane %v1849_v51, 4  ;;  %v1844_v41 = vmax.f32 %v1842_v14, %v1843_v58  ;;  %v1857_v22 = vrot.slane %v1856_v55, 4 }
 0x14c   : > { %v2202_v23 = vsel %vm363_vm1, %v1400_v0, -inf  ;;  %v1863_v28 = vsel %vm1281_vm2, %v965_v63, -inf  ;;  %v1407_v21 = vmax.f32 %v1405_v47, %v1406_v59  ;;  %v1414_v10 = vmax.f32 %v1412_v48, %v1413_v16 }
 0x14d   : > { %v1420_v26 = vrot.slane %v1419_v32, 1  ;;  %v4550_v27 = vmax.f32 %v2202_v23, %v4510_v3  ;;  %v1845_v50 = vrot.slane %v1844_v41, 2  ;;  %v1851_v57 = vmax.f32 %v1849_v51, %v1850_v20 }
 0x14e   : > { %v1858_v43 = vmax.f32 %v1856_v55, %v1857_v22  ;;  %v1864_v36 = vrot.slane %v1863_v28, 4  ;;  %v2205_v30 = vsel %vm363_vm1, %v1407_v21, -inf  ;;  %v2208_v49 = vsel %vm363_vm1, %v1414_v10, -inf }
 0x14f   : > { %5719 = vst [vmem:[#allocation15_spill] sm:$0xff] %v4550_v27  ;;  %v1421_v46 = vmax.f32 %v1419_v32, %v1420_v26  ;;  %v3814_v14 = vpack.c.bf16 %v4550_v27, %v4550_v27  ;;  %v4557_v63 = vmax.f32 %v2205_v30, %v4513_v8  ;;  %v4560_v47 = vmax.f32 %v2208_v49, %v4516_v1 }
 0x150   : > { %v1846_v3 = vmax.f32 %v1844_v41, %v1845_v50  ;;  %v1852_v48 = vrot.slane %v1851_v57, 2  ;;  %v1859_v58 = vrot.slane %v1858_v43, 2  ;;  %v1865_v51 = vmax.f32 %v1863_v28, %v1864_v36 }
 0x151   : > { %5720 = vst [vmem:[#allocation16_spill] sm:$0xff] %v4557_v63  ;;  %5721 = vst [vmem:[#allocation17_spill] sm:$0xff] %v4560_v47  ;;  %v2211_v0 = vsel %vm363_vm1, %v1421_v46, -inf  ;;  %v4563_v22 = vunpack.c.l.b16 %v3814_v14  ;;  %v3815_v59 = vpack.c.bf16 %v4557_v63, %v4557_v63  ;;  %v3816_v8 = vpack.c.bf16 %v4560_v47, %v4560_v47 }
 0x152   : > { %v4566_v55 = vmax.f32 %v2211_v0, %v4521_v17  ;;  %v1847_v16 = vrot.slane %v1846_v3, 1  ;;  %v1853_v1 = vmax.f32 %v1851_v57, %v1852_v48  ;;  %v1860_v32 = vmax.f32 %v1858_v43, %v1859_v58 }
 0x153   : > { %5722 = vst [vmem:[#allocation18_spill] sm:$0xff] %v4563_v22  ;;  %v1866_v41 = vrot.slane %v1865_v51, 2  ;;  %v735_v20 = vrot.slane %v478_v6, %v4276_v56  ;;  %v4573_v46 = vunpack.c.l.b16 %v3815_v59  ;;  %v4575_v23 = vunpack.c.l.b16 %v3816_v8 }
 0x154   : > { %5723 = vst [vmem:[#allocation19_spill] sm:$0xff] %v4566_v55  ;;  %v1848_v28 = vmax.f32 %v1846_v3, %v1847_v16  ;;  %v742_v17 = vrot.slane %v728_v34, %v4276_v56  ;;  %v1854_v21 = vrot.slane %v1853_v1, 1  ;;  %v1861_v10 = vrot.slane %v1860_v32, 1 }
 0x155   : > { %5724 = vst [vmem:[#allocation20_spill] sm:$0xff] %v4573_v46  ;;  %5725 = vst [vmem:[#allocation21_spill] sm:$0xff] %v4575_v23  ;;  %v1867_v26 = vmax.f32 %v1865_v51, %v1866_v41  ;;  %v743_v50 = vcombine.high %v735_v20, %v735_v20  ;;  %v1478_v57 = vsel %vm1281_vm2, %v735_v20, -inf  ;;  %v3951_v20 = vpop.f32.mrf.mxu1 }
 0x156   : > { %v2298_v36 = vsel %vm363_vm1, %v1848_v28, -inf  ;;  %v744_v30 = vcombine.high %v742_v17, %v742_v17  ;;  %v1492_v43 = vsel %vm1281_vm2, %v742_v17, -inf  ;;  %v1855_v49 = vmax.f32 %v1853_v1, %v1854_v21 }
 0x157   : > { %v1862_v6 = vmax.f32 %v1860_v32, %v1861_v10  ;;  %v1868_v14 = vrot.slane %v1867_v26, 1  ;;  %v4582_v48 = vmax.f32 %v2298_v36, %v4526_v35  ;;  %v1479_v3 = vrot.slane %v1478_v57, 4  ;;  %v533_v45 = vpop.f32.mrf.mxu1 }
 0x158   : > { %v1485_v34 = vsel %vm1281_vm2, %v743_v50, -inf  ;;  %v1493_v0 = vrot.slane %v1492_v43, 4  ;;  %v1499_v58 = vsel %vm1281_vm2, %v744_v30, -inf  ;;  %v2301_v59 = vsel %vm363_vm1, %v1855_v49, -inf }
 0x159   : > { %5726 = vst [vmem:[#allocation22_spill] sm:$0xff] %v4582_v48  ;;  %v1869_v51 = vmax.f32 %v1867_v26, %v1868_v14  ;;  %v2304_v8 = vsel %vm363_vm1, %v1862_v6, -inf  ;;  %v3846_v16 = vpack.c.bf16 %v4582_v48, %v4582_v48  ;;  %v4591_v1 = vmax.f32 %v2301_v59, %v4533_v2  ;;  %v469_v26 = vpop.f32.mrf.mxu0  ;;  %v4609_v6 = vld [vmem:[%s5661_s4] ss:$0 sm:$0xff]  ;;  %v3954_v12 = vpop.f32.mrf.mxu1 }
 0x15a   : > { %v4594_v35 = vmax.f32 %v2304_v8, %v4536_v11  ;;  %v1480_v32 = vmax.f32 %v1478_v57, %v1479_v3  ;;  %v1486_v41 = vrot.slane %v1485_v34, 4  ;;  %v1494_v21 = vmax.f32 %v1492_v43, %v1493_v0 }
 0x15b   : > { %5727 = vst [vmem:[#allocation23_spill] sm:$0xff] %v4591_v1  ;;  %v2307_v28 = vsel %vm363_vm1, %v1869_v51, -inf  ;;  %v4597_v17 = vunpack.c.l.b16 %v3846_v16  ;;  %v1500_v10 = vrot.slane %v1499_v58, 4  ;;  %v3847_v2 = vpack.c.bf16 %v4591_v1, %v4591_v1 }
 0x15c   : > { %5728 = vst [vmem:[#allocation24_spill] sm:$0xff] %v4594_v35  ;;  %v4600_v50 = vmax.f32 %v2307_v28, %v4539_v9  ;;  %v3848_v11 = vpack.c.bf16 %v4594_v35, %v4594_v35  ;;  %v1481_v36 = vrot.slane %v1480_v32, 2  ;;  %v1487_v30 = vmax.f32 %v1485_v34, %v1486_v41 }
 0x15d   : > { %5729 = vst [vmem:[#allocation25_spill] sm:$0xff] %v4597_v17  ;;  %v1495_v57 = vrot.slane %v1494_v21, 2  ;;  %v1501_v49 = vmax.f32 %v1499_v58, %v1500_v10  ;;  %v542_v43 = vadd.f32 %v4609_v6, %v3951_v20  ;;  %v4612_v14 = vunpack.c.l.b16 %v3847_v2 }
 0x15e   : > { %5730 = vst [vmem:[#allocation26_spill] sm:$0xff] %v4600_v50  ;;  %v4614_v9 = vunpack.c.l.b16 %v3848_v11  ;;  %v1482_v3 = vmax.f32 %v1480_v32, %v1481_v36  ;;  %v470_v0 = vadd.f32 %v4609_v6, %v469_v26  ;;  %v1488_v51 = vrot.slane %v1487_v30, 2 }
 0x15f   : > { %5731 = vst [vmem:[#allocation27_spill] sm:$0xff] %v4612_v14  ;;  %v1496_v59 = vmax.f32 %v1494_v21, %v1495_v57  ;;  %v1502_v8 = vrot.slane %v1501_v49, 2  ;;  %v1000_v34 = vcombine.high %v542_v43, %v542_v43  ;;  %v1007_v58 = vrot.slane %v542_v43, %v4276_v56 }
 0x160   : > { %5732 = vst [vmem:[#allocation28_spill] sm:$0xff] %v4614_v9  ;;  %v1483_v16 = vrot.slane %v1482_v3, 1  ;;  %v694_v41 = vcombine.high %v470_v0, %v470_v0  ;;  %v701_v28 = vrot.slane %v470_v0, %v4276_v56  ;;  %v1489_v10 = vmax.f32 %v1487_v30, %v1488_v51 }
 0x161   : > { %v1497_v35 = vrot.slane %v1496_v59, 1  ;;  %v1503_v20 = vmax.f32 %v1501_v49, %v1502_v8  ;;  %v1014_v2 = vrot.slane %v1000_v34, %v4276_v56  ;;  %v1015_v1 = vcombine.high %v1007_v58, %v1007_v58 }
 0x162   : > { %v1484_v11 = vmax.f32 %v1482_v3, %v1483_v16  ;;  %v1926_v32 = vsel %vm1281_vm2, %v1007_v58, -inf  ;;  %v708_v26 = vrot.slane %v694_v41, %v4276_v56  ;;  %v1490_v21 = vrot.slane %v1489_v10, 1 }
 0x163   : > { %v1498_v36 = vmax.f32 %v1496_v59, %v1497_v35  ;;  %v1504_v57 = vrot.slane %v1503_v20, 1  ;;  %v1016_v48 = vcombine.high %v1014_v2, %v1014_v2  ;;  %v1927_v52 = vrot.slane %v1926_v32, 4 }
 0x164   : > { %v4623_v43 = vsel %vm363_vm1, %v1484_v11, -inf  ;;  %v1933_v30 = vsel %vm1281_vm2, %v1015_v1, -inf  ;;  %v1940_v49 = vsel %vm1281_vm2, %v1014_v2, -inf  ;;  %v1491_v0 = vmax.f32 %v1489_v10, %v1490_v21 }
 0x165   : > { %v4627_v51 = vmax.f32 %v1503_v20, %v1504_v57  ;;  %v4630_v3 = vsel %vm363_vm1, %v1498_v36, -inf  ;;  %v1934_v8 = vrot.slane %v1933_v30, 4  ;;  %v1928_v34 = vmax.f32 %v1926_v32, %v1927_v52 }
 0x166   : > { %5734 = vst [vmem:[#allocation30_spill] sm:$0xff] %v4630_v3  ;;  %v1941_v16 = vrot.slane %v1940_v49, 4  ;;  %v1947_v35 = vsel %vm1281_vm2, %v1016_v48, -inf  ;;  %v709_v59 = vcombine.high %v701_v28, %v701_v28  ;;  %v4634_v58 = vsel %vm363_vm1, %v1491_v0, -inf }
 0x167   : > { %5733 = vst [vmem:[#allocation29_spill] sm:$0xff] %v4627_v51  ;;  %v1935_v41 = vmax.f32 %v1933_v30, %v1934_v8  ;;  %v1948_v11 = vrot.slane %v1947_v35, 4  ;;  %v710_v1 = vcombine.high %v708_v26, %v708_v26  ;;  %v1929_v2 = vrot.slane %v1928_v34, 2 }
 0x168   : > { %v1942_v10 = vmax.f32 %v1940_v49, %v1941_v16  ;;  %v1422_v20 = vsel %vm1281_vm2, %v701_v28, -inf  ;;  %v1429_v21 = vsel %vm1281_vm2, %v709_v59, -inf  ;;  %v1436_v63 = vsel %vm1281_vm2, %v708_v26, -inf }
 0x169   : > { %v1936_v36 = vrot.slane %v1935_v41, 2  ;;  %v1949_v57 = vmax.f32 %v1947_v35, %v1948_v11  ;;  %v1423_v52 = vrot.slane %v1422_v20, 4  ;;  %v1430_v32 = vrot.slane %v1429_v21, 4 }
 0x16a   : > { %v1930_v47 = vmax.f32 %v1928_v34, %v1929_v2  ;;  %v1943_v48 = vrot.slane %v1942_v10, 2  ;;  %v1443_v0 = vsel %vm1281_vm2, %v710_v1, -inf  ;;  %v1437_v28 = vrot.slane %v1436_v63, 4 }
 0x16b   : > { %v1937_v30 = vmax.f32 %v1935_v41, %v1936_v36  ;;  %v1950_v8 = vrot.slane %v1949_v57, 2  ;;  %v1424_v27 = vmax.f32 %v1422_v20, %v1423_v52  ;;  %v1431_v25 = vmax.f32 %v1429_v21, %v1430_v32  ;;  %v546_v21 = vpop.f32.mrf.mxu1 }
 0x16c   : > { %v1931_v49 = vrot.slane %v1930_v47, 1  ;;  %v1944_v16 = vmax.f32 %v1942_v10, %v1943_v48  ;;  %v1444_v15 = vrot.slane %v1443_v0, 4  ;;  %v1438_v46 = vmax.f32 %v1436_v63, %v1437_v28 }
 0x16d   : > { %v1938_v59 = vrot.slane %v1937_v30, 1  ;;  %v4640_v23 = vmax.f32 %v1949_v57, %v1950_v8  ;;  %v1425_v35 = vrot.slane %v1424_v27, 2  ;;  %v1432_v11 = vrot.slane %v1431_v25, 2 }
 0x16e   : > { %v1932_v34 = vmax.f32 %v1930_v47, %v1931_v49  ;;  %v1945_v2 = vrot.slane %v1944_v16, 1  ;;  %v1445_v26 = vmax.f32 %v1443_v0, %v1444_v15  ;;  %v1439_v52 = vrot.slane %v1438_v46, 2 }
 0x16f   : > { %v1939_v22 = vmax.f32 %v1937_v30, %v1938_v59  ;;  %v1426_v1 = vmax.f32 %v1424_v27, %v1425_v35  ;;  %v1433_v20 = vmax.f32 %v1431_v25, %v1432_v11  ;;  %v534_v15 = vadd.f32 %v4609_v6, %v533_v45 }
 0x170   : > { %v4643_v36 = vmax.f32 %v1944_v16, %v1945_v2  ;;  %v4646_v10 = vsel %vm363_vm1, %v1932_v34, -inf  ;;  %v1446_v57 = vrot.slane %v1445_v26, 2  ;;  %v1440_v63 = vmax.f32 %v1438_v46, %v1439_v52 }
 0x171   : > { %v4649_v32 = vsel %vm363_vm1, %v1939_v22, -inf  ;;  %v1427_v47 = vrot.slane %v1426_v1, 1  ;;  %v1434_v48 = vrot.slane %v1433_v20, 1  ;;  %v555_v27 = vadd.f32 %v4609_v6, %v3954_v12 }
 0x172   : > { %5735 = vst [vmem:[#allocation31_spill] sm:$0xff] %v4643_v36  ;;  %v1447_v0 = vmax.f32 %v1445_v26, %v1446_v57  ;;  %v4654_v25 = vadd.f32 %v4609_v6, %v546_v21  ;;  %v966_v49 = vcombine.high %v534_v15, %v534_v15  ;;  %v973_v16 = vrot.slane %v534_v15, %v4276_v56 }
 0x173   : > { %v1428_v30 = vmax.f32 %v1426_v1, %v1427_v47  ;;  %v1435_v8 = vmax.f32 %v1433_v20, %v1434_v48  ;;  %v1441_v28 = vrot.slane %v1440_v63, 1  ;;  %v1051_v22 = vcombine.high %v555_v27, %v555_v27 }
 0x174   : > { %v1448_v59 = vrot.slane %v1447_v0, 1  ;;  %v1058_v35 = vrot.slane %v555_v27, %v4276_v56  ;;  %v980_v46 = vrot.slane %v966_v49, %v4276_v56  ;;  %v981_v12 = vcombine.high %v973_v16, %v973_v16 }
 0x175   : > { %v2214_v11 = vsel %vm363_vm1, %v1428_v30, -inf  ;;  %v2217_v45 = vsel %vm363_vm1, %v1435_v8, -inf  ;;  %v1442_v34 = vmax.f32 %v1440_v63, %v1441_v28  ;;  %v1870_v21 = vsel %vm1281_vm2, %v973_v16, -inf }
 0x176   : > { %v4661_v2 = vmax.f32 %v1447_v0, %v1448_v59  ;;  %v4664_v26 = vmax.f32 %v2214_v11, %v4623_v43  ;;  %v4667_v1 = vmax.f32 %v2217_v45, %v4634_v58  ;;  %v982_v20 = vcombine.high %v980_v46, %v980_v46 }
 0x177   : > { %v1877_v52 = vsel %vm1281_vm2, %v981_v12, -inf  ;;  %v1884_v57 = vsel %vm1281_vm2, %v980_v46, -inf  ;;  %v4673_v47 = vsel %vm363_vm1, %v1442_v34, -inf  ;;  %v1871_v15 = vrot.slane %v1870_v21, 4 }
 0x178   : > { %5736 = vst [vmem:[#allocation32_spill] sm:$0xff] %v4661_v2  ;;  %5737 = vst [vmem:[#allocation33_spill] sm:$0xff] %v4664_v26  ;;  %v3818_v48 = vpack.c.bf16 %v4664_v26, %v4664_v26  ;;  %v1878_v63 = vrot.slane %v1877_v52, 4  ;;  %v1885_v43 = vrot.slane %v1884_v57, 4  ;;  %v1891_v0 = vsel %vm1281_vm2, %v982_v20, -inf }
 0x179   : > { %5738 = vst [vmem:[#allocation34_spill] sm:$0xff] %v4667_v1  ;;  %5739 = vst [vmem:[#allocation35_spill] sm:$0xff] %v4673_v47  ;;  %v1065_v58 = vrot.slane %v1051_v22, %v4276_v56  ;;  %v1066_v27 = vcombine.high %v1058_v35, %v1058_v35  ;;  %v1872_v8 = vmax.f32 %v1870_v21, %v1871_v15  ;;  %v1892_v16 = vrot.slane %v1891_v0, 4 }
 0x17a   : > { %v4679_v30 = vunpack.c.l.b16 %v3818_v48  ;;  %v1879_v49 = vmax.f32 %v1877_v52, %v1878_v63  ;;  %v1886_v28 = vmax.f32 %v1884_v57, %v1885_v43  ;;  %v2010_v11 = vsel %vm1281_vm2, %v1058_v35, -inf }
 0x17b   : > { %v1067_v59 = vcombine.high %v1065_v58, %v1065_v58  ;;  %v2017_v45 = vsel %vm1281_vm2, %v1066_v27, -inf  ;;  %v1873_v46 = vrot.slane %v1872_v8, 2  ;;  %v1893_v34 = vmax.f32 %v1891_v0, %v1892_v16  ;;  %v3955_v16 = vpop.f32.mrf.mxu1 }
 0x17c   : > { %5740 = vst [vmem:[#allocation36_spill] sm:$0xff] %v4679_v30  ;;  %v1880_v12 = vrot.slane %v1879_v49, 2  ;;  %v2011_v41 = vrot.slane %v2010_v11, 4  ;;  %v1887_v26 = vrot.slane %v1886_v28, 2  ;;  %v2018_v20 = vrot.slane %v2017_v45, 4 }
 0x17d   : > { %v2024_v22 = vsel %vm1281_vm2, %v1065_v58, -inf  ;;  %v2031_v48 = vsel %vm1281_vm2, %v1067_v59, -inf  ;;  %v1874_v30 = vmax.f32 %v1872_v8, %v1873_v46  ;;  %v1894_v52 = vrot.slane %v1893_v34, 2 }
 0x17e   : > { %v1881_v21 = vmax.f32 %v1879_v49, %v1880_v12  ;;  %v2012_v15 = vmax.f32 %v2010_v11, %v2011_v41  ;;  %v1888_v57 = vmax.f32 %v1886_v28, %v1887_v26  ;;  %v2019_v63 = vmax.f32 %v2017_v45, %v2018_v20  ;;  %v549_v20 = vpop.f32.mrf.mxu1 }
 0x17f   : > { %v2025_v43 = vrot.slane %v2024_v22, 4  ;;  %v2032_v35 = vrot.slane %v2031_v48, 4  ;;  %v1875_v1 = vrot.slane %v1874_v30, 1  ;;  %v4685_v55 = vmax.f32 %v1893_v34, %v1894_v52 }
 0x180   : > { %v1882_v27 = vrot.slane %v1881_v21, 1  ;;  %v2013_v0 = vrot.slane %v2012_v15, 2  ;;  %v1889_v51 = vrot.slane %v1888_v57, 1  ;;  %v2020_v2 = vrot.slane %v2019_v63, 2 }
 0x181   : > { %v2026_v47 = vmax.f32 %v2024_v22, %v2025_v43  ;;  %v2033_v58 = vmax.f32 %v2031_v48, %v2032_v35  ;;  %v1876_v3 = vmax.f32 %v1874_v30, %v1875_v1  ;;  %v1017_v34 = vcombine.high %v4654_v25, %v4654_v25 }
 0x182   : > { %v1883_v59 = vmax.f32 %v1881_v21, %v1882_v27  ;;  %v2014_v49 = vmax.f32 %v2012_v15, %v2013_v0  ;;  %v4688_v41 = vmax.f32 %v1888_v57, %v1889_v51  ;;  %v2021_v26 = vmax.f32 %v2019_v63, %v2020_v2 }
 0x183   : > { %v2027_v28 = vrot.slane %v2026_v47, 2  ;;  %v2034_v11 = vrot.slane %v2033_v58, 2  ;;  %v2310_v45 = vsel %vm363_vm1, %v1876_v3, -inf  ;;  %v1024_v2 = vrot.slane %v4654_v25, %v4276_v56 }
 0x184   : > { %5741 = vst [vmem:[#allocation37_spill] sm:$0xff] %v4688_v41  ;;  %v4692_v46 = vsel %vm363_vm1, %v1883_v59, -inf  ;;  %v2015_v12 = vrot.slane %v2014_v49, 1  ;;  %v4697_v1 = vmax.f32 %v2310_v45, %v4646_v10  ;;  %v2022_v30 = vrot.slane %v2021_v26, 1 }
 0x185   : > { %5742 = vst [vmem:[#allocation38_spill] sm:$0xff] %v4692_v46  ;;  %v2028_v22 = vmax.f32 %v2026_v47, %v2027_v28  ;;  %v2035_v51 = vmax.f32 %v2033_v58, %v2034_v11  ;;  %v1031_v3 = vrot.slane %v1017_v34, %v4276_v56  ;;  %v558_v21 = vadd.f32 %v4609_v6, %v3955_v16 }
 0x186   : > { %5743 = vst [vmem:[#allocation39_spill] sm:$0xff] %v4697_v1  ;;  %v2016_v48 = vmax.f32 %v2014_v49, %v2015_v12  ;;  %v2023_v52 = vmax.f32 %v2021_v26, %v2022_v30  ;;  %v4704_v63 = vadd.f32 %v4609_v6, %v549_v20  ;;  %v1032_v43 = vcombine.high %v1024_v2, %v1024_v2 }
 0x187   : > { %v2029_v15 = vrot.slane %v2028_v22, 1  ;;  %v2036_v57 = vrot.slane %v2035_v51, 1  ;;  %v1033_v35 = vcombine.high %v1031_v3, %v1031_v3  ;;  %v1954_v47 = vsel %vm1281_vm2, %v1024_v2, -inf }
 0x188   : > { %v2323_v10 = vsel %vm363_vm1, %v2016_v48, -inf  ;;  %v2326_v25 = vsel %vm363_vm1, %v2023_v52, -inf  ;;  %v1955_v58 = vrot.slane %v1954_v47, 4  ;;  %v1961_v59 = vsel %vm1281_vm2, %v1032_v43, -inf }
 0x189   : > { %v2030_v27 = vmax.f32 %v2028_v22, %v2029_v15  ;;  %v2037_v0 = vmax.f32 %v2035_v51, %v2036_v57  ;;  %v1968_v16 = vsel %vm1281_vm2, %v1031_v3, -inf  ;;  %v1975_v49 = vsel %vm1281_vm2, %v1033_v35, -inf }
 0x18a   : > { %v1068_v26 = vcombine.high %v558_v21, %v558_v21  ;;  %v1956_v45 = vmax.f32 %v1954_v47, %v1955_v58  ;;  %v1962_v12 = vrot.slane %v1961_v59, 4  ;;  %v1969_v34 = vrot.slane %v1968_v16, 4 }
 0x18b   : > { %v2329_v28 = vsel %vm363_vm1, %v2030_v27, -inf  ;;  %v2332_v11 = vsel %vm363_vm1, %v2037_v0, -inf  ;;  %v1976_v20 = vrot.slane %v1975_v49, 4  ;;  %v1075_v30 = vrot.slane %v558_v21, %v4276_v56 }
 0x18c   : > { %v1082_v22 = vrot.slane %v1068_v26, %v4276_v56  ;;  %v1957_v51 = vrot.slane %v1956_v45, 2  ;;  %v1963_v48 = vmax.f32 %v1961_v59, %v1962_v12  ;;  %v1034_v2 = vcombine.high %v4704_v63, %v4704_v63 }
 0x18d   : > { %v4720_v3 = vrot.slane %v4704_v63, %v4276_v56  ;;  %v1970_v52 = vmax.f32 %v1968_v16, %v1969_v34  ;;  %v1977_v15 = vmax.f32 %v1975_v49, %v1976_v20  ;;  %v1083_v57 = vcombine.high %v1075_v30, %v1075_v30 }
 0x18e   : > { %v1084_v43 = vcombine.high %v1082_v22, %v1082_v22  ;;  %v1958_v35 = vmax.f32 %v1956_v45, %v1957_v51  ;;  %v1964_v47 = vrot.slane %v1963_v48, 2  ;;  %v2038_v27 = vsel %vm1281_vm2, %v1075_v30, -inf }
 0x18f   : > { %v2052_v21 = vsel %vm1281_vm2, %v1082_v22, -inf  ;;  %v1971_v0 = vrot.slane %v1970_v52, 2  ;;  %v1978_v58 = vrot.slane %v1977_v15, 2  ;;  %v2039_v59 = vrot.slane %v2038_v27, 4 }
 0x190   : > { %v2045_v26 = vsel %vm1281_vm2, %v1083_v57, -inf  ;;  %v1959_v12 = vrot.slane %v1958_v35, 1  ;;  %v1965_v8 = vmax.f32 %v1963_v48, %v1964_v47  ;;  %v2053_v63 = vrot.slane %v2052_v21, 4 }
 0x191   : > { %v2046_v9 = vrot.slane %v2045_v26, 4  ;;  %v1972_v14 = vmax.f32 %v1970_v52, %v1971_v0  ;;  %v1979_v16 = vmax.f32 %v1977_v15, %v1978_v58  ;;  %v2040_v49 = vmax.f32 %v2038_v27, %v2039_v59  ;;  %v3938_v59 = vpop.f32.mrf.mxu0 }
 0x192   : > { %v2059_v34 = vsel %vm1281_vm2, %v1084_v43, -inf  ;;  %v1960_v45 = vmax.f32 %v1958_v35, %v1959_v12  ;;  %v1966_v20 = vrot.slane %v1965_v8, 1  ;;  %v2054_v30 = vmax.f32 %v2052_v21, %v2053_v63 }
 0x193   : > { %v2047_v51 = vmax.f32 %v2045_v26, %v2046_v9  ;;  %v1973_v17 = vrot.slane %v1972_v14, 1  ;;  %v1980_v22 = vrot.slane %v1979_v16, 1  ;;  %v2041_v1 = vrot.slane %v2040_v49, 2 }
 0x194   : > { %v2060_v50 = vrot.slane %v2059_v34, 4  ;;  %v1967_v36 = vmax.f32 %v1965_v8, %v1966_v20  ;;  %v2322_v57 = vsel %vm363_vm1, %v1960_v45, -inf  ;;  %v2055_v48 = vrot.slane %v2054_v30, 2 }
 0x195   : > { %v2048_v41 = vrot.slane %v2047_v51, 2  ;;  %v1974_v47 = vmax.f32 %v1972_v14, %v1973_v17  ;;  %v1981_v46 = vmax.f32 %v1979_v16, %v1980_v22  ;;  %v4727_v52 = vmax.f32 %v2322_v57, %v2323_v10 }
 0x196   : > { %v2042_v15 = vmax.f32 %v2040_v49, %v2041_v1  ;;  %v2325_v43 = vsel %vm363_vm1, %v1967_v36, -inf  ;;  %v2056_v27 = vmax.f32 %v2054_v30, %v2055_v48  ;;  %v2061_v9 = vmax.f32 %v2059_v34, %v2060_v50  ;;  %v482_v34 = vpop.f32.mrf.mxu0 }
 0x197   : > { %5744 = vst [vmem:[#allocation40_spill] sm:$0xff] %v4727_v52  ;;  %v2049_v35 = vmax.f32 %v2047_v51, %v2048_v41  ;;  %v4730_v21 = vmax.f32 %v2325_v43, %v2326_v25  ;;  %v2328_v0 = vsel %vm363_vm1, %v1974_v47, -inf  ;;  %v2331_v8 = vsel %vm363_vm1, %v1981_v46, -inf }
 0x198   : > { %v3854_v58 = vpack.c.bf16 %v4727_v52, %v4727_v52  ;;  %v4736_v17 = vmax.f32 %v2328_v0, %v2329_v28  ;;  %v4738_v14 = vmax.f32 %v2331_v8, %v2332_v11  ;;  %v2043_v1 = vrot.slane %v2042_v15, 1 }
 0x199   : > { %5745 = vst [vmem:[#allocation41_spill] sm:$0xff] %v4730_v21  ;;  %v2050_v10 = vrot.slane %v2049_v35, 1  ;;  %v3855_v36 = vpack.c.bf16 %v4730_v21, %v4730_v21  ;;  %v2057_v41 = vrot.slane %v2056_v27, 1  ;;  %v2062_v25 = vrot.slane %v2061_v9, 2 }
 0x19a   : > { %5746 = vst [vmem:[#allocation42_spill] sm:$0xff] %v4736_v17  ;;  %v4742_v50 = vunpack.c.l.b16 %v3854_v58  ;;  %v3856_v46 = vpack.c.bf16 %v4736_v17, %v4736_v17  ;;  %v2044_v26 = vmax.f32 %v2042_v15, %v2043_v1  ;;  %v1048_v63 = vrot.slane %v1034_v2, %v4276_v56  ;;  %v3939_v58 = vpop.f32.mrf.mxu0 }
 0x19b   : > { %v2051_v12 = vmax.f32 %v2049_v35, %v2050_v10  ;;  %v4747_v28 = vunpack.c.l.b16 %v3855_v36  ;;  %v2058_v11 = vmax.f32 %v2056_v27, %v2057_v41  ;;  %v2063_v16 = vmax.f32 %v2061_v9, %v2062_v25 }
 0x19c   : > { %v1049_v49 = vcombine.high %v4720_v3, %v4720_v3  ;;  %v4751_v45 = vunpack.c.l.b16 %v3856_v46  ;;  %v2335_v20 = vsel %vm363_vm1, %v2044_v26, -inf  ;;  %v1050_v30 = vcombine.high %v1048_v63, %v1048_v63 }
 0x19d   : > { %v2338_v51 = vsel %vm363_vm1, %v2051_v12, -inf  ;;  %v2064_v22 = vrot.slane %v2063_v16, 1  ;;  %v4756_v57 = vsel %vm363_vm1, %v2058_v11, -inf  ;;  %v1982_v2 = vsel %vm1281_vm2, %v4720_v3, -inf }
 0x19e   : > { %5747 = vst [vmem:[#allocation43_spill] sm:$0xff] %v4751_v45  ;;  %v1989_v48 = vsel %vm1281_vm2, %v1049_v49, -inf  ;;  %v1983_v47 = vrot.slane %v1982_v2, 4  ;;  %v1996_v43 = vsel %vm1281_vm2, %v1048_v63, -inf  ;;  %v2003_v35 = vsel %vm1281_vm2, %v1050_v30, -inf }
 0x19f   : > { %v1990_v15 = vrot.slane %v1989_v48, 4  ;;  %v4763_v27 = vmax.f32 %v2063_v16, %v2064_v22  ;;  %v1997_v9 = vrot.slane %v1996_v43, 4  ;;  %v2004_v0 = vrot.slane %v2003_v35, 4 }
 0x1a0   : > { %v491_v8 = vadd.f32 %v4609_v6, %v3938_v59  ;;  %v1984_v1 = vmax.f32 %v1982_v2, %v1983_v47  ;;  %v483_v36 = vadd.f32 %v4609_v6, %v482_v34  ;;  %v4768_v3 = vadd.f32 %v4609_v6, %v3939_v58 }
 0x1a1   : > { %v1991_v10 = vmax.f32 %v1989_v48, %v1990_v15  ;;  %v1998_v41 = vmax.f32 %v1996_v43, %v1997_v9  ;;  %v2005_v25 = vmax.f32 %v2003_v35, %v2004_v0 }
 0x1a2   : > { %v779_v46 = vcombine.high %v491_v8, %v491_v8  ;;  %v786_v26 = vrot.slane %v491_v8, %v4276_v56  ;;  %v1985_v12 = vrot.slane %v1984_v1, 2  ;;  %v745_v11 = vcombine.high %v483_v36, %v483_v36 }
 0x1a3   : > { %v1992_v63 = vrot.slane %v1991_v10, 2  ;;  %v752_v16 = vrot.slane %v483_v36, %v4276_v56  ;;  %v1999_v49 = vrot.slane %v1998_v41, 2  ;;  %v2006_v59 = vrot.slane %v2005_v25, 2 }
 0x1a4   : > { %v793_v30 = vrot.slane %v779_v46, %v4276_v56  ;;  %v794_v22 = vcombine.high %v786_v26, %v786_v26  ;;  %v1986_v2 = vmax.f32 %v1984_v1, %v1985_v12  ;;  %v1562_v48 = vsel %vm1281_vm2, %v786_v26, -inf }
 0x1a5   : > { %v1993_v34 = vmax.f32 %v1991_v10, %v1992_v63  ;;  %v759_v47 = vrot.slane %v745_v11, %v4276_v56  ;;  %v2000_v15 = vmax.f32 %v1998_v41, %v1999_v49  ;;  %v2007_v43 = vmax.f32 %v2005_v25, %v2006_v59 }
 0x1a6   : > { %v795_v35 = vcombine.high %v793_v30, %v793_v30  ;;  %v1563_v9 = vrot.slane %v1562_v48, 4  ;;  %v1987_v0 = vrot.slane %v1986_v2, 1  ;;  %v1569_v58 = vsel %vm1281_vm2, %v794_v22, -inf }
 0x1a7   : > { %v1994_v8 = vrot.slane %v1993_v34, 1  ;;  %v1576_v36 = vsel %vm1281_vm2, %v793_v30, -inf  ;;  %v2001_v17 = vrot.slane %v2000_v15, 1  ;;  %v2008_v21 = vrot.slane %v2007_v43, 1 }
 0x1a8   : > { %v1564_v46 = vmax.f32 %v1562_v48, %v1563_v9  ;;  %v1570_v52 = vrot.slane %v1569_v58, 4  ;;  %v1988_v1 = vmax.f32 %v1986_v2, %v1987_v0  ;;  %v1577_v12 = vrot.slane %v1576_v36, 4 }
 0x1a9   : > { %v1995_v10 = vmax.f32 %v1993_v34, %v1994_v8  ;;  %v1583_v26 = vsel %vm1281_vm2, %v795_v35, -inf  ;;  %v2002_v63 = vmax.f32 %v2000_v15, %v2001_v17  ;;  %v4778_v41 = vmax.f32 %v2007_v43, %v2008_v21 }
 0x1aa   : > { %v1565_v25 = vrot.slane %v1564_v46, 2  ;;  %v1571_v11 = vmax.f32 %v1569_v58, %v1570_v52  ;;  %v2334_v49 = vsel %vm363_vm1, %v1988_v1, -inf  ;;  %v1578_v22 = vmax.f32 %v1576_v36, %v1577_v12 }
 0x1ab   : > { %v2337_v59 = vsel %vm363_vm1, %v1995_v10, -inf  ;;  %v1584_v30 = vrot.slane %v1583_v26, 4  ;;  %v4782_v45 = vmax.f32 %v2334_v49, %v2335_v20  ;;  %v4787_v2 = vsel %vm363_vm1, %v2002_v63, -inf }
 0x1ac   : > { %v4784_v48 = vmax.f32 %v2337_v59, %v2338_v51  ;;  %v1566_v34 = vmax.f32 %v1564_v46, %v1565_v25  ;;  %v1572_v35 = vrot.slane %v1571_v11, 2  ;;  %v1579_v17 = vrot.slane %v1578_v22, 2 }
 0x1ad   : > { %5748 = vst [vmem:[#allocation44_spill] sm:$0xff] %v4782_v45  ;;  %v1585_v21 = vmax.f32 %v1583_v26, %v1584_v30  ;;  %v760_v15 = vcombine.high %v752_v16, %v752_v16  ;;  %v3858_v52 = vpack.c.bf16 %v4782_v45, %v4782_v45  ;;  %v761_v9 = vcombine.high %v759_v47, %v759_v47 }
 0x1ae   : > { %v1567_v43 = vrot.slane %v1566_v34, 1  ;;  %v1506_v0 = vsel %vm1281_vm2, %v752_v16, -inf  ;;  %v1573_v8 = vmax.f32 %v1571_v11, %v1572_v35  ;;  %v1580_v20 = vmax.f32 %v1578_v22, %v1579_v17 }
 0x1af   : > { %v1586_v58 = vrot.slane %v1585_v21, 2  ;;  %v1507_v51 = vrot.slane %v1506_v0, 4  ;;  %v4792_v36 = vunpack.c.l.b16 %v3858_v52  ;;  %v1513_v46 = vsel %vm1281_vm2, %v760_v15, -inf }
 0x1b0   : > { %v1568_v1 = vmax.f32 %v1566_v34, %v1567_v43  ;;  %v1520_v10 = vsel %vm1281_vm2, %v759_v47, -inf  ;;  %v1574_v12 = vrot.slane %v1573_v8, 1  ;;  %v1581_v26 = vrot.slane %v1580_v20, 1 }
 0x1b1   : > { %5749 = vst [vmem:[#allocation45_spill] sm:$0xff] %v4792_v36  ;;  %v1587_v63 = vmax.f32 %v1585_v21, %v1586_v58  ;;  %v1508_v25 = vmax.f32 %v1506_v0, %v1507_v51  ;;  %v1514_v59 = vrot.slane %v1513_v46, 4  ;;  %v1521_v30 = vrot.slane %v1520_v10, 4 }
 0x1b2   : > { %v2227_v49 = vsel %vm363_vm1, %v1568_v1, -inf  ;;  %v1527_v16 = vsel %vm1281_vm2, %v761_v9, -inf  ;;  %v1575_v11 = vmax.f32 %v1573_v8, %v1574_v12  ;;  %v1582_v22 = vmax.f32 %v1580_v20, %v1581_v26 }
 0x1b3   : > { %v1588_v35 = vrot.slane %v1587_v63, 1  ;;  %v1509_v17 = vrot.slane %v1508_v25, 2  ;;  %v1515_v52 = vmax.f32 %v1513_v46, %v1514_v59  ;;  %v1522_v34 = vmax.f32 %v1520_v10, %v1521_v30 }
 0x1b4   : > { %v1528_v43 = vrot.slane %v1527_v16, 4  ;;  %v796_v47 = vcombine.high %v4768_v3, %v4768_v3  ;;  %v2230_v21 = vsel %vm363_vm1, %v1575_v11, -inf  ;;  %v2233_v0 = vsel %vm363_vm1, %v1582_v22, -inf }
 0x1b5   : > { %v1589_v15 = vmax.f32 %v1587_v63, %v1588_v35  ;;  %v1510_v58 = vmax.f32 %v1508_v25, %v1509_v17  ;;  %v1516_v51 = vrot.slane %v1515_v52, 2  ;;  %v1523_v1 = vrot.slane %v1522_v34, 2 }
 0x1b6   : > { %v1529_v45 = vmax.f32 %v1527_v16, %v1528_v43  ;;  %v803_v9 = vrot.slane %v4768_v3, %v4276_v56  ;;  %v810_v46 = vrot.slane %v796_v47, %v4276_v56  ;;  %v5750_v10 = vrot.slane %v4459_v33, 1 }
 0x1b7   : > { %v2236_v8 = vsel %vm363_vm1, %v1589_v15, -inf  ;;  %v1511_v20 = vrot.slane %v1510_v58, 1  ;;  %v1517_v26 = vmax.f32 %v1515_v52, %v1516_v51  ;;  %v1524_v63 = vmax.f32 %v1522_v34, %v1523_v1 }
 0x1b8   : > { %v1337_v12 = vmax.f32 %v4459_v33, %v5750_v10  ;;  %v1530_v59 = vrot.slane %v1529_v45, 2  ;;  %v811_v30 = vcombine.high %v803_v9, %v803_v9  ;;  %v812_v11 = vcombine.high %v810_v46, %v810_v46 }
 0x1b9   : > { %v1512_v25 = vmax.f32 %v1510_v58, %v1511_v20  ;;  %v1590_v16 = vsel %vm1281_vm2, %v803_v9, -inf  ;;  %v1604_v22 = vsel %vm1281_vm2, %v810_v46, -inf  ;;  %v1518_v3 = vrot.slane %v1517_v26, 1 }
 0x1ba   : > { %v1525_v35 = vrot.slane %v1524_v63, 1  ;;  %v1531_v17 = vmax.f32 %v1529_v45, %v1530_v59  ;;  %v1591_v43 = vrot.slane %v1590_v16, 4  ;;  %v1597_v15 = vsel %vm1281_vm2, %v811_v30, -inf }
 0x1bb   : > { %v2226_v47 = vsel %vm363_vm1, %v1512_v25, -inf  ;;  %v1605_v36 = vrot.slane %v1604_v22, 4  ;;  %v1611_v33 = vsel %vm1281_vm2, %v812_v11, -inf  ;;  %v1519_v52 = vmax.f32 %v1517_v26, %v1518_v3 }
 0x1bc   : > { %v1526_v34 = vmax.f32 %v1524_v63, %v1525_v35  ;;  %v1532_v51 = vrot.slane %v1531_v17, 1  ;;  %v4814_v58 = vmax.f32 %v2226_v47, %v2227_v49  ;;  %v1592_v1 = vmax.f32 %v1590_v16, %v1591_v43 }
 0x1bd   : > { %v1598_v9 = vrot.slane %v1597_v15, 4  ;;  %v1606_v20 = vmax.f32 %v1604_v22, %v1605_v36  ;;  %v1612_v46 = vrot.slane %v1611_v33, 4  ;;  %v2229_v45 = vsel %vm363_vm1, %v1519_v52, -inf }
 0x1be   : > { %5751 = vst [vmem:[#allocation46_spill] sm:$0xff] %v4814_v58  ;;  %v1533_v10 = vmax.f32 %v1531_v17, %v1532_v51  ;;  %v2232_v59 = vsel %vm363_vm1, %v1526_v34, -inf  ;;  %v3822_v30 = vpack.c.bf16 %v4814_v58, %v4814_v58  ;;  %v4820_v25 = vmax.f32 %v2229_v45, %v2230_v21 }
 0x1bf   : > { %v4822_v11 = vmax.f32 %v2232_v59, %v2233_v0  ;;  %v1593_v26 = vrot.slane %v1592_v1, 2  ;;  %v1599_v63 = vmax.f32 %v1597_v15, %v1598_v9  ;;  %v1607_v36 = vrot.slane %v1606_v20, 2 }
 0x1c0   : > { %5752 = vst [vmem:[#allocation47_spill] sm:$0xff] %v4820_v25  ;;  %v2235_v49 = vsel %vm363_vm1, %v1533_v10, -inf  ;;  %v4825_v16 = vunpack.c.l.b16 %v3822_v30  ;;  %v1613_v22 = vmax.f32 %v1611_v33, %v1612_v46  ;;  %v3823_v35 = vpack.c.bf16 %v4820_v25, %v4820_v25 }
 0x1c1   : > { %5753 = vst [vmem:[#allocation48_spill] sm:$0xff] %v4822_v11  ;;  %v4827_v3 = vmax.f32 %v2235_v49, %v2236_v8  ;;  %v3824_v17 = vpack.c.bf16 %v4822_v11, %v4822_v11  ;;  %v1594_v21 = vmax.f32 %v1592_v1, %v1593_v26  ;;  %v1600_v43 = vrot.slane %v1599_v63, 2 }
 0x1c2   : > { %v1608_v0 = vmax.f32 %v1606_v20, %v1607_v36  ;;  %v1614_v47 = vrot.slane %v1613_v22, 2  ;;  %v5754_v15 = vrot.slane %v4420_v4, 1  ;;  %v4836_v34 = vunpack.c.l.b16 %v3823_v35 }
 0x1c3   : > { %v4838_v51 = vunpack.c.l.b16 %v3824_v17  ;;  %v1595_v8 = vrot.slane %v1594_v21, 1  ;;  %v4842_v33 = vmax.f32 %v4469_v53, %v4429_v60  ;;  %v1601_v9 = vmax.f32 %v1599_v63, %v1600_v43 }
 0x1c4   : > { %v1393_v52 = vmax.f32 %v4420_v4, %v5754_v15  ;;  %v1609_v46 = vrot.slane %v1608_v0, 1  ;;  %v1615_v10 = vmax.f32 %v1613_v22, %v1614_v47  ;;  %v2196_v1 = vsel %vm363_vm1, %v4462_v44, -inf }
 0x1c5   : > { %5755 = vst [vmem:[#allocation49_spill] sm:$0xff] %v4842_v33  ;;  %v1596_v20 = vmax.f32 %v1594_v21, %v1595_v8  ;;  %v2197_v45 = vsel %vm363_vm1, %v4423_v54, -inf  ;;  %v2199_v4 = vsel %vm363_vm1, %v1337_v12, -inf  ;;  %v1602_v30 = vrot.slane %v1601_v9, 1  ;;  %v485_v12 = vpop.f32.mrf.mxu0 }
 0x1c6   : > { %v2200_v59 = vsel %vm363_vm1, %v1393_v52, -inf  ;;  %v1610_v26 = vmax.f32 %v1608_v0, %v1609_v46  ;;  %v1616_v49 = vrot.slane %v1615_v10, 1  ;;  %v4850_v36 = vmax.f32 %v2196_v1, %v2197_v45 }
 0x1c7   : > { %v4853_v60 = vsel %vm363_vm1, %v1596_v20, -inf  ;;  %v4855_v53 = vmax.f32 %v2199_v4, %v2200_v59  ;;  %v1603_v44 = vmax.f32 %v1601_v9, %v1602_v30  ;;  %v3809_v35 = vpack.c.bf16 %v4362_v31, %v4362_v31  ;;  %v3942_v4 = vpop.f32.mrf.mxu0 }
 0x1c8   : > { %5756 = vst [vmem:[#allocation50_spill] sm:$0xff] %v4850_v36  ;;  %v4857_v63 = vmax.f32 %v1615_v10, %v1616_v49  ;;  %v4860_v54 = vsel %vm363_vm1, %v1610_v26, -inf  ;;  %v3810_v17 = vpack.c.bf16 %v4466_v19, %v4466_v19  ;;  %v3811_v21 = vpack.c.bf16 %v4842_v33, %v4842_v33 }
 0x1c9   : > { %5757 = vst [vmem:[#allocation51_spill] sm:$0xff] %v4855_v53  ;;  %v4863_v22 = vsel %vm363_vm1, %v1603_v44, -inf  ;;  %v3812_v43 = vpack.c.bf16 %v4850_v36, %v4850_v36  ;;  %v3813_v0 = vpack.c.bf16 %v4855_v53, %v4855_v53  ;;  %v2860_v47 = vsel %vm2434_vm3, %v4370_v39, %v4368_v7 }
 0x1ca   : > { %v486_v15 = vadd.f32 %v4609_v6, %v485_v12  ;;  %v2799_v52 = vunpack.c.l.b16 %v3809_v35  ;;  %v2800_v8 = vunpack.c.l.b16 %v3810_v17  ;;  %v2801_v9 = vunpack.c.l.b16 %v3811_v21 }
 0x1cb   : > { %v2861_v46 = vsel %vm2436_vm4, %v4372_v40, %v2860_v47  ;;  %v2802_v10 = vunpack.c.l.b16 %v3812_v43  ;;  %v2803_v1 = vunpack.c.l.b16 %v3813_v0  ;;  %v507_v30 = vadd.f32 %v4609_v6, %v3942_v4 }
 0x1cc   : > { %v762_v20 = vcombine.high %v486_v15, %v486_v15  ;;  %v769_v45 = vrot.slane %v486_v15, %v4276_v56  ;;  %v2862_v59 = vsel %vm2438_vm5, %v2799_v52, %v2861_v46  ;;  %v4886_v7 = vmax.f32 %v4490_v62, %v4451_v38 }
 0x1cd   : > { %v4890_v39 = vsel %vm363_vm1, %v4492_v29, -inf  ;;  %v2863_v40 = vsel %vm2440_vm6, %v2800_v8, %v2862_v59  ;;  %v847_v17 = vcombine.high %v507_v30, %v507_v30  ;;  %v854_v6 = vrot.slane %v507_v30, %v4276_v56 }
 0x1ce   : > { %5758 = vst [vmem:[#allocation52_spill] sm:$0xff] %v4886_v7  ;;  %v776_v26 = vrot.slane %v762_v20, %v4276_v56  ;;  %v777_v49 = vcombine.high %v769_v45, %v769_v45  ;;  %v1534_v44 = vsel %vm1281_vm2, %v769_v45, -inf  ;;  %v2864_v12 = vsel %vm2442_vm7, %v2801_v9, %v2863_v40 }
 0x1cf   : > { %v1535_v35 = vrot.slane %v1534_v44, 4  ;;  %v2865_v38 = vsel %vm2444_vm8, %v2802_v10, %v2864_v12  ;;  %v861_v9 = vrot.slane %v847_v17, %v4276_v56  ;;  %v862_v46 = vcombine.high %v854_v6, %v854_v6 }
 0x1d0   : > { %v778_v62 = vcombine.high %v776_v26, %v776_v26  ;;  %v1541_v21 = vsel %vm1281_vm2, %v777_v49, -inf  ;;  %v1548_v29 = vsel %vm1281_vm2, %v776_v26, -inf  ;;  %v2866_v43 = vsel %vm2446_vm9, %v2803_v1, %v2865_v38 }
 0x1d1   : > { %v1536_v0 = vmax.f32 %v1534_v44, %v1535_v35  ;;  %v1542_v47 = vrot.slane %v1541_v21, 4  ;;  %v1549_v15 = vrot.slane %v1548_v29, 4  ;;  %v2916_v52 = vpack.c.b16 %v2866_v43, %v2866_v43 }
 0x1d2   : > { %v1555_v8 = vsel %vm1281_vm2, %v778_v62, -inf  ;;  %v863_v59 = vcombine.high %v861_v9, %v861_v9  ;;  %v1674_v30 = vsel %vm1281_vm2, %v854_v6, -inf  ;;  %v1681_v1 = vsel %vm1281_vm2, %v862_v46, -inf }
 0x1d3   : > { %v1537_v20 = vrot.slane %v1536_v0, 2  ;;  %v1543_v45 = vmax.f32 %v1541_v21, %v1542_v47  ;;  %v1550_v4 = vmax.f32 %v1548_v29, %v1549_v15  ;;  %v1556_v10 = vrot.slane %v1555_v8, 4  ;;  %2924 = vrot.lane.b32.xlu0 %v2916_v52, %s4135_s8 }
 0x1d4   : > { %v1688_v40 = vsel %vm1281_vm2, %v861_v9, -inf  ;;  %v1675_v35 = vrot.slane %v1674_v30, 4  ;;  %v1682_v17 = vrot.slane %v1681_v1, 4  ;;  %v1695_v62 = vsel %vm1281_vm2, %v863_v59, -inf }
 0x1d5   : > { %v1538_v26 = vmax.f32 %v1536_v0, %v1537_v20  ;;  %v1544_v49 = vrot.slane %v1543_v45, 2  ;;  %v1551_v44 = vrot.slane %v1550_v4, 2  ;;  %v1557_v12 = vmax.f32 %v1555_v8, %v1556_v10 }
 0x1d6   : > { %v1689_v38 = vrot.slane %v1688_v40, 4  ;;  %v1676_v15 = vmax.f32 %v1674_v30, %v1675_v35  ;;  %v1683_v52 = vmax.f32 %v1681_v1, %v1682_v17  ;;  %v1696_v53 = vrot.slane %v1695_v62, 4 }
 0x1d7   : > { %v1539_v21 = vrot.slane %v1538_v26, 1  ;;  %v1545_v29 = vmax.f32 %v1543_v45, %v1544_v49  ;;  %v1552_v43 = vmax.f32 %v1550_v4, %v1551_v44  ;;  %v1558_v47 = vrot.slane %v1557_v12, 2 }
 0x1d8   : > { %v1690_v6 = vmax.f32 %v1688_v40, %v1689_v38  ;;  %v1677_v20 = vrot.slane %v1676_v15, 2  ;;  %v1684_v33 = vrot.slane %v1683_v52, 2  ;;  %v1697_v10 = vmax.f32 %v1695_v62, %v1696_v53 }
 0x1d9   : > { %v1540_v46 = vmax.f32 %v1538_v26, %v1539_v21  ;;  %v1546_v36 = vrot.slane %v1545_v29, 1  ;;  %v1553_v9 = vrot.slane %v1552_v43, 1  ;;  %v1559_v0 = vmax.f32 %v1557_v12, %v1558_v47 }
 0x1da   : > { %v1691_v8 = vrot.slane %v1690_v6, 2  ;;  %v1678_v4 = vmax.f32 %v1676_v15, %v1677_v20  ;;  %v1685_v30 = vmax.f32 %v1683_v52, %v1684_v33  ;;  %v1698_v44 = vrot.slane %v1697_v10, 2  ;;  %v498_v33 = vpop.f32.mrf.mxu0 }
 0x1db   : > { %v1547_v11 = vmax.f32 %v1545_v29, %v1546_v36  ;;  %v1554_v19 = vmax.f32 %v1552_v43, %v1553_v9  ;;  %v1560_v25 = vrot.slane %v1559_v0, 1  ;;  %v2238_v59 = vsel %vm363_vm1, %v1540_v46, -inf }
 0x1dc   : > { %v4910_v45 = vmax.f32 %v2238_v59, %v4853_v60  ;;  %v1692_v1 = vmax.f32 %v1690_v6, %v1691_v8  ;;  %v1679_v12 = vrot.slane %v1678_v4, 1  ;;  %v1686_v60 = vrot.slane %v1685_v30, 1  ;;  %v3943_v20 = vpop.f32.mrf.mxu0  ;;  %v4953_v59 = vld [vmem:[%s5661_s4] ss:$0 sm:$0xff] }
 0x1dd   : > { %v4912_v40 = vmax.f32 %v1559_v0, %v1560_v25  ;;  %v2241_v26 = vsel %vm363_vm1, %v1547_v11, -inf  ;;  %v4916_v49 = vsel %vm363_vm1, %v1554_v19, -inf  ;;  %v1699_v17 = vmax.f32 %v1697_v10, %v1698_v44 }
 0x1de   : > { %5759 = vst [vmem:[#allocation53_spill] sm:$0xff] %v4910_v45  ;;  %v4919_v36 = vmax.f32 %v2241_v26, %v4863_v22  ;;  %v3826_v53 = vpack.c.bf16 %v4910_v45, %v4910_v45  ;;  %v1693_v35 = vrot.slane %v1692_v1, 1  ;;  %v2296_v25 = vsel %vm363_vm1, %v4448_v37, -inf }
 0x1df   : > { %v3841_v11 = vpack.c.bf16 %v4396_v13, %v4396_v13  ;;  %v1680_v38 = vmax.f32 %v1678_v4, %v1679_v12  ;;  %v1687_v62 = vmax.f32 %v1685_v30, %v1686_v60  ;;  %v4930_v22 = vmax.f32 %v4890_v39, %v2296_v25 }
 0x1e0   : > { %v4927_v19 = vunpack.c.l.b16 %v3826_v53  ;;  %v1694_v21 = vmax.f32 %v1692_v1, %v1693_v35  ;;  %v1700_v29 = vrot.slane %v1699_v17, 1  ;;  %v3843_v43 = vpack.c.bf16 %v4487_v24, %v4487_v24  ;;  %v3958_v1 = vpop.f32.mrf.mxu1 }
 0x1e1   : > { %5760 = vst [vmem:[#allocation54_spill] sm:$0xff] %v4930_v22  ;;  %v3844_v47 = vpack.c.bf16 %v4886_v7, %v4886_v7  ;;  %v4937_v37 = vsel %vm363_vm1, %v1680_v38, -inf  ;;  %v4940_v15 = vsel %vm363_vm1, %v1687_v62, -inf  ;;  %v3845_v52 = vpack.c.bf16 %v4930_v22, %v4930_v22 }
 0x1e2   : > { %v2831_v6 = vunpack.c.l.b16 %v3841_v11  ;;  %v1701_v39 = vmax.f32 %v1699_v17, %v1700_v29  ;;  %v4945_v46 = vsel %vm363_vm1, %v1694_v21, -inf  ;;  %v2833_v9 = vunpack.c.l.b16 %v3843_v43 }
 0x1e3   : > { %v2834_v0 = vunpack.c.l.b16 %v3844_v47  ;;  %v2835_v8 = vunpack.c.l.b16 %v3845_v52  ;;  %v2888_v10 = vsel %vm2434_vm3, %v4413_v5, %v4406_v18  ;;  %v499_v4 = vadd.f32 %v4953_v59, %v498_v33 }
 0x1e4   : > { %v510_v30 = vadd.f32 %v4953_v59, %v3943_v20  ;;  %v4958_v26 = vsel %vm363_vm1, %v1701_v39, -inf  ;;  %v2889_v44 = vsel %vm2436_vm4, %v4408_v61, %v2888_v10  ;;  %v4963_v53 = vadd.f32 %v4953_v59, %v3958_v1 }
 0x1e5   : > { %v5761_v18 = vrot.slane %v4685_v55, 1  ;;  %v2890_v12 = vsel %vm2438_vm5, %v2831_v6, %v2889_v44  ;;  %v813_v60 = vcombine.high %v499_v4, %v499_v4  ;;  %v820_v35 = vrot.slane %v499_v4, %v4276_v56 }
 0x1e6   : > { %v864_v17 = vcombine.high %v510_v30, %v510_v30  ;;  %v2891_v25 = vsel %vm2440_vm6, %v4499_v42, %v2890_v12  ;;  %v871_v11 = vrot.slane %v510_v30, %v4276_v56  ;;  %v4979_v33 = vrot.slane %v4963_v53, %v4276_v56 }
 0x1e7   : > { %v4968_v5 = vmax.f32 %v4685_v55, %v5761_v18  ;;  %v2892_v55 = vsel %vm2442_vm7, %v2833_v9, %v2891_v25  ;;  %v827_v38 = vrot.slane %v813_v60, %v4276_v56  ;;  %v828_v62 = vcombine.high %v820_v35, %v820_v35 }
 0x1e8   : > { %v1618_v21 = vsel %vm1281_vm2, %v820_v35, -inf  ;;  %v2893_v29 = vsel %vm2444_vm8, %v2834_v0, %v2892_v55  ;;  %v878_v42 = vrot.slane %v864_v17, %v4276_v56  ;;  %v879_v47 = vcombine.high %v871_v11, %v871_v11 }
 0x1e9   : > { %v1619_v43 = vrot.slane %v1618_v21, 4  ;;  %v2894_v52 = vsel %vm2446_vm9, %v2835_v8, %v2893_v29  ;;  %v829_v6 = vcombine.high %v827_v38, %v827_v38  ;;  %v1625_v39 = vsel %vm1281_vm2, %v828_v62, -inf }
 0x1ea   : > { %v1632_v20 = vsel %vm1281_vm2, %v827_v38, -inf  ;;  %v2920_v10 = vpack.c.b16 %v2894_v52, %v2894_v52  ;;  %v1626_v4 = vrot.slane %v1625_v39, 4  ;;  %v880_v44 = vcombine.high %v878_v42, %v878_v42 }
 0x1eb   : > { %v1620_v9 = vmax.f32 %v1618_v21, %v1619_v43  ;;  %v1633_v30 = vrot.slane %v1632_v20, 4  ;;  %v1639_v1 = vsel %vm1281_vm2, %v829_v6, -inf  ;;  %v1702_v0 = vsel %vm1281_vm2, %v871_v11, -inf }
 0x1ec   : > { %v1709_v18 = vsel %vm1281_vm2, %v879_v47, -inf  ;;  %2932 = vrot.lane.b32.xlu0 %v2920_v10, %s4135_s8  ;;  %v1627_v8 = vmax.f32 %v1625_v39, %v1626_v4  ;;  %v1640_v35 = vrot.slane %v1639_v1, 4  ;;  %v1703_v17 = vrot.slane %v1702_v0, 4 }
 0x1ed   : > { %v1621_v12 = vrot.slane %v1620_v9, 2  ;;  %v1634_v60 = vmax.f32 %v1632_v20, %v1633_v30  ;;  %v1710_v25 = vrot.slane %v1709_v18, 4  ;;  %v1716_v55 = vsel %vm1281_vm2, %v878_v42, -inf }
 0x1ee   : > { %v1723_v38 = vsel %vm1281_vm2, %v880_v44, -inf  ;;  %v1628_v21 = vrot.slane %v1627_v8, 2  ;;  %v1641_v43 = vmax.f32 %v1639_v1, %v1640_v35  ;;  %v1704_v52 = vmax.f32 %v1702_v0, %v1703_v17 }
 0x1ef   : > { %v1622_v62 = vmax.f32 %v1620_v9, %v1621_v12  ;;  %v1635_v29 = vrot.slane %v1634_v60, 2  ;;  %v1711_v11 = vmax.f32 %v1709_v18, %v1710_v25  ;;  %v1717_v6 = vrot.slane %v1716_v55, 4 }
 0x1f0   : > { %v1724_v47 = vrot.slane %v1723_v38, 4  ;;  %v1629_v10 = vmax.f32 %v1627_v8, %v1628_v21  ;;  %v1642_v39 = vrot.slane %v1641_v43, 2  ;;  %v1705_v20 = vrot.slane %v1704_v52, 2 }
 0x1f1   : > { %v1623_v61 = vrot.slane %v1622_v62, 1  ;;  %v1636_v22 = vmax.f32 %v1634_v60, %v1635_v29  ;;  %v1712_v4 = vrot.slane %v1711_v11, 2  ;;  %v1718_v30 = vmax.f32 %v1716_v55, %v1717_v6 }
 0x1f2   : > { %v1725_v7 = vmax.f32 %v1723_v38, %v1724_v47  ;;  %v1630_v42 = vrot.slane %v1629_v10, 1  ;;  %v1643_v44 = vmax.f32 %v1641_v43, %v1642_v39  ;;  %v1706_v9 = vmax.f32 %v1704_v52, %v1705_v20 }
 0x1f3   : > { %v1624_v24 = vmax.f32 %v1622_v62, %v1623_v61  ;;  %v1637_v13 = vrot.slane %v1636_v22, 1  ;;  %v1713_v12 = vmax.f32 %v1711_v11, %v1712_v4  ;;  %v1719_v45 = vrot.slane %v1718_v30, 2 }
 0x1f4   : > { %v1726_v1 = vrot.slane %v1725_v7, 2  ;;  %v1631_v0 = vmax.f32 %v1629_v10, %v1630_v42  ;;  %v1644_v35 = vrot.slane %v1643_v44, 1  ;;  %v1707_v60 = vrot.slane %v1706_v9, 1 }
 0x1f5   : > { %v1638_v18 = vmax.f32 %v1636_v22, %v1637_v13  ;;  %v2250_v17 = vsel %vm363_vm1, %v1624_v24, -inf  ;;  %v1714_v25 = vrot.slane %v1713_v12, 1  ;;  %v1720_v55 = vmax.f32 %v1718_v30, %v1719_v45 }
 0x1f6   : > { %v4997_v8 = vmax.f32 %v2250_v17, %v4937_v37  ;;  %v1645_v38 = vmax.f32 %v1643_v44, %v1644_v35  ;;  %v2253_v61 = vsel %vm363_vm1, %v1631_v0, -inf  ;;  %v1727_v21 = vmax.f32 %v1725_v7, %v1726_v1  ;;  %v5770_v0 = vld [vmem:[#allocation38_spill] sm:$0xff] }
 0x1f7   : > { %v2256_v62 = vsel %vm363_vm1, %v1638_v18, -inf  ;;  %v5002_v29 = vmax.f32 %v2253_v61, %v4940_v15  ;;  %v1708_v22 = vmax.f32 %v1706_v9, %v1707_v60  ;;  %v1715_v43 = vmax.f32 %v1713_v12, %v1714_v25 }
 0x1f8   : > { %5762 = vst [vmem:[#allocation55_spill] sm:$0xff] %v4997_v8  ;;  %v5005_v13 = vmax.f32 %v2256_v62, %v4945_v46  ;;  %v3830_v24 = vpack.c.bf16 %v4997_v8, %v4997_v8  ;;  %v2259_v37 = vsel %vm363_vm1, %v1645_v38, -inf  ;;  %v1721_v45 = vrot.slane %v1720_v55, 1  ;;  %v5772_v38 = vld [vmem:[#allocation37_spill] sm:$0xff] }
 0x1f9   : > { %5763 = vst [vmem:[#allocation56_spill] sm:$0xff] %v5002_v29  ;;  %v1728_v52 = vrot.slane %v1727_v21, 1  ;;  %v5011_v11 = vmax.f32 %v2259_v37, %v4958_v26  ;;  %v3831_v7 = vpack.c.bf16 %v5002_v29, %v5002_v29  ;;  %v5022_v10 = vsel %vm363_vm1, %v1708_v22, -inf }
 0x1fa   : > { %5764 = vst [vmem:[#allocation57_spill] sm:$0xff] %v5005_v13  ;;  %v3832_v15 = vpack.c.bf16 %v5005_v13, %v5005_v13  ;;  %v5017_v46 = vunpack.c.l.b16 %v3830_v24  ;;  %v1722_v6 = vmax.f32 %v1720_v55, %v1721_v45  ;;  %v5025_v39 = vsel %vm363_vm1, %v1715_v43, -inf }
 0x1fb   : > { %v5019_v47 = vmax.f32 %v1727_v21, %v1728_v52  ;;  %v5027_v20 = vunpack.c.l.b16 %v3831_v7  ;;  %v5768_v4 = vcombine.high %v4963_v53, %v4963_v53  ;;  %v1134_v42 = vcombine.high %v4979_v33, %v4979_v33 }
 0x1fc   : > { %5765 = vst [vmem:[#allocation58_spill] sm:$0xff] %v5017_v46  ;;  %v5029_v26 = vunpack.c.l.b16 %v3832_v15  ;;  %v5038_v44 = vsel %vm363_vm1, %v1722_v6, -inf  ;;  %v2122_v9 = vsel %vm1281_vm2, %v4979_v33, -inf  ;;  %v5769_v12 = vrot.slane %v4640_v23, 1  ;;  %v5773_v33 = vld [vmem:[#allocation31_spill] sm:$0xff]  ;;  %v5776_v15 = vld [vmem:[#allocation26_spill] sm:$0xff] }
 0x1fd   : > { %5766 = vst [vmem:[#allocation59_spill] sm:$0xff] %v5027_v20  ;;  %v1133_v30 = vrot.slane %v5768_v4, %v4276_v56  ;;  %v5047_v18 = vmax.f32 %v5770_v0, %v4649_v32  ;;  %v2123_v53 = vrot.slane %v2122_v9, 4  ;;  %v2129_v17 = vsel %vm1281_vm2, %v1134_v42, -inf  ;;  %v5777_v4 = vld [vmem:[#allocation39_spill] sm:$0xff] }
 0x1fe   : > { %5767 = vst [vmem:[#allocation60_spill] sm:$0xff] %v5029_v26  ;;  %v1953_v1 = vmax.f32 %v4640_v23, %v5769_v12  ;;  %v2130_v25 = vrot.slane %v2129_v17, 4  ;;  %v2316_v61 = vsel %vm363_vm1, %v5772_v38, -inf  ;;  %v2317_v62 = vsel %vm363_vm1, %v5773_v33, -inf  ;;  %v562_v38 = vpop.f32.mrf.mxu1 }
 0x1ff   : > { %5771 = vst [vmem:[#allocation38_spill] sm:$0xff] %v5047_v18  ;;  %v1135_v35 = vcombine.high %v1133_v30, %v1133_v30  ;;  %v2136_v60 = vsel %vm1281_vm2, %v1133_v30, -inf  ;;  %v2124_v21 = vmax.f32 %v2122_v9, %v2123_v53  ;;  %v5056_v24 = vmax.f32 %v2316_v61, %v2317_v62 }
 0x200   : > { %v2137_v55 = vrot.slane %v2136_v60, 4  ;;  %v2319_v32 = vsel %vm363_vm1, %v4968_v5, -inf  ;;  %v2131_v22 = vmax.f32 %v2129_v17, %v2130_v25  ;;  %v2320_v45 = vsel %vm363_vm1, %v1953_v1, -inf }
 0x201   : > { %v2143_v23 = vsel %vm1281_vm2, %v1135_v35, -inf  ;;  %5774 = vst [vmem:[#allocation37_spill] sm:$0xff] %v5056_v24  ;;  %v2125_v52 = vrot.slane %v2124_v21, 2  ;;  %v5061_v7 = vmax.f32 %v2319_v32, %v2320_v45  ;;  %v3849_v6 = vpack.c.bf16 %v5776_v15, %v5776_v15 }
 0x202   : > { %v2138_v37 = vmax.f32 %v2136_v60, %v2137_v55  ;;  %v2144_v43 = vrot.slane %v2143_v23, 4  ;;  %v3850_v30 = vpack.c.bf16 %v5777_v4, %v5777_v4  ;;  %v2132_v42 = vrot.slane %v2131_v22, 2  ;;  %v5780_v4 = vld [vmem:[#allocation28_spill] sm:$0xff] }
 0x203   : > { %5775 = vst [vmem:[#allocation31_spill] sm:$0xff] %v5061_v7  ;;  %v3851_v5 = vpack.c.bf16 %v5047_v18, %v5047_v18  ;;  %v2126_v0 = vmax.f32 %v2124_v21, %v2125_v52  ;;  %v3852_v35 = vpack.c.bf16 %v5056_v24, %v5056_v24  ;;  %v3853_v1 = vpack.c.bf16 %v5061_v7, %v5061_v7  ;;  %v5778_v21 = vld [vmem:[#allocation25_spill] sm:$0xff]  ;;  %v5779_v52 = vld [vmem:[#allocation27_spill] sm:$0xff] }
 0x204   : > { %v2139_v9 = vrot.slane %v2138_v37, 2  ;;  %v2145_v12 = vmax.f32 %v2143_v23, %v2144_v43  ;;  %v2839_v53 = vunpack.c.l.b16 %v3849_v6  ;;  %v2133_v17 = vmax.f32 %v2131_v22, %v2132_v42  ;;  %v5781_v22 = vld [vmem:[#allocation30_spill] sm:$0xff] }
 0x205   : > { %v2840_v55 = vunpack.c.l.b16 %v3850_v30  ;;  %v2127_v61 = vrot.slane %v2126_v0, 1  ;;  %v2841_v33 = vunpack.c.l.b16 %v3851_v5  ;;  %v2842_v62 = vunpack.c.l.b16 %v3852_v35  ;;  %v5784_v30 = vld [vmem:[#allocation32_spill] sm:$0xff] }
 0x206   : > { %v2140_v60 = vmax.f32 %v2138_v37, %v2139_v9  ;;  %v2146_v25 = vrot.slane %v2145_v12, 2  ;;  %v2843_v23 = vunpack.c.l.b16 %v3853_v1  ;;  %v2134_v32 = vrot.slane %v2133_v17, 1  ;;  %v5782_v37 = vld [vmem:[#allocation35_spill] sm:$0xff] }
 0x207   : > { %v2895_v24 = vsel %vm2434_vm3, %v5779_v52, %v5778_v21  ;;  %v2128_v18 = vmax.f32 %v2126_v0, %v2127_v61  ;;  %v5080_v42 = vmax.f32 %v5782_v37, %v5781_v22  ;;  %v2223_v9 = vsel %vm363_vm1, %v5784_v30, -inf  ;;  %v5785_v61 = vld [vmem:[#allocation29_spill] sm:$0xff] }
 0x208   : > { %v2141_v43 = vrot.slane %v2140_v60, 1  ;;  %v2147_v45 = vmax.f32 %v2145_v12, %v2146_v25  ;;  %v2896_v6 = vsel %vm2436_vm4, %v5780_v4, %v2895_v24  ;;  %v2135_v5 = vmax.f32 %v2133_v17, %v2134_v32  ;;  %v3959_v25 = vpop.f32.mrf.mxu1  ;;  %v5786_v4 = vld [vmem:[#allocation19_spill] sm:$0xff] }
 0x209   : > { %5783 = vst [vmem:[#allocation25_spill] sm:$0xff] %v5080_v42  ;;  %v2897_v12 = vsel %vm2438_vm5, %v2839_v53, %v2896_v6  ;;  %v5086_v7 = vsel %vm363_vm1, %v2128_v18, -inf  ;;  %v2224_v24 = vsel %vm363_vm1, %v5785_v61, -inf  ;;  %v3817_v21 = vpack.c.bf16 %v5786_v4, %v5786_v4  ;;  %v501_v6 = vpop.f32.mrf.mxu0  ;;  %v5791_v61 = vld [vmem:[#allocation21_spill] sm:$0xff] }
 0x20a   : > { %v2142_v35 = vmax.f32 %v2140_v60, %v2141_v43  ;;  %v2148_v1 = vrot.slane %v2147_v45, 1  ;;  %v2898_v0 = vsel %vm2440_vm6, %v2840_v55, %v2897_v12  ;;  %v5094_v22 = vsel %vm363_vm1, %v2135_v5, -inf  ;;  %v5788_v55 = vld [vmem:[#allocation34_spill] sm:$0xff] }
 0x20b   : > { %v2899_v53 = vsel %vm2442_vm7, %v2841_v33, %v2898_v0  ;;  %v5101_v60 = vmax.f32 %v2223_v9, %v2224_v24  ;;  %v3819_v32 = vpack.c.bf16 %v5788_v55, %v5788_v55  ;;  %v3820_v43 = vpack.c.bf16 %v5080_v42, %v5080_v42  ;;  %v5789_v5 = vld [vmem:[#allocation18_spill] sm:$0xff] }
 0x20c   : > { %v2149_v52 = vmax.f32 %v2147_v45, %v2148_v1  ;;  %v5097_v17 = vsel %vm363_vm1, %v2142_v35, -inf  ;;  %v2900_v18 = vsel %vm2444_vm8, %v2842_v62, %v2899_v53  ;;  %v2807_v30 = vunpack.c.l.b16 %v3817_v21  ;;  %v5790_v35 = vld [vmem:[#allocation20_spill] sm:$0xff]  ;;  %v565_v62 = vpop.f32.mrf.mxu1 }
 0x20d   : > { %5787 = vst [vmem:[#allocation27_spill] sm:$0xff] %v5101_v60  ;;  %v2901_v37 = vsel %vm2446_vm9, %v2843_v23, %v2900_v18  ;;  %v2867_v33 = vsel %vm2434_vm3, %v5790_v35, %v5789_v5  ;;  %v3821_v1 = vpack.c.bf16 %v5101_v60, %v5101_v60  ;;  %v2809_v12 = vunpack.c.l.b16 %v3819_v32 }
 0x20e   : > { %v5108_v45 = vsel %vm363_vm1, %v2149_v52, -inf  ;;  %v2921_v9 = vpack.c.b16 %v2901_v37, %v2901_v37  ;;  %v2810_v0 = vunpack.c.l.b16 %v3820_v43  ;;  %v2868_v24 = vsel %vm2436_vm4, %v5791_v61, %v2867_v33  ;;  %v5792_v43 = vld [vmem:[#allocation36_spill] sm:$0xff] }
 0x20f   : > { %v502_v52 = vadd.f32 %v4953_v59, %v501_v6  ;;  %v563_v53 = vadd.f32 %v4953_v59, %v562_v38  ;;  %v5121_v23 = vadd.f32 %v4953_v59, %v3959_v25  ;;  %v2811_v21 = vunpack.c.l.b16 %v3821_v1 }
 0x210   : > { %2934 = vrot.lane.b32.xlu1 %v2921_v9, %s4135_s8  ;;  %v2869_v18 = vsel %vm2438_vm5, %v2807_v30, %v2868_v24  ;;  %v5126_v37 = vadd.f32 %v4953_v59, %v565_v62  ;;  %v5130_v32 = vmax.f32 %v4787_v2, %v4756_v57 }
 0x211   : > { %v2870_v6 = vsel %vm2440_vm6, %v5792_v43, %v2869_v18  ;;  %v830_v5 = vcombine.high %v502_v52, %v502_v52  ;;  %v837_v38 = vrot.slane %v502_v52, %v4276_v56  ;;  %v1085_v25 = vcombine.high %v563_v53, %v563_v53 }
 0x212   : > { %v2871_v35 = vsel %vm2442_vm7, %v2809_v12, %v2870_v6  ;;  %v1092_v33 = vrot.slane %v563_v53, %v4276_v56  ;;  %v5141_v59 = vrot.slane %v5121_v23, %v4276_v56 }
 0x213   : > { %v2872_v57 = vsel %vm2444_vm8, %v2810_v0, %v2871_v35  ;;  %v844_v2 = vrot.slane %v830_v5, %v4276_v56  ;;  %v845_v62 = vcombine.high %v837_v38, %v837_v38  ;;  %v1646_v9 = vsel %vm1281_vm2, %v837_v38, -inf }
 0x214   : > { %v2873_v1 = vsel %vm2446_vm9, %v2811_v21, %v2872_v57  ;;  %v1647_v61 = vrot.slane %v1646_v9, 4  ;;  %v1099_v12 = vrot.slane %v1085_v25, %v4276_v56  ;;  %v1100_v24 = vcombine.high %v1092_v33, %v1092_v33 }
 0x215   : > { %v2917_v52 = vpack.c.b16 %v2873_v1, %v2873_v1  ;;  %v846_v53 = vcombine.high %v844_v2, %v844_v2  ;;  %v1653_v18 = vsel %vm1281_vm2, %v845_v62, -inf  ;;  %v1660_v43 = vsel %vm1281_vm2, %v844_v2, -inf }
 0x216   : > { %v1648_v6 = vmax.f32 %v1646_v9, %v1647_v61  ;;  %v1654_v30 = vrot.slane %v1653_v18, 4  ;;  %v1661_v0 = vrot.slane %v1660_v43, 4  ;;  %v1101_v35 = vcombine.high %v1099_v12, %v1099_v12 }
 0x217   : > { %2926 = vrot.lane.b32.xlu0 %v2917_v52, %s4135_s8  ;;  %v1667_v5 = vsel %vm1281_vm2, %v846_v53, -inf  ;;  %v2066_v21 = vsel %vm1281_vm2, %v1092_v33, -inf  ;;  %v2073_v38 = vsel %vm1281_vm2, %v1100_v24, -inf  ;;  %v2080_v25 = vsel %vm1281_vm2, %v1099_v12, -inf }
 0x218   : > { %v1649_v57 = vrot.slane %v1648_v6, 2  ;;  %v1655_v1 = vmax.f32 %v1653_v18, %v1654_v30  ;;  %v1662_v15 = vmax.f32 %v1660_v43, %v1661_v0  ;;  %v1668_v62 = vrot.slane %v1667_v5, 4 }
 0x219   : > { %v2067_v60 = vrot.slane %v2066_v21, 4  ;;  %v2074_v2 = vrot.slane %v2073_v38, 4  ;;  %v2081_v9 = vrot.slane %v2080_v25, 4  ;;  %v2087_v61 = vsel %vm1281_vm2, %v1101_v35, -inf }
 0x21a   : > { %v1650_v42 = vmax.f32 %v1648_v6, %v1649_v57  ;;  %v1656_v55 = vrot.slane %v1655_v1, 2  ;;  %v1663_v52 = vrot.slane %v1662_v15, 2  ;;  %v1669_v13 = vmax.f32 %v1667_v5, %v1668_v62 }
 0x21b   : > { %v2068_v53 = vmax.f32 %v2066_v21, %v2067_v60  ;;  %v2075_v29 = vmax.f32 %v2073_v38, %v2074_v2  ;;  %v2082_v33 = vmax.f32 %v2080_v25, %v2081_v9  ;;  %v2088_v8 = vrot.slane %v2087_v61, 4 }
 0x21c   : > { %v1651_v24 = vrot.slane %v1650_v42, 1  ;;  %v1657_v4 = vmax.f32 %v1655_v1, %v1656_v55  ;;  %v1664_v12 = vmax.f32 %v1662_v15, %v1663_v52  ;;  %v1670_v58 = vrot.slane %v1669_v13, 2 }
 0x21d   : > { %v2069_v30 = vrot.slane %v2068_v53, 2  ;;  %v2076_v18 = vrot.slane %v2075_v29, 2  ;;  %v2083_v43 = vrot.slane %v2082_v33, 2  ;;  %v2089_v0 = vmax.f32 %v2087_v61, %v2088_v8 }
 0x21e   : > { %v1652_v31 = vmax.f32 %v1650_v42, %v1651_v24  ;;  %v1658_v26 = vrot.slane %v1657_v4, 1  ;;  %v1665_v20 = vrot.slane %v1664_v12, 1  ;;  %v1671_v35 = vmax.f32 %v1669_v13, %v1670_v58 }
 0x21f   : > { %v2070_v6 = vmax.f32 %v2068_v53, %v2069_v30  ;;  %v2077_v57 = vmax.f32 %v2075_v29, %v2076_v18  ;;  %v2084_v46 = vmax.f32 %v2082_v33, %v2083_v43  ;;  %v2090_v5 = vrot.slane %v2089_v0, 2 }
 0x220   : > { %v1659_v60 = vmax.f32 %v1657_v4, %v1658_v26  ;;  %v1666_v21 = vmax.f32 %v1664_v12, %v1665_v20  ;;  %v1672_v38 = vrot.slane %v1671_v35, 1  ;;  %v2262_v25 = vsel %vm363_vm1, %v1652_v31, -inf }
 0x221   : > { %v5158_v15 = vmax.f32 %v2262_v25, %v5022_v10  ;;  %v2071_v55 = vrot.slane %v2070_v6, 1  ;;  %v2078_v1 = vrot.slane %v2077_v57, 1  ;;  %v2085_v62 = vrot.slane %v2084_v46, 1 }
 0x222   : > { %v5160_v8 = vmax.f32 %v1671_v35, %v1672_v38  ;;  %v2265_v42 = vsel %vm363_vm1, %v1659_v60, -inf  ;;  %v5164_v58 = vsel %vm363_vm1, %v1666_v21, -inf  ;;  %v2091_v29 = vmax.f32 %v2089_v0, %v2090_v5 }
 0x223   : > { %v5167_v13 = vmax.f32 %v2265_v42, %v5025_v39  ;;  %v3834_v31 = vpack.c.bf16 %v5158_v15, %v5158_v15  ;;  %v2072_v20 = vmax.f32 %v2070_v6, %v2071_v55  ;;  %v2079_v10 = vmax.f32 %v2077_v57, %v2078_v1 }
 0x224   : > { %v2086_v26 = vmax.f32 %v2084_v46, %v2085_v62  ;;  %v2092_v4 = vrot.slane %v2091_v29, 1  ;;  %v5793_v2 = vcombine.high %v5121_v23, %v5121_v23  ;;  %v1151_v61 = vcombine.high %v5141_v59, %v5141_v59 }
 0x225   : > { %v5177_v52 = vunpack.c.l.b16 %v3834_v31  ;;  %v2346_v39 = vsel %vm363_vm1, %v2072_v20, -inf  ;;  %v2349_v53 = vsel %vm363_vm1, %v2079_v10, -inf  ;;  %v2150_v33 = vsel %vm1281_vm2, %v5141_v59, -inf }
 0x226   : > { %v1150_v9 = vrot.slane %v5793_v2, %v4276_v56  ;;  %v2093_v24 = vmax.f32 %v2091_v29, %v2092_v4  ;;  %v5184_v46 = vmax.f32 %v2346_v39, %v5086_v7  ;;  %v5187_v12 = vmax.f32 %v2349_v53, %v5094_v22 }
 0x227   : > { %v2352_v23 = vsel %vm363_vm1, %v2086_v26, -inf  ;;  %v2151_v43 = vrot.slane %v2150_v33, 4  ;;  %v2157_v0 = vsel %vm1281_vm2, %v1151_v61, -inf  ;;  %v1109_v20 = vrot.slane %v5126_v37, %v4276_v56 }
 0x228   : > { %v5191_v30 = vmax.f32 %v2352_v23, %v5097_v17  ;;  %v1152_v18 = vcombine.high %v1150_v9, %v1150_v9  ;;  %v2355_v35 = vsel %vm363_vm1, %v2093_v24, -inf  ;;  %v3862_v59 = vpack.c.bf16 %v5184_v46, %v5184_v46 }
 0x229   : > { %v3863_v7 = vpack.c.bf16 %v5187_v12, %v5187_v12  ;;  %v2158_v6 = vrot.slane %v2157_v0, 4  ;;  %v5200_v22 = vmax.f32 %v2355_v35, %v5108_v45  ;;  %v2152_v57 = vmax.f32 %v2150_v33, %v2151_v43 }
 0x22a   : > { %v3864_v17 = vpack.c.bf16 %v5191_v30, %v5191_v30  ;;  %v2164_v5 = vsel %vm1281_vm2, %v1150_v9, -inf  ;;  %v5205_v60 = vunpack.c.l.b16 %v3862_v59  ;;  %v2171_v62 = vsel %vm1281_vm2, %v1152_v18, -inf }
 0x22b   : > { %v5207_v21 = vunpack.c.l.b16 %v3863_v7  ;;  %v2159_v38 = vmax.f32 %v2157_v0, %v2158_v6  ;;  %v2165_v25 = vrot.slane %v2164_v5, 4  ;;  %v2153_v1 = vrot.slane %v2152_v57, 2 }
 0x22c   : > { %v5209_v55 = vunpack.c.l.b16 %v3864_v17  ;;  %v1102_v45 = vcombine.high %v5126_v37, %v5126_v37  ;;  %v2172_v31 = vrot.slane %v2171_v62, 4  ;;  %v2343_v4 = vsel %vm363_vm1, %v4778_v41, -inf }
 0x22d   : > { %v2160_v42 = vrot.slane %v2159_v38, 2  ;;  %v2166_v29 = vmax.f32 %v2164_v5, %v2165_v25  ;;  %v2154_v10 = vmax.f32 %v2152_v57, %v2153_v1  ;;  %v2344_v2 = vsel %vm363_vm1, %v4763_v27, -inf }
 0x22e   : > { %v1116_v26 = vrot.slane %v1102_v45, %v4276_v56  ;;  %v2173_v39 = vmax.f32 %v2171_v62, %v2172_v31  ;;  %v1117_v53 = vcombine.high %v1109_v20, %v1109_v20  ;;  %v2094_v23 = vsel %vm1281_vm2, %v1109_v20, -inf }
 0x22f   : > { %v2161_v9 = vmax.f32 %v2159_v38, %v2160_v42  ;;  %v2167_v61 = vrot.slane %v2166_v29, 2  ;;  %v2155_v33 = vrot.slane %v2154_v10, 1  ;;  %v2095_v56 = vrot.slane %v2094_v23, 4 }
 0x230   : > { %v1118_v24 = vcombine.high %v1116_v26, %v1116_v26  ;;  %v2108_v18 = vsel %vm1281_vm2, %v1116_v26, -inf  ;;  %v2174_v0 = vrot.slane %v2173_v39, 2  ;;  %v2101_v41 = vsel %vm1281_vm2, %v1117_v53, -inf }
 0x231   : > { %v2162_v37 = vrot.slane %v2161_v9, 1  ;;  %v2168_v43 = vmax.f32 %v2166_v29, %v2167_v61  ;;  %v2156_v35 = vmax.f32 %v2154_v10, %v2155_v33  ;;  %v2109_v59 = vrot.slane %v2108_v18, 4 }
 0x232   : > { %v2115_v27 = vsel %vm1281_vm2, %v1118_v24, -inf  ;;  %v2175_v17 = vmax.f32 %v2173_v39, %v2174_v0  ;;  %v2096_v57 = vmax.f32 %v2094_v23, %v2095_v56  ;;  %v2102_v38 = vrot.slane %v2101_v41, 4 }
 0x233   : > { %v2163_v7 = vmax.f32 %v2161_v9, %v2162_v37  ;;  %v2169_v6 = vrot.slane %v2168_v43, 1  ;;  %v2359_v5 = vsel %vm363_vm1, %v2156_v35, -inf  ;;  %v2110_v25 = vmax.f32 %v2108_v18, %v2109_v59 }
 0x234   : > { %v2116_v1 = vrot.slane %v2115_v27, 4  ;;  %v2176_v45 = vrot.slane %v2175_v17, 1  ;;  %v2097_v29 = vrot.slane %v2096_v57, 2  ;;  %v2103_v31 = vmax.f32 %v2101_v41, %v2102_v38 }
 0x235   : > { %v2170_v62 = vmax.f32 %v2168_v43, %v2169_v6  ;;  %v2362_v42 = vsel %vm363_vm1, %v2163_v7, -inf  ;;  %v2111_v20 = vrot.slane %v2110_v25, 2  ;;  %v5227_v26 = vmax.f32 %v2343_v4, %v2344_v2 }
 0x236   : > { %v2117_v10 = vmax.f32 %v2115_v27, %v2116_v1  ;;  %v5229_v61 = vmax.f32 %v2175_v17, %v2176_v45  ;;  %v2098_v39 = vmax.f32 %v2096_v57, %v2097_v29  ;;  %v3857_v53 = vpack.c.bf16 %v4738_v14, %v4738_v14 }
 0x237   : > { %v5232_v9 = vsel %vm363_vm1, %v2170_v62, -inf  ;;  %v2104_v33 = vrot.slane %v2103_v31, 2  ;;  %v2112_v24 = vmax.f32 %v2110_v25, %v2111_v20  ;;  %v3859_v18 = vpack.c.bf16 %v4784_v48, %v4784_v48  ;;  %v5794_v25 = vld [vmem:[#allocation43_spill] sm:$0xff] }
 0x238   : > { %v2118_v23 = vrot.slane %v2117_v10, 2  ;;  %v2099_v37 = vrot.slane %v2098_v39, 1  ;;  %v3860_v4 = vpack.c.bf16 %v5130_v32, %v5130_v32  ;;  %v3861_v2 = vpack.c.bf16 %v5227_v26, %v5227_v26 }
 0x239   : > { %v2847_v43 = vunpack.c.l.b16 %v3857_v53  ;;  %v2105_v0 = vmax.f32 %v2103_v31, %v2104_v33  ;;  %v2113_v56 = vrot.slane %v2112_v24, 1  ;;  %v2849_v41 = vunpack.c.l.b16 %v3859_v18 }
 0x23a   : > { %v2119_v35 = vmax.f32 %v2117_v10, %v2118_v23  ;;  %v2100_v59 = vmax.f32 %v2098_v39, %v2099_v37  ;;  %v2850_v27 = vunpack.c.l.b16 %v3860_v4  ;;  %v2851_v7 = vunpack.c.l.b16 %v3861_v2  ;;  %v5795_v39 = vld [vmem:[#allocation45_spill] sm:$0xff] }
 0x23b   : > { %v2902_v6 = vsel %vm2434_vm3, %v4747_v28, %v4742_v50  ;;  %v2106_v17 = vrot.slane %v2105_v0, 1  ;;  %v2114_v57 = vmax.f32 %v2112_v24, %v2113_v56  ;;  %v5251_v29 = vmax.f32 %v4916_v49, %v4860_v54 }
 0x23c   : > { %v2120_v38 = vrot.slane %v2119_v35, 1  ;;  %v2903_v1 = vsel %vm2436_vm4, %v5794_v25, %v2902_v6  ;;  %v2358_v62 = vsel %vm363_vm1, %v2100_v59, -inf  ;;  %v2247_v31 = vsel %vm363_vm1, %v4912_v40, -inf }
 0x23d   : > { %v2904_v45 = vsel %vm2438_vm5, %v2847_v43, %v2903_v1  ;;  %v2107_v20 = vmax.f32 %v2105_v0, %v2106_v17  ;;  %v5255_v50 = vmax.f32 %v2358_v62, %v2359_v5  ;;  %v2364_v28 = vsel %vm363_vm1, %v2114_v57, -inf }
 0x23e   : > { %v2121_v10 = vmax.f32 %v2119_v35, %v2120_v38  ;;  %v2905_v53 = vsel %vm2440_vm6, %v5795_v39, %v2904_v45  ;;  %v2248_v33 = vsel %vm363_vm1, %v4857_v63, -inf  ;;  %v3825_v24 = vpack.c.bf16 %v4827_v3, %v4827_v3  ;;  %v5798_v39 = vld [vmem:[#allocation60_spill] sm:$0xff] }
 0x23f   : > { %v3827_v54 = vpack.c.bf16 %v4919_v36, %v4919_v36  ;;  %v2361_v40 = vsel %vm363_vm1, %v2107_v20, -inf  ;;  %v3866_v49 = vpack.c.bf16 %v5255_v50, %v5255_v50  ;;  %v2906_v5 = vsel %vm2442_vm7, %v2849_v41, %v2905_v53 }
 0x240   : > { %v5270_v23 = vmax.f32 %v2247_v31, %v2248_v33  ;;  %v5272_v18 = vmax.f32 %v2361_v40, %v2362_v42  ;;  %v2907_v37 = vsel %vm2444_vm8, %v2850_v27, %v2906_v5  ;;  %v3828_v63 = vpack.c.bf16 %v5251_v29, %v5251_v29 }
 0x241   : > { %v2815_v4 = vunpack.c.l.b16 %v3825_v24  ;;  %v2856_v2 = vunpack.c.l.b16 %v3866_v49  ;;  %v2908_v43 = vsel %vm2446_vm9, %v2851_v7, %v2907_v37  ;;  %v2817_v56 = vunpack.c.l.b16 %v3827_v54 }
 0x242   : > { %v3829_v0 = vpack.c.bf16 %v5270_v23, %v5270_v23  ;;  %v2922_v35 = vpack.c.b16 %v2908_v43, %v2908_v43  ;;  %v2818_v59 = vunpack.c.l.b16 %v3828_v63  ;;  %v2874_v42 = vsel %vm2434_vm3, %v4836_v34, %v4825_v16 }
 0x243   : > { %v5285_v41 = vmax.f32 %v5164_v58, %v5038_v44  ;;  %v2875_v6 = vsel %vm2436_vm4, %v4838_v51, %v2874_v42  ;;  %v2271_v7 = vsel %vm363_vm1, %v5160_v8, -inf  ;;  %v2272_v17 = vsel %vm363_vm1, %v5019_v47, -inf  ;;  %v5796_v8 = vld [vmem:[#allocation58_spill] sm:$0xff]  ;;  %v5797_v47 = vld [vmem:[#allocation59_spill] sm:$0xff] }
 0x244   : > { %v2819_v27 = vunpack.c.l.b16 %v3829_v0  ;;  %2936 = vrot.lane.b32.xlu0 %v2922_v35, %s4135_s8  ;;  %v2876_v57 = vsel %vm2438_vm5, %v2815_v4, %v2875_v6  ;;  %v5295_v38 = vmax.f32 %v2271_v7, %v2272_v17  ;;  %v3833_v16 = vpack.c.bf16 %v5011_v11, %v5011_v11  ;;  %v5799_v17 = vld [vmem:[#allocation4_spill] sm:$0xff] }
 0x245   : > { %v3835_v34 = vpack.c.bf16 %v5167_v13, %v5167_v13  ;;  %v2877_v51 = vsel %vm2440_vm6, %v4927_v19, %v2876_v57  ;;  %v3836_v44 = vpack.c.bf16 %v5285_v41, %v5285_v41  ;;  %v2881_v58 = vsel %vm2434_vm3, %v5797_v47, %v5796_v8  ;;  %v5800_v57 = vld [vmem:[#allocation5_spill] sm:$0xff]  ;;  %v5802_v47 = vld [vmem:[#allocation15_spill] sm:$0xff] }
 0x246   : > { %v5309_v25 = vmax.f32 %v2364_v28, %v5232_v9  ;;  %v2878_v1 = vsel %vm2442_vm7, %v2817_v56, %v2877_v51  ;;  %v3837_v62 = vpack.c.bf16 %v5295_v38, %v5295_v38  ;;  %v2823_v45 = vunpack.c.l.b16 %v3833_v16 }
 0x247   : > { %v2825_v31 = vunpack.c.l.b16 %v3835_v34  ;;  %v2879_v20 = vsel %vm2444_vm8, %v2818_v59, %v2878_v1  ;;  %v2826_v19 = vunpack.c.l.b16 %v3836_v44  ;;  %v2882_v53 = vsel %vm2436_vm4, %v5798_v39, %v2881_v58  ;;  %v5801_v44 = vld [vmem:[#allocation6_spill] sm:$0xff]  ;;  %v5803_v58 = vld [vmem:[#allocation16_spill] sm:$0xff]  ;;  %v5804_v1 = vld [vmem:[#allocation7_spill] sm:$0xff] }
 0x248   : > { %v2367_v33 = vsel %vm363_vm1, %v2121_v10, -inf  ;;  %v2880_v24 = vsel %vm2446_vm9, %v2819_v27, %v2879_v20  ;;  %v2827_v54 = vunpack.c.l.b16 %v3837_v62  ;;  %v2883_v9 = vsel %vm2438_vm5, %v2823_v45, %v2882_v53  ;;  %v5805_v45 = vld [vmem:[#allocation17_spill] sm:$0xff]  ;;  %v5806_v20 = vld [vmem:[#allocation46_spill] sm:$0xff]  ;;  %v5808_v53 = vld [vmem:[#allocation12_spill] sm:$0xff] }
 0x249   : > { %v2368_v28 = vsel %vm363_vm1, %v5229_v61, -inf  ;;  %v2918_v40 = vpack.c.b16 %v2880_v24, %v2880_v24  ;;  %v2884_v49 = vsel %vm2440_vm6, %v5177_v52, %v2883_v9  ;;  %v3865_v37 = vpack.c.bf16 %v5200_v22, %v5200_v22  ;;  %v2925_v24 = vpop.permute.xlu0 %2924 }
 0x24a   : > { %v5324_v5 = vmax.f32 %v2367_v33, %v2368_v28  ;;  %v2885_v63 = vsel %vm2442_vm7, %v2825_v31, %v2884_v49  ;;  %v3867_v10 = vpack.c.bf16 %v5272_v18, %v5272_v18  ;;  %v3868_v4 = vpack.c.bf16 %v5309_v25, %v5309_v25  ;;  %v5810_v28 = vld [vmem:[#allocation48_spill] sm:$0xff]  ;;  %v5811_v49 = vld [vmem:[#allocation49_spill] sm:$0xff]  ;;  %2949 = vst.msk [vmem:[#allocation3] sm:$0xf] %vm2948_vm10, %v2925_v24 }
 0x24b   : > { %v2909_v61 = vsel %vm2434_vm3, %v5207_v21, %v5205_v60  ;;  %2928 = vrot.lane.b32.xlu1 %v2918_v40, %s4135_s8  ;;  %v2886_v52 = vsel %vm2444_vm8, %v2826_v19, %v2885_v63  ;;  %v2855_v0 = vunpack.c.l.b16 %v3865_v37  ;;  %v2435_v16 = vsel %vm2434_vm3, %v5800_v57, %v5799_v17  ;;  %v5807_v19 = vld [vmem:[#allocation47_spill] sm:$0xff]  ;;  %v5820_v17 = vld [vmem:[#allocation53_spill] sm:$0xff] }
 0x24c   : > { %v3869_v43 = vpack.c.bf16 %v5324_v5, %v5324_v5  ;;  %v2910_v56 = vsel %vm2436_vm4, %v5209_v55, %v2909_v61  ;;  %v2887_v35 = vsel %vm2446_vm9, %v2827_v54, %v2886_v52  ;;  %v2857_v59 = vunpack.c.l.b16 %v3867_v10  ;;  %v5809_v54 = vld [vmem:[#allocation19_spill] sm:$0xff]  ;;  %v5813_v10 = vld [vmem:[#allocation56_spill] sm:$0xff]  ;;  %v5814_v61 = vld [vmem:[#allocation33_spill] sm:$0xff] }
 0x24d   : > { %v2858_v42 = vunpack.c.l.b16 %v3868_v4  ;;  %v2919_v27 = vpack.c.b16 %v2887_v35, %v2887_v35  ;;  %v2911_v7 = vsel %vm2438_vm5, %v2855_v0, %v2910_v56  ;;  %v2437_v8 = vsel %vm2436_vm4, %v5801_v44, %v2435_v16  ;;  %v5812_v63 = vld [vmem:[#allocation55_spill] sm:$0xff]  ;;  %v5815_v0 = vld [vmem:[#allocation50_spill] sm:$0xff]  ;;  %v5816_v35 = vld [vmem:[#allocation57_spill] sm:$0xff] }
 0x24e   : > { %v2859_v6 = vunpack.c.l.b16 %v3869_v43  ;;  %v2912_v60 = vsel %vm2440_vm6, %v2856_v2, %v2911_v7  ;;  %v2448_v2 = vsel %vm2434_vm3, %v5803_v58, %v5802_v47  ;;  %v2439_v62 = vsel %vm2438_vm5, %v5804_v1, %v2437_v8  ;;  %v5819_v7 = vld [vmem:[#allocation10_spill] sm:$0xff]  ;;  %v5823_v44 = vld [vmem:[#allocation9_spill] sm:$0xff] }
 0x24f   : > { %2930 = vrot.lane.b32.xlu1 %v2919_v27, %s4135_s8  ;;  %v2913_v21 = vsel %vm2442_vm7, %v2857_v59, %v2912_v60  ;;  %v2449_v31 = vsel %vm2436_vm4, %v5805_v45, %v2448_v2  ;;  %v2455_v39 = vsel %vm2434_vm3, %v5807_v19, %v5806_v20  ;;  %v2441_v33 = vsel %vm2440_vm6, %v5808_v53, %v2439_v62  ;;  %v5824_v58 = vld [vmem:[#allocation22_spill] sm:$0xff]  ;;  %v5825_v2 = vld [vmem:[#allocation23_spill] sm:$0xff]  ;;  %v5830_v24 = vld [vmem:[#allocation41_spill] sm:$0xff] }
 0x250   : > { %v2914_v55 = vsel %vm2444_vm8, %v2858_v42, %v2913_v21  ;;  %v2450_v9 = vsel %vm2438_vm5, %v5809_v54, %v2449_v31  ;;  %v2456_v40 = vsel %vm2436_vm4, %v5810_v28, %v2455_v39  ;;  %v2443_v37 = vsel %vm2442_vm7, %v5811_v49, %v2441_v33  ;;  %v5817_v42 = vld [vmem:[#allocation34_spill] sm:$0xff]  ;;  %v5826_v45 = vld [vmem:[#allocation27_spill] sm:$0xff]  ;;  %v5828_v39 = vld [vmem:[#allocation24_spill] sm:$0xff] }
 0x251   : > { %v2915_v34 = vsel %vm2446_vm9, %v2859_v6, %v2914_v55  ;;  %v2462_v4 = vsel %vm2434_vm3, %v5813_v10, %v5812_v63  ;;  %v2451_v52 = vsel %vm2440_vm6, %v5814_v61, %v2450_v9  ;;  %v2457_v43 = vsel %vm2438_vm5, %v4827_v3, %v2456_v40  ;;  %v5818_v6 = vld [vmem:[#allocation8_spill] sm:$0xff]  ;;  %v5821_v3 = vld [vmem:[#allocation51_spill] sm:$0xff]  ;;  %v5831_v54 = vld [vmem:[#allocation13_spill] sm:$0xff] }
 0x252   : > { %v2923_v51 = vpack.c.b16 %v2915_v34, %v2915_v34  ;;  %v2445_v56 = vsel %vm2444_vm8, %v5815_v0, %v2443_v37  ;;  %v2463_v59 = vsel %vm2436_vm4, %v5816_v35, %v2462_v4  ;;  %v2452_v27 = vsel %vm2442_vm7, %v5817_v42, %v2451_v52  ;;  %v5822_v34 = vld [vmem:[#allocation25_spill] sm:$0xff]  ;;  %v5827_v31 = vld [vmem:[#allocation11_spill] sm:$0xff]  ;;  %v5829_v33 = vld [vmem:[#allocation40_spill] sm:$0xff] }
 0x253   : > { %v2469_v60 = vsel %vm2434_vm3, %v5819_v7, %v5818_v6  ;;  %v2458_v57 = vsel %vm2440_vm6, %v5820_v17, %v2457_v43  ;;  %v2447_v16 = vsel %vm2446_vm9, %v5821_v3, %v2445_v56  ;;  %v2464_v55 = vsel %vm2438_vm5, %v5011_v11, %v2463_v59  ;;  %v5832_v40 = vld [vmem:[#allocation26_spill] sm:$0xff]  ;;  %v5835_v61 = vld [vmem:[#allocation39_spill] sm:$0xff] }
 0x254   : > { %2938 = vrot.lane.b32.xlu1 %v2923_v51, %s4135_s8  ;;  %v2453_v51 = vsel %vm2444_vm8, %v5822_v34, %v2452_v27  ;;  %v2470_v8 = vsel %vm2436_vm4, %v5823_v44, %v2469_v60  ;;  %v2459_v47 = vsel %vm2442_vm7, %v4919_v36, %v2458_v57  ;;  %v2476_v1 = vsel %vm2434_vm3, %v5825_v2, %v5824_v58  ;;  %v5833_v37 = vld [vmem:[#allocation42_spill] sm:$0xff]  ;;  %v5841_v60 = vld [vmem:[#allocation31_spill] sm:$0xff] }
 0x255   : > { %v2465_v62 = vsel %vm2440_vm6, %v5158_v15, %v2464_v55  ;;  %v2454_v11 = vsel %vm2446_vm9, %v5826_v45, %v2453_v51  ;;  %v2471_v20 = vsel %vm2438_vm5, %v5827_v31, %v2470_v8  ;;  %v2460_v19 = vsel %vm2444_vm8, %v5251_v29, %v2459_v47  ;;  %v5834_v63 = vld [vmem:[#allocation14_spill] sm:$0xff] }
 0x256   : > { %v2477_v36 = vsel %vm2436_vm4, %v5828_v39, %v2476_v1  ;;  %v2466_v53 = vsel %vm2442_vm7, %v5167_v13, %v2465_v62  ;;  %v2483_v15 = vsel %vm2434_vm3, %v5830_v24, %v5829_v33  ;;  %v2472_v9 = vsel %vm2440_vm6, %v5831_v54, %v2471_v20  ;;  %v5837_v35 = vld [vmem:[#allocation38_spill] sm:$0xff] }
 0x257   : > { %v2461_v28 = vsel %vm2446_vm9, %v5270_v23, %v2460_v19  ;;  %v2478_v49 = vsel %vm2438_vm5, %v5832_v40, %v2477_v36  ;;  %v2467_v29 = vsel %vm2444_vm8, %v5285_v41, %v2466_v53  ;;  %v2484_v13 = vsel %vm2436_vm4, %v5833_v37, %v2483_v15  ;;  %v5836_v41 = vld [vmem:[#allocation52_spill] sm:$0xff]  ;;  %v5839_v42 = vld [vmem:[#allocation54_spill] sm:$0xff] }
 0x258   : > { %v2473_v10 = vsel %vm2442_vm7, %v5834_v63, %v2472_v9  ;;  %v2490_v4 = vsel %vm2434_vm3, %v5187_v12, %v5184_v46  ;;  %v2479_v23 = vsel %vm2440_vm6, %v5835_v61, %v2478_v49  ;;  %v2468_v52 = vsel %vm2446_vm9, %v5295_v38, %v2467_v29  ;;  %v5838_v46 = vld [vmem:[#allocation44_spill] sm:$0xff] }
 0x259   : > { %v2485_v43 = vsel %vm2438_vm5, %v4738_v14, %v2484_v13  ;;  %v2474_v0 = vsel %vm2444_vm8, %v5836_v41, %v2473_v10  ;;  %v2491_v56 = vsel %vm2436_vm4, %v5191_v30, %v2490_v4  ;;  %v2480_v59 = vsel %vm2442_vm7, %v5837_v35, %v2479_v23  ;;  %v5840_v14 = vld [vmem:[#allocation37_spill] sm:$0xff] }
 0x25a   : > { %v2486_v12 = vsel %vm2440_vm6, %v5838_v46, %v2485_v43  ;;  %v2475_v27 = vsel %vm2446_vm9, %v5839_v42, %v2474_v0  ;;  %v2492_v38 = vsel %vm2438_vm5, %v5200_v22, %v2491_v56  ;;  %v2481_v6 = vsel %vm2444_vm8, %v5840_v14, %v2480_v59 }
 0x25b   : > { %v2487_v7 = vsel %vm2442_vm7, %v4784_v48, %v2486_v12  ;;  %v2493_v30 = vsel %vm2440_vm6, %v5255_v50, %v2492_v38 }
 0x25c   : > { %v2488_v17 = vsel %vm2444_vm8, %v5130_v32, %v2487_v7  ;;  %v2494_v22 = vsel %vm2442_vm7, %v5272_v18, %v2493_v30 }
 0x25d   : > { %v2489_v57 = vsel %vm2446_vm9, %v5227_v26, %v2488_v17  ;;  %v2495_v48 = vsel %vm2444_vm8, %v5309_v25, %v2494_v22 }
 0x25e   : > { %v2933_v21 = vpop.permute.xlu0 %2932  ;;  %v2496_v50 = vsel %vm2446_vm9, %v5324_v5, %v2495_v48 }
 0x25f   : > { %2953 = vst.msk [vmem:[#allocation3 + $0x10] sm:$0xf] %vm2948_vm10, %v2933_v21  ;;  %v2482_v21 = vsel %vm2446_vm9, %v5841_v60, %v2481_v6 }
 0x262   : > { %2505 = vxpose.xlu0.b32.start [1/8] (short) (narrow) %v2447_v16, 8 }
 0x266   : > { %2506 = vxpose.xlu0.b32.cont [2/8] (short) (narrow) %v2454_v11, 8 }
 0x26a   : > { %2507 = vxpose.xlu0.b32.cont [3/8] (short) (narrow) %v2461_v28, 8 }
 0x26e   : > { %2508 = vxpose.xlu0.b32.cont [4/8] (short) (narrow) %v2468_v52, 8 }
 0x272   : > { %2509 = vxpose.xlu0.b32.cont [5/8] (short) (narrow) %v2475_v27, 8 }
 0x276   : > { %2510 = vxpose.xlu0.b32.cont [6/8] (short) (narrow) %v2482_v21, 8 }
 0x27a   : > { %2511 = vxpose.xlu0.b32.cont [7/8] (short) (narrow) %v2489_v57, 8 }
 0x27e   : > { %2512 = vxpose.xlu0.b32.end [8/8] (short) (narrow) %v2496_v50, 8 }
 0x282   : > { %v2935_v3 = vpop.permute.xlu1 %2934 }
 0x283   : > { %2954 = vst.msk [vmem:[#allocation3 + $0x14] sm:$0xf] %vm2948_vm10, %v2935_v3 }
 0x289   : > { %v2927_v16 = vpop.permute.xlu0 %2926 }
 0x28a   : > { %2950 = vst.msk [vmem:[#allocation3 + $0x4] sm:$0xf] %vm2948_vm10, %v2927_v16 }
 0x2b6   : > { %v2937_v32 = vpop.permute.xlu0 %2936 }
 0x2b7   : > { %2955 = vst.msk [vmem:[#allocation3 + $0x18] sm:$0xf] %vm2948_vm10, %v2937_v32 }
 0x2bd   : > { %v2929_v18 = vpop.permute.xlu1 %2928 }
 0x2be   : > { %2951 = vst.msk [vmem:[#allocation3 + $0x8] sm:$0xf] %vm2948_vm10, %v2929_v18 }
 0x2c1   : > { %v2931_v26 = vpop.permute.xlu1 %2930 }
 0x2c2   : > { %2952 = vst.msk [vmem:[#allocation3 + $0xc] sm:$0xf] %vm2948_vm10, %v2931_v26 }
 0x2c6   : > { %v2939_v25 = vpop.permute.xlu1 %2938 }
 0x2c7   : > { %2956 = vst.msk [vmem:[#allocation3 + $0x1c] sm:$0xf] %vm2948_vm10, %v2939_v25 }
 0x2de   : > { %v2521_v5 = vpop.trf.xlu0 }
 0x2df   : > { %v2537_v55 = vpack.c.bf16 %v2521_v5, %v2521_v5 }
 0x2e1   : > { %2539 = vst.msk [vmem:[#allocation2] sm:$0x1] %vm2538_vm11, %v2537_v55 }
 0x2e2 PF: > { %v2983_v34 = vld [vmem:[%s5658_s1] sm:$0x3]  ;;  %vm3016_vm12 = vcmask 1041408   ;;  %s3764_s14 = sshll.u32 %s4116_s24, 7  ;;  %vm2991_vm13 = vcmask 31744   ;;  %vm3151_vm14 = vcmask 1040384  }
 0x2e3   : > { %4042 = vmatprep.subr.msk.bf16.mxu0 %vm3016_vm12, %v2983_v34  ;;  %v3018_v51 = vsel %vm3016_vm12, %v2983_v34, 0  ;;  %s5483_s15 = scalar_lea.vmem %s4212_s13, %s3764_s14  ;;  %v4090_v63 = vld [vmem:[#allocation3 + $0x18] sm:$0xff]   ;;  %v4091_v10 = vld [vmem:[#allocation3 + $0x10] sm:$0xff]   ;;  %v4092_v4 = vld [vmem:[#allocation3 + $0x8] sm:$0xff]   ;;  %vm3126_vm15 = vcmask 15360   ;;  %vm3292_vm0 = vcmask 523264  }
 0x2e4   : > { %3961 = vmatpush3.bf16.msra.mxu0 %v3018_v51  ;;  %v5486_v44 = vld [vmem:[%s5483_s15] sm:$0xff]  ;;  %v5489_v8 = vld [vmem:[%s5483_s15 + $0x8] sm:$0xff]  ;;  %v5492_v47 = vld [vmem:[%s5483_s15 + $0x10] sm:$0xff] }
 0x2e5   : > { %v2975_v58 = vpack.c.bf16 %v5489_v8, %v5486_v44  ;;  %v5497_v2 = vld [vmem:[%s5483_s15 + $0x18] sm:$0xff]  ;;  %v5500_v1 = vld [vmem:[%s5483_s15 + $0x20] sm:$0xff]  ;;  %v5503_v62 = vld [vmem:[%s5483_s15 + $0x28] sm:$0xff]  ;;  %3996 = vmatprep.subr.bf16.mxu0 %v4090_v63 }
 0x2e6   : > { %v2976_v45 = vpack.c.bf16 %v5497_v2, %v5492_v47  ;;  %v2977_v11 = vpack.c.bf16 %v5503_v62, %v5500_v1  ;;  %v5512_v31 = vld [vmem:[%s5483_s15 + $0x30] sm:$0xff]  ;;  %v5515_v20 = vld [vmem:[%s5483_s15 + $0x38] sm:$0xff]  ;;  %v5518_v19 = vld [vmem:[%s5483_s15 + $0x40] sm:$0xff] }
 0x2e7   : > { %3962 = vmatprep.mubr.msk.bf16.mxu0 %vm2991_vm13, %v2975_v58  ;;  %v5522_v39 = vld [vmem:[%s5483_s15 + $0x48] sm:$0xff]  ;;  %v2978_v36 = vpack.c.bf16 %v5515_v20, %v5512_v31  ;;  %v5531_v33 = vld [vmem:[%s5483_s15 + $0x50] sm:$0xff]  ;;  %v5534_v24 = vld [vmem:[%s5483_s15 + $0x58] sm:$0xff] }
 0x2e8   : > { %3963 = vmatmul.mubr.msk.bf16.vlgmr.msra.gmra.mxu0 %vm2991_vm13, %v2976_v45  ;;  %v2979_v53 = vpack.c.bf16 %v5522_v39, %v5518_v19  ;;  %v5537_v15 = vld [vmem:[%s5483_s15 + $0x60] sm:$0xff]  ;;  %v5540_v54 = vld [vmem:[%s5483_s15 + $0x68] sm:$0xff]  ;;  %v2980_v9 = vpack.c.bf16 %v5534_v24, %v5531_v33  ;;  %v5549_v40 = vld [vmem:[%s5483_s15 + $0x70] sm:$0xff] }
 0x2e9   : > { %3966 = vmatprep.mubr.msk.bf16.mxu0 %vm2991_vm13, %v2977_v11  ;;  %v2981_v28 = vpack.c.bf16 %v5540_v54, %v5537_v15  ;;  %v5552_v49 = vld [vmem:[%s5483_s15 + $0x78] sm:$0xff]  ;;  %v3125_v37 = vld [vmem:[#allocation2] sm:$0x1]  ;;  %3997 = vmatpush3.bf16.msra.mxu0 %v4090_v63 }
 0x2ea   : > { %v2982_v29 = vpack.c.bf16 %v5552_v49, %v5549_v40  ;;  %4043 = vmatprep.subr.msk.bf16.mxu1 %vm3151_vm14, %v3125_v37  ;;  %v3153_v13 = vsel %vm3151_vm14, %v3125_v37, 0  ;;  %3998 = vmatprep.subr.bf16.mxu0 %v4091_v10  ;;  %v3765_v43 = vld [vmem:[%s5659_s2] ss:$0 sm:$0xff] }
 0x2eb   : > { %3979 = vmatpush3.bf16.msra.mxu1 %v3153_v13 }
 0x2ed   : > { %3999 = vmatpush3.bf16.msra.mxu0 %v4091_v10 }
 0x2ee   : > { %4000 = vmatprep.subr.bf16.mxu0 %v4092_v4 }
 0x2f0   : > { %3967 = vmatmul.mubr.msk.bf16.gmra.mxu0 %vm2991_vm13, %v2978_v36 }
 0x2f1   : > { %3970 = vmatprep.mubr.msk.bf16.mxu0 %vm2991_vm13, %v2979_v53  ;;  %4001 = vmatpush3.bf16.msra.mxu0 %v4092_v4 }
 0x2f8   : > { %3971 = vmatmul.mubr.msk.bf16.gmra.mxu0 %vm2991_vm13, %v2980_v9 }
 0x2f9   : > { %3974 = vmatprep.mubr.msk.bf16.mxu0 %vm2991_vm13, %v2981_v28  ;;  %v4093_v28 = vld [vmem:[#allocation3] sm:$0xff]  }
 0x2fa   : > { %4002 = vmatprep.subr.bf16.mxu0 %v4093_v28 }
 0x2fb   : > { %4003 = vmatpush3.bf16.msra.mxu0 %v4093_v28 }
 0x300   : > { %3975 = vmatmul.mubr.msk.bf16.gmra.mxu0 %vm2991_vm13, %v2982_v29  ;;  %v3422_v29 = vld [vmem:[%s5662_s5] sm:$0x1] }
 0x301   : > { %4044 = vmatprep.subr.msk.bf16.mxu1 %vm3151_vm14, %v3422_v29  ;;  %v3455_v37 = vsel %vm3151_vm14, %v3422_v29, 0 }
 0x3a8   : > { %v3964_v61 = vpop.f32.mrf.mxu0 }
 0x3a9   : > { %v3063_v59 = vadd.f32 %v3964_v61, %v3765_v43 }
 0x3aa   : > { %v3054_v23 = vpop.f32.mrf.mxu0 }
 0x3ab   : > { %v3055_v56 = vadd.f32 %v3765_v43, %v3054_v23 }
 0x3ac   : > { %v3965_v52 = vpop.f32.mrf.mxu0 }
 0x3ad   : > { %v3066_v41 = vadd.f32 %v3965_v52, %v3765_v43 }
 0x3ae   : > { %v3057_v0 = vpop.f32.mrf.mxu0 }
 0x3af   : > { %v3058_v35 = vadd.f32 %v3765_v43, %v3057_v0  ;;  %v3118_v42 = vpack.c.bf16 %v3066_v41, %v3063_v59 }
 0x3b0   : > { %v3968_v46 = vpop.f32.mrf.mxu0 }
 0x3b1   : > { %v3117_v12 = vpack.c.bf16 %v3058_v35, %v3055_v56  ;;  %v3079_v60 = vadd.f32 %v3968_v46, %v3765_v43 }
 0x3b2   : > { %v3070_v27 = vpop.f32.mrf.mxu0 }
 0x3b3   : > { %3980 = vmatprep.mubr.msk.bf16.mxu1 %vm3126_vm15, %v3117_v12  ;;  %v3071_v7 = vadd.f32 %v3765_v43, %v3070_v27 }
 0x3b4   : > { %v3969_v38 = vpop.f32.mrf.mxu0  ;;  %3981 = vmatmul.mubr.msk.bf16.vlgmr.msra.gmra.mxu1 %vm3126_vm15, %v3118_v42 }
 0x3b5   : > { %v3082_v14 = vadd.f32 %v3969_v38, %v3765_v43  ;;  %4021 = vmatpush3.bf16.msra.mxu1 %v3455_v37 }
 0x3b6   : > { %v3073_v6 = vpop.f32.mrf.mxu0 }
 0x3b7   : > { %v3074_v30 = vadd.f32 %v3765_v43, %v3073_v6  ;;  %v3120_v22 = vpack.c.bf16 %v3082_v14, %v3079_v60 }
 0x3b8   : > { %v3972_v21 = vpop.f32.mrf.mxu0 }
 0x3b9   : > { %v3119_v17 = vpack.c.bf16 %v3074_v30, %v3071_v7  ;;  %v3095_v18 = vadd.f32 %v3972_v21, %v3765_v43 }
 0x3ba   : > { %v3086_v57 = vpop.f32.mrf.mxu0 }
 0x3bb   : > { %3984 = vmatprep.mubr.msk.bf16.mxu1 %vm3126_vm15, %v3119_v17  ;;  %v3087_v16 = vadd.f32 %v3765_v43, %v3086_v57 }
 0x3bc   : > { %v3973_v48 = vpop.f32.mrf.mxu0  ;;  %3985 = vmatmul.mubr.msk.bf16.gmra.mxu1 %vm3126_vm15, %v3120_v22 }
 0x3bd   : > { %v3098_v50 = vadd.f32 %v3973_v48, %v3765_v43 }
 0x3be   : > { %v3089_v3 = vpop.f32.mrf.mxu0 }
 0x3bf   : > { %v3090_v32 = vadd.f32 %v3765_v43, %v3089_v3  ;;  %v3122_v5 = vpack.c.bf16 %v3098_v50, %v3095_v18 }
 0x3c0   : > { %v3976_v26 = vpop.f32.mrf.mxu0 }
 0x3c1   : > { %v3121_v25 = vpack.c.bf16 %v3090_v32, %v3087_v16  ;;  %v3111_v36 = vadd.f32 %v3976_v26, %v3765_v43 }
 0x3c2   : > { %v3102_v55 = vpop.f32.mrf.mxu0 }
 0x3c3   : > { %3988 = vmatprep.mubr.msk.bf16.mxu1 %vm3126_vm15, %v3121_v25  ;;  %v3103_v45 = vadd.f32 %v3765_v43, %v3102_v55 }
 0x3c4   : > { %v3977_v34 = vpop.f32.mrf.mxu0  ;;  %3989 = vmatmul.mubr.msk.bf16.gmra.mxu1 %vm3126_vm15, %v3122_v5 }
 0x3c5   : > { %v3114_v51 = vadd.f32 %v3977_v34, %v3765_v43 }
 0x3c6   : > { %v3105_v58 = vpop.f32.mrf.mxu0 }
 0x3c7   : > { %v3106_v11 = vadd.f32 %v3765_v43, %v3105_v58  ;;  %v3124_v9 = vpack.c.bf16 %v3114_v51, %v3111_v36 }
 0x3c9   : > { %v3123_v53 = vpack.c.bf16 %v3106_v11, %v3103_v45 }
 0x3cb   : > { %3992 = vmatprep.mubr.msk.bf16.mxu1 %vm3126_vm15, %v3123_v53 }
 0x3cc   : > { %3993 = vmatmul.mubr.msk.bf16.gmra.mxu1 %vm3126_vm15, %v3124_v9 }
 0x474   : > { %v3982_v13 = vpop.f32.mrf.mxu1 }
 0x476   : > { %v3189_v63 = vpop.f32.mrf.mxu1 }
 0x478   : > { %v3983_v10 = vpop.f32.mrf.mxu1 }
 0x479   : > { %v3253_v23 = vpack.c.bf16 %v3983_v10, %v3982_v13  ;;  %v3794_v13 = vld [vmem:[%s5663_s6] ss:$0 sm:$0xff] }
 0x47a   : > { %v3192_v4 = vpop.f32.mrf.mxu1 }
 0x47b   : > { %v3252_v61 = vpack.c.bf16 %v3192_v4, %v3189_v63 }
 0x47c   : > { %v3986_v52 = vpop.f32.mrf.mxu1 }
 0x47d   : > { %4004 = vmatprep.mubr.msk.bf16.mxu0 %vm3292_vm0, %v3252_v61 }
 0x47e   : > { %v3205_v43 = vpop.f32.mrf.mxu1  ;;  %4005 = vmatmul.mubr.msk.bf16.vlgmr.msra.gmra.mxu0 %vm3292_vm0, %v3253_v23 }
 0x480   : > { %v3987_v41 = vpop.f32.mrf.mxu1 }
 0x481   : > { %v3255_v35 = vpack.c.bf16 %v3987_v41, %v3986_v52 }
 0x482   : > { %v3208_v0 = vpop.f32.mrf.mxu1 }
 0x483   : > { %v3254_v56 = vpack.c.bf16 %v3208_v0, %v3205_v43 }
 0x484   : > { %v3990_v59 = vpop.f32.mrf.mxu1 }
 0x485   : > { %4008 = vmatprep.mubr.msk.bf16.mxu0 %vm3292_vm0, %v3254_v56 }
 0x486   : > { %v3221_v46 = vpop.f32.mrf.mxu1  ;;  %4009 = vmatmul.mubr.msk.bf16.gmra.mxu0 %vm3292_vm0, %v3255_v35 }
 0x488   : > { %v3991_v12 = vpop.f32.mrf.mxu1 }
 0x489   : > { %v3257_v38 = vpack.c.bf16 %v3991_v12, %v3990_v59 }
 0x48a   : > { %v3224_v42 = vpop.f32.mrf.mxu1 }
 0x48b   : > { %v3256_v27 = vpack.c.bf16 %v3224_v42, %v3221_v46 }
 0x48c   : > { %v3994_v14 = vpop.f32.mrf.mxu1 }
 0x48d   : > { %4012 = vmatprep.mubr.msk.bf16.mxu0 %vm3292_vm0, %v3256_v27 }
 0x48e   : > { %v3237_v6 = vpop.f32.mrf.mxu1  ;;  %4013 = vmatmul.mubr.msk.bf16.gmra.mxu0 %vm3292_vm0, %v3257_v38 }
 0x490   : > { %v3995_v7 = vpop.f32.mrf.mxu1 }
 0x491   : > { %v3259_v21 = vpack.c.bf16 %v3995_v7, %v3994_v14 }
 0x492   : > { %v3240_v30 = vpop.f32.mrf.mxu1 }
 0x493   : > { %v3258_v60 = vpack.c.bf16 %v3240_v30, %v3237_v6 }
 0x495   : > { %4016 = vmatprep.mubr.msk.bf16.mxu0 %vm3292_vm0, %v3258_v60 }
 0x496   : > { %4017 = vmatmul.mubr.msk.bf16.gmra.mxu0 %vm3292_vm0, %v3259_v21 }
 0x53e   : > { %v4006_v17 = vpop.f32.mrf.mxu0 }
 0x540   : > { %v3351_v22 = vpop.f32.mrf.mxu0 }
 0x542   : > { %v4007_v57 = vpop.f32.mrf.mxu0 }
 0x543   : > { %v3415_v3 = vpack.c.bf16 %v4007_v57, %v4006_v17 }
 0x544   : > { %v3354_v48 = vpop.f32.mrf.mxu0 }
 0x545   : > { %v3414_v50 = vpack.c.bf16 %v3354_v48, %v3351_v22 }
 0x546   : > { %v4010_v16 = vpop.f32.mrf.mxu0 }
 0x547   : > { %4022 = vmatprep.mubr.msk.bf16.mxu1 %vm3126_vm15, %v3414_v50 }
 0x548   : > { %v3367_v32 = vpop.f32.mrf.mxu0  ;;  %4023 = vmatmul.mubr.msk.bf16.vlgmr.msra.gmra.mxu1 %vm3126_vm15, %v3415_v3 }
 0x54a   : > { %v4011_v18 = vpop.f32.mrf.mxu0 }
 0x54b   : > { %v3417_v5 = vpack.c.bf16 %v4011_v18, %v4010_v16 }
 0x54c   : > { %v3370_v26 = vpop.f32.mrf.mxu0 }
 0x54d   : > { %v3416_v25 = vpack.c.bf16 %v3370_v26, %v3367_v32 }
 0x54e   : > { %v4014_v55 = vpop.f32.mrf.mxu0 }
 0x54f   : > { %4026 = vmatprep.mubr.msk.bf16.mxu1 %vm3126_vm15, %v3416_v25 }
 0x550   : > { %v3383_v34 = vpop.f32.mrf.mxu0  ;;  %4027 = vmatmul.mubr.msk.bf16.gmra.mxu1 %vm3126_vm15, %v3417_v5 }
 0x552   : > { %v4015_v51 = vpop.f32.mrf.mxu0 }
 0x553   : > { %v3419_v11 = vpack.c.bf16 %v4015_v51, %v4014_v55 }
 0x554   : > { %v3386_v58 = vpop.f32.mrf.mxu0 }
 0x555   : > { %v3418_v45 = vpack.c.bf16 %v3386_v58, %v3383_v34 }
 0x556   : > { %v4018_v36 = vpop.f32.mrf.mxu0 }
 0x557   : > { %4030 = vmatprep.mubr.msk.bf16.mxu1 %vm3126_vm15, %v3418_v45 }
 0x558   : > { %v3399_v53 = vpop.f32.mrf.mxu0  ;;  %4031 = vmatmul.mubr.msk.bf16.gmra.mxu1 %vm3126_vm15, %v3419_v11 }
 0x55a   : > { %v4019_v9 = vpop.f32.mrf.mxu0 }
 0x55b   : > { %v3421_v37 = vpack.c.bf16 %v4019_v9, %v4018_v36 }
 0x55c   : > { %v3402_v28 = vpop.f32.mrf.mxu0 }
 0x55d   : > { %v3420_v29 = vpack.c.bf16 %v3402_v28, %v3399_v53 }
 0x55f   : > { %4034 = vmatprep.mubr.msk.bf16.mxu1 %vm3126_vm15, %v3420_v29 }
 0x560   : > { %4035 = vmatmul.mubr.msk.bf16.gmra.mxu1 %vm3126_vm15, %v3421_v37 }
 0x608   : > { %v4024_v63 = vpop.f32.mrf.mxu1 }
 0x609   : > { %v3500_v10 = vadd.f32 %v4024_v63, %v3794_v13 }
 0x60a   : > { %v3491_v4 = vpop.f32.mrf.mxu1 }
 0x60b   : > { %v3556_v61 = vadd.f32 %v3500_v10, %v5492_v47  ;;  %v3492_v23 = vadd.f32 %v3794_v13, %v3491_v4 }
 0x60c   : > { %v4025_v52 = vpop.f32.mrf.mxu1 }
 0x60d   : > { %3572 = vst.msk [vmem:[%s4217_s18 + $0x10] sm:$0xff] %vm2991_vm13, %v3556_v61  ;;  %v3554_v43 = vadd.f32 %v3492_v23, %v5486_v44  ;;  %v3503_v41 = vadd.f32 %v4025_v52, %v3794_v13 }
 0x60e   : > { %v3494_v0 = vpop.f32.mrf.mxu1 }
 0x60f   : > { %3570 = vst.msk [vmem:[%s4217_s18] sm:$0xff] %vm2991_vm13, %v3554_v43  ;;  %v3557_v56 = vadd.f32 %v3503_v41, %v5497_v2  ;;  %v3495_v35 = vadd.f32 %v3794_v13, %v3494_v0 }
 0x610   : > { %v4028_v59 = vpop.f32.mrf.mxu1 }
 0x611   : > { %3573 = vst.msk [vmem:[%s4217_s18 + $0x18] sm:$0xff] %vm2991_vm13, %v3557_v56  ;;  %v3555_v47 = vadd.f32 %v3495_v35, %v5489_v8  ;;  %v3516_v46 = vadd.f32 %v4028_v59, %v3794_v13 }
 0x612   : > { %v3507_v12 = vpop.f32.mrf.mxu1 }
 0x613   : > { %3571 = vst.msk [vmem:[%s4217_s18 + $0x8] sm:$0xff] %vm2991_vm13, %v3555_v47  ;;  %v3560_v44 = vadd.f32 %v3516_v46, %v5512_v31  ;;  %v3508_v42 = vadd.f32 %v3794_v13, %v3507_v12 }
 0x614   : > { %v4029_v27 = vpop.f32.mrf.mxu1 }
 0x615   : > { %3576 = vst.msk [vmem:[%s4217_s18 + $0x30] sm:$0xff] %vm2991_vm13, %v3560_v44  ;;  %v3558_v2 = vadd.f32 %v3508_v42, %v5500_v1  ;;  %v3519_v38 = vadd.f32 %v4029_v27, %v3794_v13 }
 0x616   : > { %v3510_v14 = vpop.f32.mrf.mxu1 }
 0x617   : > { %3574 = vst.msk [vmem:[%s4217_s18 + $0x20] sm:$0xff] %vm2991_vm13, %v3558_v2  ;;  %v3561_v8 = vadd.f32 %v3519_v38, %v5515_v20  ;;  %v3511_v6 = vadd.f32 %v3794_v13, %v3510_v14 }
 0x618   : > { %v4032_v7 = vpop.f32.mrf.mxu1 }
 0x619   : > { %3577 = vst.msk [vmem:[%s4217_s18 + $0x38] sm:$0xff] %vm2991_vm13, %v3561_v8  ;;  %v3559_v31 = vadd.f32 %v3511_v6, %v5503_v62  ;;  %v3532_v30 = vadd.f32 %v4032_v7, %v3794_v13 }
 0x61a   : > { %v3523_v60 = vpop.f32.mrf.mxu1 }
 0x61b   : > { %3575 = vst.msk [vmem:[%s4217_s18 + $0x28] sm:$0xff] %vm2991_vm13, %v3559_v31  ;;  %v3564_v1 = vadd.f32 %v3532_v30, %v5531_v33  ;;  %v3524_v21 = vadd.f32 %v3794_v13, %v3523_v60 }
 0x61c   : > { %v4033_v17 = vpop.f32.mrf.mxu1 }
 0x61d   : > { %3580 = vst.msk [vmem:[%s4217_s18 + $0x50] sm:$0xff] %vm2991_vm13, %v3564_v1  ;;  %v3562_v20 = vadd.f32 %v3524_v21, %v5518_v19  ;;  %v3535_v22 = vadd.f32 %v4033_v17, %v3794_v13 }
 0x61e   : > { %v3526_v57 = vpop.f32.mrf.mxu1 }
 0x61f   : > { %3578 = vst.msk [vmem:[%s4217_s18 + $0x40] sm:$0xff] %vm2991_vm13, %v3562_v20  ;;  %v3565_v62 = vadd.f32 %v3535_v22, %v5534_v24  ;;  %v3527_v48 = vadd.f32 %v3794_v13, %v3526_v57 }
 0x620   : > { %v4036_v50 = vpop.f32.mrf.mxu1 }
 0x621   : > { %3581 = vst.msk [vmem:[%s4217_s18 + $0x58] sm:$0xff] %vm2991_vm13, %v3565_v62  ;;  %v3563_v33 = vadd.f32 %v3527_v48, %v5522_v39  ;;  %v3548_v3 = vadd.f32 %v4036_v50, %v3794_v13 }
 0x622   : > { %v3539_v16 = vpop.f32.mrf.mxu1 }
 0x623   : > { %3579 = vst.msk [vmem:[%s4217_s18 + $0x48] sm:$0xff] %vm2991_vm13, %v3563_v33  ;;  %v3568_v19 = vadd.f32 %v3548_v3, %v5549_v40  ;;  %v3540_v32 = vadd.f32 %v3794_v13, %v3539_v16 }
 0x624   : > { %v4037_v18 = vpop.f32.mrf.mxu1 }
 0x625   : > { %3584 = vst.msk [vmem:[%s4217_s18 + $0x70] sm:$0xff] %vm2991_vm13, %v3568_v19  ;;  %v3566_v24 = vadd.f32 %v3540_v32, %v5537_v15  ;;  %v3551_v26 = vadd.f32 %v4037_v18, %v3794_v13 }
 0x626   : > { %v3542_v25 = vpop.f32.mrf.mxu1 }
 0x627   : > { %3582 = vst.msk [vmem:[%s4217_s18 + $0x60] sm:$0xff] %vm2991_vm13, %v3566_v24  ;;  %v3569_v5 = vadd.f32 %v3551_v26, %v5552_v49  ;;  %v3543_v39 = vadd.f32 %v3794_v13, %v3542_v25 }
 0x629   : > { %3585 = vst.msk [vmem:[%s4217_s18 + $0x78] sm:$0xff] %vm2991_vm13, %v3569_v5  ;;  %v3567_v55 = vadd.f32 %v3543_v39, %v5540_v54 }
 0x62b   : > { %3583 = vst.msk [vmem:[%s4217_s18 + $0x68] sm:$0xff] %vm2991_vm13, %v3567_v55 }
 0x62c PF: > { %s17_s28 = sadd.s32 1, %s4132_s28   ;;  %s5842_s24 = smov %s4124_s26 }
 0x62d   : > { %p14_p8 = scmp.ge.s32.totalorder %s17_s28, 6   ;;  %s5843_s25 = smov %s4128_s27 }
 0x62e   : > { %s5844_s26 = smov %s5847_s29  ;;  %s5845_s27 = smov %s5851_s30 }
 0x62f   :  { %16 = sbr.rel (!%p14_p8) target bundleno = 3 (0x3), region = 83 }

</bundles_post_ra>
